<compile_context>
chip_gen: v6e
topology: v6e:2x2x1
jax: 0.10.0
libtpu: 0.0.40
codegen_flags: <defaults>
</compile_context>

<pallas_src>
import functools

import jax
import jax.numpy as jnp
from jax import lax
from jax.experimental import pallas as pl
from jax.experimental.pallas import tpu as pltpu

BN_EPS = 1e-5
_STAT_LANES = 128
_VMEM_LIMIT = 32 * 1024 * 1024  # safe scoped-VMEM request on v5e / v6e / v7x


def _pick_tile(total, target, quantum):
    """Largest multiple of `quantum` that divides `total` and is <= target, else `total`."""
    total = int(total)
    target = max(quantum, min(int(target), total))
    best = 0
    for cand in range(quantum, target + 1, quantum):
        if total % cand == 0:
            best = cand
    return best if best > 0 else total


# ----------------------------- Pallas kernels -----------------------------

def _conv_stats_kernel(x_ref, w_ref, y_ref, s_ref, ss_ref):
    """One M-tile of the K-folded conv: y = W @ X (bf16 in, f32 acc) + BN partial stats."""
    y = jnp.dot(w_ref[...], x_ref[...], preferred_element_type=jnp.float32)  # (F, TM) f32
    y_ref[...] = y
    s = jnp.sum(y, axis=1, keepdims=True)        # (F, 1) partial sum
    ss = jnp.sum(y * y, axis=1, keepdims=True)   # (F, 1) partial sum of squares
    s_ref[...] = jnp.broadcast_to(s, s_ref.shape)
    ss_ref[...] = jnp.broadcast_to(ss, ss_ref.shape)


def _bn_relu_kernel(y_ref, scale_ref, shift_ref, o_ref):
    """Apply precomputed batch-norm scale/shift + ReLU on one (F, TM) tile."""
    y = y_ref[...]
    o = jnp.maximum(y * scale_ref[...] + shift_ref[...], 0.0)
    o_ref[...] = o.astype(o_ref.dtype)


def _pair_max_kernel(x_ref, o_ref):
    """Max of the two column halves of each row (one stage of 2x2x2 max pooling)."""
    x = x_ref[...]
    if x.shape[1] == 2:
        o_ref[...] = jnp.max(x, axis=1, keepdims=True)
    else:
        half = o_ref.shape[1]
        o_ref[...] = jnp.maximum(x[:, :half], x[:, half:])


# ------------------------------- wrappers ----------------------------------

def _im2col_channels_first(x, spatial):
    """(C, M) activations -> (27*C, M) bf16 im2col slab (tap-major, pad=1)."""
    C = x.shape[0]
    N, D, H, W = spatial
    M = N * D * H * W
    xv = x.reshape(C, N, D, H, W).astype(jnp.bfloat16)
    xp = jnp.pad(xv, ((0, 0), (0, 0), (1, 1), (1, 1), (1, 1)))
    taps = [xp[:, :, kd:kd + D, kh:kh + H, kw:kw + W].reshape(C, M)
            for kd in range(3) for kh in range(3) for kw in range(3)]
    return jnp.concatenate(taps, axis=0)


def conv3x3_bn_relu(x, spatial, w, gamma, beta, out_dtype):
    """Conv3d(k=3, pad=1, bias=False) + BatchNorm3d(batch stats) + ReLU.

    x: (Cin, M) slab; w: (F, 27*Cin) f32; returns (F, M) in `out_dtype`.
    """
    N, D, H, W = spatial
    M = N * D * H * W
    F = w.shape[0]
    K = w.shape[1]

    xt = _im2col_channels_first(x, spatial)      # (K, M) bf16
    wt = w.astype(jnp.bfloat16)                  # (F, K) bf16

    # M-tile: multiple of 128 lanes, divides M, ~<=2 MiB of im2col per tile.
    tm_cap = max(128, (2 * 1024 * 1024) // (K * 2))
    tm = _pick_tile(M, min(tm_cap, max(128, M // 2)), 128)
    nt = M // tm

    y, s, ss = pl.pallas_call(
        _conv_stats_kernel,
        out_shape=(jax.ShapeDtypeStruct((F, M), jnp.float32),
                   jax.ShapeDtypeStruct((nt, F, _STAT_LANES), jnp.float32),
                   jax.ShapeDtypeStruct((nt, F, _STAT_LANES), jnp.float32)),
        grid_spec=pltpu.PrefetchScalarGridSpec(
            num_scalar_prefetch=0,
            grid=(nt,),
            in_specs=[pl.BlockSpec((K, tm), lambda i: (0, i)),
                      pl.BlockSpec((F, K), lambda i: (0, 0))],
            out_specs=(pl.BlockSpec((F, tm), lambda i: (0, i)),
                       pl.BlockSpec((None, F, _STAT_LANES), lambda i: (i, 0, 0)),
                       pl.BlockSpec((None, F, _STAT_LANES), lambda i: (i, 0, 0)))),
        compiler_params=pltpu.CompilerParams(
            dimension_semantics=("parallel",),
            vmem_limit_bytes=_VMEM_LIMIT),
    )(xt, wt)

    # Tiny cross-tile reduction -> exact batch statistics (f32, matches PyTorch BN).
    s_tot = jnp.sum(s[:, :, 0], axis=0)
    ss_tot = jnp.sum(ss[:, :, 0], axis=0)
    mean = s_tot / M
    var = jnp.maximum(ss_tot / M - mean * mean, 0.0)   # biased variance
    scale = gamma * lax.rsqrt(var + BN_EPS)
    shift = beta - mean * scale

    out = pl.pallas_call(
        _bn_relu_kernel,
        out_shape=jax.ShapeDtypeStruct((F, M), out_dtype),
        grid_spec=pltpu.PrefetchScalarGridSpec(
            num_scalar_prefetch=0,
            grid=(nt,),
            in_specs=[pl.BlockSpec((F, tm), lambda i: (0, i)),
                      pl.BlockSpec((F, 1), lambda i: (0, 0)),
                      pl.BlockSpec((F, 1), lambda i: (0, 0))],
            out_specs=pl.BlockSpec((F, tm), lambda i: (0, i))),
        compiler_params=pltpu.CompilerParams(
            dimension_semantics=("parallel",),
            vmem_limit_bytes=_VMEM_LIMIT),
    )(y, scale.reshape(F, 1), shift.reshape(F, 1))
    return out


def _pair_max(x2d):
    """(R, 2*half) -> (R, half) elementwise max of the two column halves."""
    R, width = x2d.shape
    half = width // 2
    cap = max(8, (2 * 1024 * 1024) // (width * x2d.dtype.itemsize))
    tr = _pick_tile(R, min(cap, max(8, R // 2)), 8)
    nt = R // tr
    return pl.pallas_call(
        _pair_max_kernel,
        out_shape=jax.ShapeDtypeStruct((R, half), x2d.dtype),
        grid_spec=pltpu.PrefetchScalarGridSpec(
            num_scalar_prefetch=0,
            grid=(nt,),
            in_specs=[pl.BlockSpec((tr, width), lambda i: (i, 0))],
            out_specs=pl.BlockSpec((tr, half), lambda i: (i, 0))),
        compiler_params=pltpu.CompilerParams(
            dimension_semantics=("parallel",),
            vmem_limit_bytes=_VMEM_LIMIT),
    )(x2d)


def maxpool2(x, spatial):
    """MaxPool3d(kernel_size=2, stride=2) on a channels-first (C, M) slab."""
    C = x.shape[0]
    N, D, H, W = spatial
    D2, H2, W2 = D // 2, H // 2, W // 2
    Hc, Wc = 2 * H2, 2 * W2
    xv = x.reshape(C, N, D, H, W)
    if (D, H, W) != (2 * D2, Hc, Wc):           # PyTorch floors odd extents
        xv = xv[:, :, :2 * D2, :Hc, :Wc]
    y = _pair_max(xv.reshape(C * N * D2, 2 * Hc * Wc))       # max over depth pairs
    y = _pair_max(y.reshape(C * N * D2 * H2, 2 * Wc))        # max over height pairs
    y = _pair_max(y.reshape(C * N * D2 * H2 * W2, 2))        # max over width pairs
    return y.reshape(C, N * D2 * H2 * W2), (N, D2, H2, W2)


# ----------------------------- parameters / model --------------------------

def init_params(key, n_input_channels, n_filters):
    k1, k2, k3, k4, k5, k6 = jax.random.split(key, 6)
    w1 = (jax.random.normal(k1, (n_filters, 27 * n_input_channels), jnp.float32)
          / jnp.sqrt(27.0 * n_input_channels))
    w2 = (jax.random.normal(k2, (n_filters, 27 * n_filters), jnp.float32)
          / jnp.sqrt(27.0 * n_filters))
    g1 = 1.0 + 0.1 * jax.random.normal(k3, (n_filters,), jnp.float32)
    b1 = 0.1 * jax.random.normal(k4, (n_filters,), jnp.float32)
    g2 = 1.0 + 0.1 * jax.random.normal(k5, (n_filters,), jnp.float32)
    b2 = 0.1 * jax.random.normal(k6, (n_filters,), jnp.float32)
    return dict(w1=w1, g1=g1, b1=b1, w2=w2, g2=g2, b2=b2)


def contraction_block_forward(params, x, pooling=True):
    """ContractionBlock.forward (dropout=None): [MaxPool] -> 2x (conv3x3 + BN + ReLU)."""
    N, C, D, H, W = x.shape
    xc = jnp.transpose(x, (1, 0, 2, 3, 4)).reshape(C, N * D * H * W)  # channels-first slab
    spatial = (N, D, H, W)
    if pooling:
        xc, spatial = maxpool2(xc, spatial)
    h1 = conv3x3_bn_relu(xc, spatial, params["w1"], params["g1"], params["b1"],
                         out_dtype=jnp.bfloat16)      # bf16 feed into the next MXU dot
    h2 = conv3x3_bn_relu(h1, spatial, params["w2"], params["g2"], params["b2"],
                         out_dtype=jnp.float32)
    F = params["w2"].shape[0]
    Np, Dp, Hp, Wp = spatial
    out = h2.reshape(F, Np, Dp, Hp, Wp)
    return jnp.transpose(out, (1, 0, 2, 3, 4))        # back to NCDHW


# --------------------------- pure-JAX reference -----------------------------

def reference_forward(params, x, pooling=True):
    def conv_bn_relu(x, w_flat, gamma, beta):
        F = w_flat.shape[0]
        Cin = w_flat.shape[1] // 27
        w = jnp.transpose(w_flat.reshape(F, 3, 3, 3, Cin), (0, 4, 1, 2, 3))  # OIDHW
        y = lax.conv_general_dilated(x, w, (1, 1, 1), [(1, 1)] * 3,
                                     dimension_numbers=("NCDHW", "OIDHW", "NCDHW"),
                                     precision=lax.Precision.HIGHEST)
        mean = jnp.mean(y, axis=(0, 2, 3, 4), keepdims=True)
        var = jnp.mean(jnp.square(y - mean), axis=(0, 2, 3, 4), keepdims=True)
        yn = (y - mean) * lax.rsqrt(var + BN_EPS)
        return jnp.maximum(yn * gamma.reshape(1, -1, 1, 1, 1)
                           + beta.reshape(1, -1, 1, 1, 1), 0.0)

    if pooling:
        N, C, D, H, W = x.shape
        x = x[:, :, :D // 2 * 2, :H // 2 * 2, :W // 2 * 2]
        x = x.reshape(N, C, D // 2, 2, H // 2, 2, W // 2, 2).max(axis=(3, 5, 7))
    x = conv_bn_relu(x, params["w1"], params["g1"], params["b1"])
    x = conv_bn_relu(x, params["w2"], params["g2"], params["b2"])
    return x


if __name__ == "__main__":
    key = jax.random.PRNGKey(0)
    kp, kx = jax.random.split(key)

    N, C_in, S = 2, 4, 16
    n_filters = 8

    params = init_params(kp, C_in, n_filters)
    x = jax.random.normal(kx, (N, C_in, S, S, S), jnp.float32)

    fwd = jax.jit(functools.partial(contraction_block_forward, pooling=True))
    out = jax.block_until_ready(fwd(params, x))

    assert out.shape == (N, n_filters, S // 2, S // 2, S // 2), out.shape
    assert out.dtype == jnp.float32
    assert bool(jnp.all(jnp.isfinite(out)))
    assert bool(jnp.all(out >= 0.0))                      # ReLU output

    ref = jax.block_until_ready(
        jax.jit(functools.partial(reference_forward, pooling=True))(params, x))
    max_err = float(jnp.max(jnp.abs(out - ref)))
    assert max_err < 0.25, f"max |pallas - reference| = {max_err}"

    print("KERNEL_OK")
</pallas_src>

<mosaic_0001>
module attributes {stable_mosaic.version = 11 : i64} {
  func.func @_pair_max_kernel(%arg0: i32, %arg1: memref<32x512xf32, #tpu.memory_space<vmem>>, %arg2: memref<32x256xf32, #tpu.memory_space<vmem>>) attributes {dimension_semantics = [#tpu.dimension_semantics<parallel>], iteration_bounds = array<i64: 2>, scalar_prefetch = 0 : i64, scratch_operands = 0 : i64, tpu.core_type = #tpu.core_type<tc>, window_params = [{transform_indices = @transform_0, window_bounds = array<i64: 32, 512>}, {transform_indices = @transform_1, window_bounds = array<i64: 32, 256>}]} {
    %c0 = arith.constant 0 : index
    %c0_0 = arith.constant 0 : index
    %0 = vector.load %arg1[%c0, %c0_0] : memref<32x512xf32, #tpu.memory_space<vmem>>, vector<32x512xf32>
    %1 = vector.extract_strided_slice %0 {offsets = [0, 0], sizes = [32, 256], strides = [1, 1]} : vector<32x512xf32> to vector<32x256xf32>
    %2 = vector.extract_strided_slice %0 {offsets = [0, 256], sizes = [32, 256], strides = [1, 1]} : vector<32x512xf32> to vector<32x256xf32>
    %3 = arith.maximumf %1, %2 : vector<32x256xf32>
    %c0_1 = arith.constant 0 : index
    %c0_2 = arith.constant 0 : index
    %4 = vector.load %arg2[%c0_1, %c0_2] : memref<32x256xf32, #tpu.memory_space<vmem>>, vector<32x256xf32>
    tpu.vector_store %arg2[%c0_1, %c0_2], %3 {strides = array<i32>} : memref<32x256xf32, #tpu.memory_space<vmem>>, vector<32x256xf32>,
    return
  }
  func.func @transform_0(%arg0: i32) -> (i32, i32) {
    %c0_i32 = arith.constant 0 : i32
    %c0_i32_0 = arith.constant 0 : i32
    return %arg0, %c0_i32 : i32, i32
  }
  func.func @transform_1(%arg0: i32) -> (i32, i32) {
    %c0_i32 = arith.constant 0 : i32
    %c0_i32_0 = arith.constant 0 : i32
    return %arg0, %c0_i32 : i32, i32
  }
}

module attributes {stable_mosaic.version = 11 : i64} {
  func.func @_pair_max_kernel(%arg0: i32, %arg1: memref<256x32xf32, #tpu.memory_space<vmem>>, %arg2: memref<256x16xf32, #tpu.memory_space<vmem>>) attributes {dimension_semantics = [#tpu.dimension_semantics<parallel>], iteration_bounds = array<i64: 2>, scalar_prefetch = 0 : i64, scratch_operands = 0 : i64, tpu.core_type = #tpu.core_type<tc>, window_params = [{transform_indices = @transform_0, window_bounds = array<i64: 256, 32>}, {transform_indices = @transform_1, window_bounds = array<i64: 256, 16>}]} {
    %c0 = arith.constant 0 : index
    %c0_0 = arith.constant 0 : index
    %0 = vector.load %arg1[%c0, %c0_0] : memref<256x32xf32, #tpu.memory_space<vmem>>, vector<256x32xf32>
    %1 = vector.extract_strided_slice %0 {offsets = [0, 0], sizes = [256, 16], strides = [1, 1]} : vector<256x32xf32> to vector<256x16xf32>
    %2 = vector.extract_strided_slice %0 {offsets = [0, 16], sizes = [256, 16], strides = [1, 1]} : vector<256x32xf32> to vector<256x16xf32>
    %3 = arith.maximumf %1, %2 : vector<256x16xf32>
    %c0_1 = arith.constant 0 : index
    %c0_2 = arith.constant 0 : index
    %4 = vector.load %arg2[%c0_1, %c0_2] : memref<256x16xf32, #tpu.memory_space<vmem>>, vector<256x16xf32>
    tpu.vector_store %arg2[%c0_1, %c0_2], %3 {strides = array<i32>} : memref<256x16xf32, #tpu.memory_space<vmem>>, vector<256x16xf32>,
    return
  }
  func.func @transform_0(%arg0: i32) -> (i32, i32) {
    %c0_i32 = arith.constant 0 : i32
    %c0_i32_0 = arith.constant 0 : i32
    return %arg0, %c0_i32 : i32, i32
  }
  func.func @transform_1(%arg0: i32) -> (i32, i32) {
    %c0_i32 = arith.constant 0 : i32
    %c0_i32_0 = arith.constant 0 : i32
    return %arg0, %c0_i32 : i32, i32
  }
}

module attributes {stable_mosaic.version = 11 : i64} {
  func.func @_pair_max_kernel(%arg0: i32, %arg1: memref<2048x2xf32, #tpu.memory_space<vmem>>, %arg2: memref<2048x1xf32, #tpu.memory_space<vmem>>) attributes {dimension_semantics = [#tpu.dimension_semantics<parallel>], iteration_bounds = array<i64: 2>, scalar_prefetch = 0 : i64, scratch_operands = 0 : i64, tpu.core_type = #tpu.core_type<tc>, window_params = [{transform_indices = @transform_0, window_bounds = array<i64: 2048, 2>}, {transform_indices = @transform_1, window_bounds = array<i64: 2048, 1>}]} {
    %c0 = arith.constant 0 : index
    %c0_0 = arith.constant 0 : index
    %0 = vector.load %arg1[%c0, %c0_0] : memref<2048x2xf32, #tpu.memory_space<vmem>>, vector<2048x2xf32>
    %cst = arith.constant dense<0xFF800000> : vector<2048xf32>
    %1 = vector.multi_reduction <maximumf>, %0, %cst [1] : vector<2048x2xf32> to vector<2048xf32>
    %2 = vector.shape_cast %1 : vector<2048xf32> to vector<2048x1xf32>
    %c0_1 = arith.constant 0 : index
    %c0_2 = arith.constant 0 : index
    %3 = vector.load %arg2[%c0_1, %c0_2] : memref<2048x1xf32, #tpu.memory_space<vmem>>, vector<2048x1xf32>
    tpu.vector_store %arg2[%c0_1, %c0_2], %2 {strides = array<i32>} : memref<2048x1xf32, #tpu.memory_space<vmem>>, vector<2048x1xf32>,
    return
  }
  func.func @transform_0(%arg0: i32) -> (i32, i32) {
    %c0_i32 = arith.constant 0 : i32
    %c0_i32_0 = arith.constant 0 : i32
    return %arg0, %c0_i32 : i32, i32
  }
  func.func @transform_1(%arg0: i32) -> (i32, i32) {
    %c0_i32 = arith.constant 0 : i32
    %c0_i32_0 = arith.constant 0 : i32
    return %arg0, %c0_i32 : i32, i32
  }
}

module attributes {stable_mosaic.version = 11 : i64} {
  func.func @_conv_stats_kernel(%arg0: i32, %arg1: memref<108x512xbf16, #tpu.memory_space<vmem>>, %arg2: memref<8x108xbf16, #tpu.memory_space<vmem>>, %arg3: memref<8x512xf32, #tpu.memory_space<vmem>>, %arg4: memref<1x8x128xf32, #tpu.memory_space<vmem>>, %arg5: memref<1x8x128xf32, #tpu.memory_space<vmem>>) attributes {dimension_semantics = [#tpu.dimension_semantics<parallel>], iteration_bounds = array<i64: 2>, scalar_prefetch = 0 : i64, scratch_operands = 0 : i64, tpu.core_type = #tpu.core_type<tc>, window_params = [{transform_indices = @transform_0, window_bounds = array<i64: 108, 512>}, {pipeline_mode = #tpu.pipeline_mode<synchronous>, transform_indices = @transform_1, window_bounds = array<i64: 8, 108>}, {transform_indices = @transform_2, window_bounds = array<i64: 8, 512>}, {transform_indices = @transform_3, window_bounds = array<i64: 1, 8, 128>}, {transform_indices = @transform_4, window_bounds = array<i64: 1, 8, 128>}]} {
    %c0 = arith.constant 0 : index
    %c0_0 = arith.constant 0 : index
    %0 = vector.load %arg2[%c0, %c0_0] : memref<8x108xbf16, #tpu.memory_space<vmem>>, vector<8x108xbf16>
    %c0_1 = arith.constant 0 : index
    %c0_2 = arith.constant 0 : index
    %1 = vector.load %arg1[%c0_1, %c0_2] : memref<108x512xbf16, #tpu.memory_space<vmem>>, vector<108x512xbf16>
    %cst = arith.constant dense<0.000000e+00> : vector<8x512xf32>
    %2 = tpu.matmul %0, %1, %cst {dimension_numbers = #tpu.dot_dimension_numbers<[1], [0], [0], [1], [0, 0, 1, 1], [], []>} : vector<8x108xbf16>, vector<108x512xbf16>, vector<8x512xf32> -> vector<8x512xf32>
    %c0_3 = arith.constant 0 : index
    %c0_4 = arith.constant 0 : index
    %3 = vector.load %arg3[%c0_3, %c0_4] : memref<8x512xf32, #tpu.memory_space<vmem>>, vector<8x512xf32>
    tpu.vector_store %arg3[%c0_3, %c0_4], %2 {strides = array<i32>} : memref<8x512xf32, #tpu.memory_space<vmem>>, vector<8x512xf32>,
    %cst_5 = arith.constant dense<0.000000e+00> : vector<8xf32>
    %4 = vector.multi_reduction <add>, %2, %cst_5 [1] : vector<8x512xf32> to vector<8xf32>
    %5 = vector.shape_cast %4 : vector<8xf32> to vector<8x1xf32>
    %6 = arith.mulf %2, %2 : vector<8x512xf32>
    %cst_6 = arith.constant dense<0.000000e+00> : vector<8xf32>
    %7 = vector.multi_reduction <add>, %6, %cst_6 [1] : vector<8x512xf32> to vector<8xf32>
    %8 = vector.shape_cast %7 : vector<8xf32> to vector<8x1xf32>
    %9 = vector.shape_cast %5 : vector<8x1xf32> to vector<8x1xf32>
    %10 = vector.broadcast %9 : vector<8x1xf32> to vector<8x128xf32>
    %c0_7 = arith.constant 0 : index
    %c0_8 = arith.constant 0 : index
    %c0_9 = arith.constant 0 : index
    %11 = vector.load %arg4[%c0_7, %c0_8, %c0_9] : memref<1x8x128xf32, #tpu.memory_space<vmem>>, vector<1x8x128xf32>
    %12 = vector.shape_cast %11 : vector<1x8x128xf32> to vector<8x128xf32>
    %13 = vector.shape_cast %10 : vector<8x128xf32> to vector<1x8x128xf32>
    tpu.vector_store %arg4[%c0_7, %c0_8, %c0_9], %13 {strides = array<i32>} : memref<1x8x128xf32, #tpu.memory_space<vmem>>, vector<1x8x128xf32>,
    %14 = vector.shape_cast %8 : vector<8x1xf32> to vector<8x1xf32>
    %15 = vector.broadcast %14 : vector<8x1xf32> to vector<8x128xf32>
    %c0_10 = arith.constant 0 : index
    %c0_11 = arith.constant 0 : index
    %c0_12 = arith.constant 0 : index
    %16 = vector.load %arg5[%c0_10, %c0_11, %c0_12] : memref<1x8x128xf32, #tpu.memory_space<vmem>>, vector<1x8x128xf32>
    %17 = vector.shape_cast %16 : vector<1x8x128xf32> to vector<8x128xf32>
    %18 = vector.shape_cast %15 : vector<8x128xf32> to vector<1x8x128xf32>
    tpu.vector_store %arg5[%c0_10, %c0_11, %c0_12], %18 {strides = array<i32>} : memref<1x8x128xf32, #tpu.memory_space<vmem>>, vector<1x8x128xf32>,
    return
  }
  func.func @transform_0(%arg0: i32) -> (i32, i32) {
    %c0_i32 = arith.constant 0 : i32
    %c0_i32_0 = arith.constant 0 : i32
    return %c0_i32, %arg0 : i32, i32
  }
  func.func @transform_1(%arg0: i32) -> (i32, i32) {
    %c0_i32 = arith.constant 0 : i32
    %c0_i32_0 = arith.constant 0 : i32
    %c0_i32_1 = arith.constant 0 : i32
    return %c0_i32, %c0_i32_0 : i32, i32
  }
  func.func @transform_2(%arg0: i32) -> (i32, i32) {
    %c0_i32 = arith.constant 0 : i32
    %c0_i32_0 = arith.constant 0 : i32
    return %c0_i32, %arg0 : i32, i32
  }
  func.func @transform_3(%arg0: i32) -> (i32, i32, i32) {
    %c0_i32 = arith.constant 0 : i32
    %c0_i32_0 = arith.constant 0 : i32
    %c0_i32_1 = arith.constant 0 : i32
    return %arg0, %c0_i32, %c0_i32_0 : i32, i32, i32
  }
  func.func @transform_4(%arg0: i32) -> (i32, i32, i32) {
    %c0_i32 = arith.constant 0 : i32
    %c0_i32_0 = arith.constant 0 : i32
    %c0_i32_1 = arith.constant 0 : i32
    return %arg0, %c0_i32, %c0_i32_0 : i32, i32, i32
  }
}

module attributes {stable_mosaic.version = 11 : i64} {
  func.func @_bn_relu_kernel(%arg0: i32, %arg1: memref<8x512xf32, #tpu.memory_space<vmem>>, %arg2: memref<8x1xf32, #tpu.memory_space<vmem>>, %arg3: memref<8x1xf32, #tpu.memory_space<vmem>>, %arg4: memref<8x512xbf16, #tpu.memory_space<vmem>>) attributes {dimension_semantics = [#tpu.dimension_semantics<parallel>], iteration_bounds = array<i64: 2>, scalar_prefetch = 0 : i64, scratch_operands = 0 : i64, tpu.core_type = #tpu.core_type<tc>, window_params = [{transform_indices = @transform_0, window_bounds = array<i64: 8, 512>}, {pipeline_mode = #tpu.pipeline_mode<synchronous>, transform_indices = @transform_1, window_bounds = array<i64: 8, 1>}, {pipeline_mode = #tpu.pipeline_mode<synchronous>, transform_indices = @transform_2, window_bounds = array<i64: 8, 1>}, {transform_indices = @transform_3, window_bounds = array<i64: 8, 512>}]} {
    %c0 = arith.constant 0 : index
    %c0_0 = arith.constant 0 : index
    %0 = vector.load %arg1[%c0, %c0_0] : memref<8x512xf32, #tpu.memory_space<vmem>>, vector<8x512xf32>
    %c0_1 = arith.constant 0 : index
    %c0_2 = arith.constant 0 : index
    %1 = vector.load %arg2[%c0_1, %c0_2] : memref<8x1xf32, #tpu.memory_space<vmem>>, vector<8x1xf32>
    %2 = vector.broadcast %1 : vector<8x1xf32> to vector<8x512xf32>
    %3 = arith.mulf %0, %2 : vector<8x512xf32>
    %c0_3 = arith.constant 0 : index
    %c0_4 = arith.constant 0 : index
    %4 = vector.load %arg3[%c0_3, %c0_4] : memref<8x1xf32, #tpu.memory_space<vmem>>, vector<8x1xf32>
    %5 = vector.broadcast %4 : vector<8x1xf32> to vector<8x512xf32>
    %6 = arith.addf %3, %5 : vector<8x512xf32>
    %cst = arith.constant 0.000000e+00 : f32
    %7 = vector.broadcast %cst : f32 to vector<8x512xf32>
    %8 = arith.maximumf %6, %7 : vector<8x512xf32>
    %9 = arith.truncf %8 : vector<8x512xf32> to vector<8x512xbf16>
    %c0_5 = arith.constant 0 : index
    %c0_6 = arith.constant 0 : index
    %10 = vector.load %arg4[%c0_5, %c0_6] : memref<8x512xbf16, #tpu.memory_space<vmem>>, vector<8x512xbf16>
    tpu.vector_store %arg4[%c0_5, %c0_6], %9 {strides = array<i32>} : memref<8x512xbf16, #tpu.memory_space<vmem>>, vector<8x512xbf16>,
    return
  }
  func.func @transform_0(%arg0: i32) -> (i32, i32) {
    %c0_i32 = arith.constant 0 : i32
    %c0_i32_0 = arith.constant 0 : i32
    return %c0_i32, %arg0 : i32, i32
  }
  func.func @transform_1(%arg0: i32) -> (i32, i32) {
    %c0_i32 = arith.constant 0 : i32
    %c0_i32_0 = arith.constant 0 : i32
    %c0_i32_1 = arith.constant 0 : i32
    return %c0_i32, %c0_i32_0 : i32, i32
  }
  func.func @transform_2(%arg0: i32) -> (i32, i32) {
    %c0_i32 = arith.constant 0 : i32
    %c0_i32_0 = arith.constant 0 : i32
    %c0_i32_1 = arith.constant 0 : i32
    return %c0_i32, %c0_i32_0 : i32, i32
  }
  func.func @transform_3(%arg0: i32) -> (i32, i32) {
    %c0_i32 = arith.constant 0 : i32
    %c0_i32_0 = arith.constant 0 : i32
    return %c0_i32, %arg0 : i32, i32
  }
}

module attributes {stable_mosaic.version = 11 : i64} {
  func.func @_conv_stats_kernel(%arg0: i32, %arg1: memref<216x512xbf16, #tpu.memory_space<vmem>>, %arg2: memref<8x216xbf16, #tpu.memory_space<vmem>>, %arg3: memref<8x512xf32, #tpu.memory_space<vmem>>, %arg4: memref<1x8x128xf32, #tpu.memory_space<vmem>>, %arg5: memref<1x8x128xf32, #tpu.memory_space<vmem>>) attributes {dimension_semantics = [#tpu.dimension_semantics<parallel>], iteration_bounds = array<i64: 2>, scalar_prefetch = 0 : i64, scratch_operands = 0 : i64, tpu.core_type = #tpu.core_type<tc>, window_params = [{transform_indices = @transform_0, window_bounds = array<i64: 216, 512>}, {pipeline_mode = #tpu.pipeline_mode<synchronous>, transform_indices = @transform_1, window_bounds = array<i64: 8, 216>}, {transform_indices = @transform_2, window_bounds = array<i64: 8, 512>}, {transform_indices = @transform_3, window_bounds = array<i64: 1, 8, 128>}, {transform_indices = @transform_4, window_bounds = array<i64: 1, 8, 128>}]} {
    %c0 = arith.constant 0 : index
    %c0_0 = arith.constant 0 : index
    %0 = vector.load %arg2[%c0, %c0_0] : memref<8x216xbf16, #tpu.memory_space<vmem>>, vector<8x216xbf16>
    %c0_1 = arith.constant 0 : index
    %c0_2 = arith.constant 0 : index
    %1 = vector.load %arg1[%c0_1, %c0_2] : memref<216x512xbf16, #tpu.memory_space<vmem>>, vector<216x512xbf16>
    %cst = arith.constant dense<0.000000e+00> : vector<8x512xf32>
    %2 = tpu.matmul %0, %1, %cst {dimension_numbers = #tpu.dot_dimension_numbers<[1], [0], [0], [1], [0, 0, 1, 1], [], []>} : vector<8x216xbf16>, vector<216x512xbf16>, vector<8x512xf32> -> vector<8x512xf32>
    %c0_3 = arith.constant 0 : index
    %c0_4 = arith.constant 0 : index
    %3 = vector.load %arg3[%c0_3, %c0_4] : memref<8x512xf32, #tpu.memory_space<vmem>>, vector<8x512xf32>
    tpu.vector_store %arg3[%c0_3, %c0_4], %2 {strides = array<i32>} : memref<8x512xf32, #tpu.memory_space<vmem>>, vector<8x512xf32>,
    %cst_5 = arith.constant dense<0.000000e+00> : vector<8xf32>
    %4 = vector.multi_reduction <add>, %2, %cst_5 [1] : vector<8x512xf32> to vector<8xf32>
    %5 = vector.shape_cast %4 : vector<8xf32> to vector<8x1xf32>
    %6 = arith.mulf %2, %2 : vector<8x512xf32>
    %cst_6 = arith.constant dense<0.000000e+00> : vector<8xf32>
    %7 = vector.multi_reduction <add>, %6, %cst_6 [1] : vector<8x512xf32> to vector<8xf32>
    %8 = vector.shape_cast %7 : vector<8xf32> to vector<8x1xf32>
    %9 = vector.shape_cast %5 : vector<8x1xf32> to vector<8x1xf32>
    %10 = vector.broadcast %9 : vector<8x1xf32> to vector<8x128xf32>
    %c0_7 = arith.constant 0 : index
    %c0_8 = arith.constant 0 : index
    %c0_9 = arith.constant 0 : index
    %11 = vector.load %arg4[%c0_7, %c0_8, %c0_9] : memref<1x8x128xf32, #tpu.memory_space<vmem>>, vector<1x8x128xf32>
    %12 = vector.shape_cast %11 : vector<1x8x128xf32> to vector<8x128xf32>
    %13 = vector.shape_cast %10 : vector<8x128xf32> to vector<1x8x128xf32>
    tpu.vector_store %arg4[%c0_7, %c0_8, %c0_9], %13 {strides = array<i32>} : memref<1x8x128xf32, #tpu.memory_space<vmem>>, vector<1x8x128xf32>,
    %14 = vector.shape_cast %8 : vector<8x1xf32> to vector<8x1xf32>
    %15 = vector.broadcast %14 : vector<8x1xf32> to vector<8x128xf32>
    %c0_10 = arith.constant 0 : index
    %c0_11 = arith.constant 0 : index
    %c0_12 = arith.constant 0 : index
    %16 = vector.load %arg5[%c0_10, %c0_11, %c0_12] : memref<1x8x128xf32, #tpu.memory_space<vmem>>, vector<1x8x128xf32>
    %17 = vector.shape_cast %16 : vector<1x8x128xf32> to vector<8x128xf32>
    %18 = vector.shape_cast %15 : vector<8x128xf32> to vector<1x8x128xf32>
    tpu.vector_store %arg5[%c0_10, %c0_11, %c0_12], %18 {strides = array<i32>} : memref<1x8x128xf32, #tpu.memory_space<vmem>>, vector<1x8x128xf32>,
    return
  }
  func.func @transform_0(%arg0: i32) -> (i32, i32) {
    %c0_i32 = arith.constant 0 : i32
    %c0_i32_0 = arith.constant 0 : i32
    return %c0_i32, %arg0 : i32, i32
  }
  func.func @transform_1(%arg0: i32) -> (i32, i32) {
    %c0_i32 = arith.constant 0 : i32
    %c0_i32_0 = arith.constant 0 : i32
    %c0_i32_1 = arith.constant 0 : i32
    return %c0_i32, %c0_i32_0 : i32, i32
  }
  func.func @transform_2(%arg0: i32) -> (i32, i32) {
    %c0_i32 = arith.constant 0 : i32
    %c0_i32_0 = arith.constant 0 : i32
    return %c0_i32, %arg0 : i32, i32
  }
  func.func @transform_3(%arg0: i32) -> (i32, i32, i32) {
    %c0_i32 = arith.constant 0 : i32
    %c0_i32_0 = arith.constant 0 : i32
    %c0_i32_1 = arith.constant 0 : i32
    return %arg0, %c0_i32, %c0_i32_0 : i32, i32, i32
  }
  func.func @transform_4(%arg0: i32) -> (i32, i32, i32) {
    %c0_i32 = arith.constant 0 : i32
    %c0_i32_0 = arith.constant 0 : i32
    %c0_i32_1 = arith.constant 0 : i32
    return %arg0, %c0_i32, %c0_i32_0 : i32, i32, i32
  }
}

module attributes {stable_mosaic.version = 11 : i64} {
  func.func @_bn_relu_kernel(%arg0: i32, %arg1: memref<8x512xf32, #tpu.memory_space<vmem>>, %arg2: memref<8x1xf32, #tpu.memory_space<vmem>>, %arg3: memref<8x1xf32, #tpu.memory_space<vmem>>, %arg4: memref<8x512xf32, #tpu.memory_space<vmem>>) attributes {dimension_semantics = [#tpu.dimension_semantics<parallel>], iteration_bounds = array<i64: 2>, scalar_prefetch = 0 : i64, scratch_operands = 0 : i64, tpu.core_type = #tpu.core_type<tc>, window_params = [{transform_indices = @transform_0, window_bounds = array<i64: 8, 512>}, {pipeline_mode = #tpu.pipeline_mode<synchronous>, transform_indices = @transform_1, window_bounds = array<i64: 8, 1>}, {pipeline_mode = #tpu.pipeline_mode<synchronous>, transform_indices = @transform_2, window_bounds = array<i64: 8, 1>}, {transform_indices = @transform_3, window_bounds = array<i64: 8, 512>}]} {
    %c0 = arith.constant 0 : index
    %c0_0 = arith.constant 0 : index
    %0 = vector.load %arg1[%c0, %c0_0] : memref<8x512xf32, #tpu.memory_space<vmem>>, vector<8x512xf32>
    %c0_1 = arith.constant 0 : index
    %c0_2 = arith.constant 0 : index
    %1 = vector.load %arg2[%c0_1, %c0_2] : memref<8x1xf32, #tpu.memory_space<vmem>>, vector<8x1xf32>
    %2 = vector.broadcast %1 : vector<8x1xf32> to vector<8x512xf32>
    %3 = arith.mulf %0, %2 : vector<8x512xf32>
    %c0_3 = arith.constant 0 : index
    %c0_4 = arith.constant 0 : index
    %4 = vector.load %arg3[%c0_3, %c0_4] : memref<8x1xf32, #tpu.memory_space<vmem>>, vector<8x1xf32>
    %5 = vector.broadcast %4 : vector<8x1xf32> to vector<8x512xf32>
    %6 = arith.addf %3, %5 : vector<8x512xf32>
    %cst = arith.constant 0.000000e+00 : f32
    %7 = vector.broadcast %cst : f32 to vector<8x512xf32>
    %8 = arith.maximumf %6, %7 : vector<8x512xf32>
    %c0_5 = arith.constant 0 : index
    %c0_6 = arith.constant 0 : index
    %9 = vector.load %arg4[%c0_5, %c0_6] : memref<8x512xf32, #tpu.memory_space<vmem>>, vector<8x512xf32>
    tpu.vector_store %arg4[%c0_5, %c0_6], %8 {strides = array<i32>} : memref<8x512xf32, #tpu.memory_space<vmem>>, vector<8x512xf32>,
    return
  }
  func.func @transform_0(%arg0: i32) -> (i32, i32) {
    %c0_i32 = arith.constant 0 : i32
    %c0_i32_0 = arith.constant 0 : i32
    return %c0_i32, %arg0 : i32, i32
  }
  func.func @transform_1(%arg0: i32) -> (i32, i32) {
    %c0_i32 = arith.constant 0 : i32
    %c0_i32_0 = arith.constant 0 : i32
    %c0_i32_1 = arith.constant 0 : i32
    return %c0_i32, %c0_i32_0 : i32, i32
  }
  func.func @transform_2(%arg0: i32) -> (i32, i32) {
    %c0_i32 = arith.constant 0 : i32
    %c0_i32_0 = arith.constant 0 : i32
    %c0_i32_1 = arith.constant 0 : i32
    return %c0_i32, %c0_i32_0 : i32, i32
  }
  func.func @transform_3(%arg0: i32) -> (i32, i32) {
    %c0_i32 = arith.constant 0 : i32
    %c0_i32_0 = arith.constant 0 : i32
    return %c0_i32, %arg0 : i32, i32
  }
}

</mosaic_0001>

<bundles_post_ra>
// kernel: contraction_block_forward.7
= control target key start
LH: loop header
LB: loop body
LE: loop exit
PB: predicated region body
PF: predicated region fallthrough
CT: control target
= control target key end

     0   :  { %s256_s6 = smov 0   ;;  %s283_s0 = inlined_call_operand.vmem [shape: f32[64,512], index: 0, kind: input, shape index: {}]   ;;  %s284_s1 = inlined_call_operand.vmem [shape: f32[64,256], index: 1, kind: output, shape index: {}]  }
   0x1 LB: > { %s215_s7 = sadd.s32 4294967295, %s244_s6   ;;  %p219_p0 = scmp.ge.s32.totalorder %s244_s6, 1  ;;  %s244_s6 = sphi %s256_s6, %s11_s6  }
   0x2   : > { %p89_p1 = scmp.lt.s32.totalorder %s244_s6, 3 }
   0x4   : > { %p90_p2 = pnand %p219_p0, %p89_p1 }
   0x5   : > { %s220_s8 = sshll.u32 (!%p90_p2), %s215_s7, 2 }
   0x6   : > { %93 = sbr.rel (%p90_p2) target bundleno = 23 (0x17), region = 24  ;;  %p112_p3 = scmp.lt.s32.totalorder (!%p90_p2), %s220_s8, 7 }
   0xb   : > { %s286_s8 = smov (!%p112_p3, %s220_s8), 7 }
   0xc   : > { %s228_s9 = sshll.u32 %s286_s8, 5  ;;  %s229_s10 = sshll.u32 %s286_s8, 4 }
   0xd   : > { %s116_s13 = scalar_lea.vmem %s283_s0, %s228_s9  ;;  %s270_s16 = scalar_lea.vmem %s284_s1, %s229_s10 }
   0xe   : > { %v125_v0 = vld [vmem:[%s116_s13] sm:$0xff]  ;;  %v127_v1 = vld [vmem:[%s116_s13 + $0x10] sm:$0xff]  ;;  %v126_v2 = vld [vmem:[%s116_s13 + $0x8] sm:$0xff] }
   0xf   : > { %v141_v3 = vmax.f32 %v125_v0, %v127_v1  ;;  %v128_v4 = vld [vmem:[%s116_s13 + $0x18] sm:$0xff]  ;;  %v129_v5 = vld [vmem:[%s116_s13 + $0x20] sm:$0xff]  ;;  %v131_v6 = vld [vmem:[%s116_s13 + $0x30] sm:$0xff] }
  0x10   : > { %v142_v7 = vmax.f32 %v126_v2, %v128_v4  ;;  %v143_v8 = vmax.f32 %v129_v5, %v131_v6  ;;  %v130_v9 = vld [vmem:[%s116_s13 + $0x28] sm:$0xff]  ;;  %v132_v10 = vld [vmem:[%s116_s13 + $0x38] sm:$0xff]  ;;  %v133_v11 = vld [vmem:[%s116_s13 + $0x40] sm:$0xff] }
  0x11   : > { %149 = vst [vmem:[%s270_s16] sm:$0xff] %v141_v3  ;;  %v144_v12 = vmax.f32 %v130_v9, %v132_v10  ;;  %v135_v13 = vld [vmem:[%s116_s13 + $0x50] sm:$0xff]  ;;  %v134_v14 = vld [vmem:[%s116_s13 + $0x48] sm:$0xff]  ;;  %v136_v15 = vld [vmem:[%s116_s13 + $0x58] sm:$0xff] }
  0x12   : > { %150 = vst [vmem:[%s270_s16 + $0x8] sm:$0xff] %v142_v7  ;;  %151 = vst [vmem:[%s270_s16 + $0x10] sm:$0xff] %v143_v8  ;;  %v145_v16 = vmax.f32 %v133_v11, %v135_v13  ;;  %v146_v17 = vmax.f32 %v134_v14, %v136_v15  ;;  %v137_v18 = vld [vmem:[%s116_s13 + $0x60] sm:$0xff]  ;;  %v139_v19 = vld [vmem:[%s116_s13 + $0x70] sm:$0xff] }
  0x13   : > { %v138_v20 = vld [vmem:[%s116_s13 + $0x68] sm:$0xff]  ;;  %152 = vst [vmem:[%s270_s16 + $0x18] sm:$0xff] %v144_v12  ;;  %v147_v21 = vmax.f32 %v137_v18, %v139_v19  ;;  %v140_v22 = vld [vmem:[%s116_s13 + $0x78] sm:$0xff] }
  0x14   : > { %153 = vst [vmem:[%s270_s16 + $0x20] sm:$0xff] %v145_v16  ;;  %154 = vst [vmem:[%s270_s16 + $0x28] sm:$0xff] %v146_v17  ;;  %v148_v23 = vmax.f32 %v138_v20, %v140_v22 }
  0x15   : > { %155 = vst [vmem:[%s270_s16 + $0x30] sm:$0xff] %v147_v21 }
  0x16   : > { %156 = vst [vmem:[%s270_s16 + $0x38] sm:$0xff] %v148_v23 }
  0x17 PF: > { %s11_s6 = sadd.s32 1, %s244_s6  }
  0x18   : > { %p8_p4 = scmp.ge.s32.totalorder %s11_s6, 4  }
  0x1a   :  { %10 = sbr.rel (!%p8_p4) target bundleno = 1 (0x1), region = 54 }

// kernel: contraction_block_forward.8
= control target key start
LH: loop header
LB: loop body
LE: loop exit
PB: predicated region body
PF: predicated region fallthrough
CT: control target
= control target key end

     0   :  { %s440_s6 = smov 0   ;;  %s724_s0 = inlined_call_operand.vmem [shape: f32[512,32], index: 0, kind: input, shape index: {}]   ;;  %s725_s1 = inlined_call_operand.vmem [shape: f32[512,16], index: 1, kind: output, shape index: {}]  }
   0x1 LB: > { %s401_s7 = sadd.s32 4294967295, %s427_s6   ;;  %p405_p0 = scmp.ge.s32.totalorder %s427_s6, 1  ;;  %s427_s6 = sphi %s440_s6, %s11_s6  }
   0x2   : > { %p88_p1 = scmp.lt.s32.totalorder %s427_s6, 3 }
   0x4   : > { %p89_p2 = pnand %p405_p0, %p88_p1 }
   0x5   : > { %s406_s8 = sshll.u32 (!%p89_p2), %s401_s7, 5  ;;  %s429_s13 = smov (!%p89_p2), 112  }
   0x6   : > { %92 = sbr.rel (%p89_p2) target bundleno = 193 (0xc1), region = 24  ;;  %p109_p3 = scmp.lt.s32.totalorder (!%p89_p2), %s406_s8, 63 }
   0xb   : > { %s727_s8 = smov (!%p109_p3, %s406_s8), 63  ;;  %vm312_vm0 = vcmask 130048  }
   0xc   : > { %s407_s9 = sshll.u32 %s727_s8, 3 }
   0xd   : > { %s456_s12 = scalar_lea.vmem %s724_s0, %s407_s9  ;;  %s623_s16 = scalar_lea.vmem %s725_s1, %s407_s9 }
   0xe   : > { %v459_v0 = vld [vmem:[%s456_s12 + $0x10] sm:$0xff]  ;;  %v462_v1 = vld [vmem:[%s456_s12] sm:$0xff]  ;;  %v469_v2 = vld [vmem:[%s456_s12 + $0x18] sm:$0xff] }
   0xf   : > { %188 = vrot.lane.b32.xlu1 %v459_v0, %s429_s13  ;;  %184 = vrot.lane.b32.xlu0 %v462_v1, %s429_s13  ;;  %v472_v3 = vld [vmem:[%s456_s12 + $0x8] sm:$0xff]  ;;  %v482_v5 = vld [vmem:[%s456_s12 + $0x20] sm:$0xff] }
  0x10   : > { %v479_v4 = vld [vmem:[%s456_s12 + $0x28] sm:$0xff]  ;;  %v489_v6 = vld [vmem:[%s456_s12 + $0x38] sm:$0xff]  ;;  %v492_v7 = vld [vmem:[%s456_s12 + $0x30] sm:$0xff] }
  0x11   : > { %v499_v8 = vld [vmem:[%s456_s12 + $0x48] sm:$0xff]  ;;  %v502_v9 = vld [vmem:[%s456_s12 + $0x40] sm:$0xff]  ;;  %v509_v10 = vld [vmem:[%s456_s12 + $0x58] sm:$0xff] }
  0x12   : > { %v512_v11 = vld [vmem:[%s456_s12 + $0x50] sm:$0xff]  ;;  %v519_v12 = vld [vmem:[%s456_s12 + $0x68] sm:$0xff]  ;;  %v522_v13 = vld [vmem:[%s456_s12 + $0x60] sm:$0xff] }
  0x13   : > { %190 = vrot.lane.b32.xlu1 %v469_v2, %s429_s13  ;;  %186 = vrot.lane.b32.xlu0 %v472_v3, %s429_s13  ;;  %v529_v14 = vld [vmem:[%s456_s12 + $0x78] sm:$0xff]  ;;  %v532_v15 = vld [vmem:[%s456_s12 + $0x70] sm:$0xff] }
  0x14   : > { %v539_v16 = vld [vmem:[%s456_s12 + $0x88] sm:$0xff]  ;;  %v542_v17 = vld [vmem:[%s456_s12 + $0x80] sm:$0xff]  ;;  %v549_v18 = vld [vmem:[%s456_s12 + $0x98] sm:$0xff] }
  0x15   : > { %v552_v19 = vld [vmem:[%s456_s12 + $0x90] sm:$0xff]  ;;  %v559_v20 = vld [vmem:[%s456_s12 + $0xa8] sm:$0xff]  ;;  %v562_v21 = vld [vmem:[%s456_s12 + $0xa0] sm:$0xff] }
  0x16   : > { %v569_v22 = vld [vmem:[%s456_s12 + $0xb8] sm:$0xff]  ;;  %v572_v23 = vld [vmem:[%s456_s12 + $0xb0] sm:$0xff]  ;;  %v579_v24 = vld [vmem:[%s456_s12 + $0xc8] sm:$0xff] }
  0x17   : > { %194 = vrot.lane.b32.xlu1 %v479_v4, %s429_s13  ;;  %192 = vrot.lane.b32.xlu0 %v482_v5, %s429_s13  ;;  %v582_v25 = vld [vmem:[%s456_s12 + $0xc0] sm:$0xff]  ;;  %v589_v26 = vld [vmem:[%s456_s12 + $0xd8] sm:$0xff] }
  0x18   : > { %v592_v27 = vld [vmem:[%s456_s12 + $0xd0] sm:$0xff]  ;;  %v599_v28 = vld [vmem:[%s456_s12 + $0xe8] sm:$0xff]  ;;  %v602_v29 = vld [vmem:[%s456_s12 + $0xe0] sm:$0xff] }
  0x19   : > { %v609_v30 = vld [vmem:[%s456_s12 + $0xf8] sm:$0xff]  ;;  %v612_v31 = vld [vmem:[%s456_s12 + $0xf0] sm:$0xff] }
  0x1b   : > { %198 = vrot.lane.b32.xlu1 %v489_v6, %s429_s13  ;;  %196 = vrot.lane.b32.xlu0 %v492_v7, %s429_s13 }
  0x1f   : > { %202 = vrot.lane.b32.xlu1 %v499_v8, %s429_s13  ;;  %200 = vrot.lane.b32.xlu0 %v502_v9, %s429_s13 }
  0x23   : > { %206 = vrot.lane.b32.xlu1 %v509_v10, %s429_s13  ;;  %204 = vrot.lane.b32.xlu0 %v512_v11, %s429_s13 }
  0x27   : > { %210 = vrot.lane.b32.xlu1 %v519_v12, %s429_s13  ;;  %208 = vrot.lane.b32.xlu0 %v522_v13, %s429_s13 }
  0x2b   : > { %214 = vrot.lane.b32.xlu1 %v529_v14, %s429_s13  ;;  %212 = vrot.lane.b32.xlu0 %v532_v15, %s429_s13 }
  0x2f   : > { %218 = vrot.lane.b32.xlu1 %v539_v16, %s429_s13  ;;  %216 = vrot.lane.b32.xlu0 %v542_v17, %s429_s13 }
  0x33   : > { %222 = vrot.lane.b32.xlu1 %v549_v18, %s429_s13  ;;  %220 = vrot.lane.b32.xlu0 %v552_v19, %s429_s13 }
  0x37   : > { %226 = vrot.lane.b32.xlu1 %v559_v20, %s429_s13  ;;  %224 = vrot.lane.b32.xlu0 %v562_v21, %s429_s13 }
  0x3b   : > { %230 = vrot.lane.b32.xlu1 %v569_v22, %s429_s13  ;;  %228 = vrot.lane.b32.xlu0 %v572_v23, %s429_s13 }
  0x3f   : > { %234 = vrot.lane.b32.xlu1 %v579_v24, %s429_s13  ;;  %232 = vrot.lane.b32.xlu0 %v582_v25, %s429_s13 }
  0x43   : > { %238 = vrot.lane.b32.xlu1 %v589_v26, %s429_s13  ;;  %236 = vrot.lane.b32.xlu0 %v592_v27, %s429_s13 }
  0x47   : > { %242 = vrot.lane.b32.xlu1 %v599_v28, %s429_s13  ;;  %240 = vrot.lane.b32.xlu0 %v602_v29, %s429_s13 }
  0x4b   : > { %246 = vrot.lane.b32.xlu1 %v609_v30, %s429_s13  ;;  %244 = vrot.lane.b32.xlu0 %v612_v31, %s429_s13 }
  0x81   : > { %v189_v32 = vpop.permute.xlu1 %188  ;;  %v185_v33 = vpop.permute.xlu0 %184 }
  0x82   : > { %v282_v34 = vmax.f32 %v459_v0, %v189_v32  ;;  %v280_v35 = vmax.f32 %v462_v1, %v185_v33 }
  0x84   : > { %315 = vst.msk [vmem:[%s623_s16 + $0x10] sm:$0xff] %vm312_vm0, %v282_v34  ;;  %313 = vst.msk [vmem:[%s623_s16] sm:$0xff] %vm312_vm0, %v280_v35 }
  0x85   : > { %v191_v36 = vpop.permute.xlu1 %190  ;;  %v187_v37 = vpop.permute.xlu0 %186 }
  0x86   : > { %v283_v38 = vmax.f32 %v469_v2, %v191_v36  ;;  %v281_v39 = vmax.f32 %v472_v3, %v187_v37 }
  0x88   : > { %316 = vst.msk [vmem:[%s623_s16 + $0x18] sm:$0xff] %vm312_vm0, %v283_v38  ;;  %314 = vst.msk [vmem:[%s623_s16 + $0x8] sm:$0xff] %vm312_vm0, %v281_v39 }
  0x89   : > { %v195_v40 = vpop.permute.xlu1 %194  ;;  %v193_v41 = vpop.permute.xlu0 %192 }
  0x8a   : > { %v285_v42 = vmax.f32 %v479_v4, %v195_v40  ;;  %v284_v43 = vmax.f32 %v482_v5, %v193_v41 }
  0x8c   : > { %318 = vst.msk [vmem:[%s623_s16 + $0x28] sm:$0xff] %vm312_vm0, %v285_v42  ;;  %317 = vst.msk [vmem:[%s623_s16 + $0x20] sm:$0xff] %vm312_vm0, %v284_v43 }
  0x8d   : > { %v199_v44 = vpop.permute.xlu1 %198  ;;  %v197_v45 = vpop.permute.xlu0 %196 }
  0x8e   : > { %v287_v46 = vmax.f32 %v489_v6, %v199_v44  ;;  %v286_v47 = vmax.f32 %v492_v7, %v197_v45 }
  0x90   : > { %320 = vst.msk [vmem:[%s623_s16 + $0x38] sm:$0xff] %vm312_vm0, %v287_v46  ;;  %319 = vst.msk [vmem:[%s623_s16 + $0x30] sm:$0xff] %vm312_vm0, %v286_v47 }
  0x91   : > { %v203_v48 = vpop.permute.xlu1 %202  ;;  %v201_v49 = vpop.permute.xlu0 %200 }
  0x92   : > { %v289_v50 = vmax.f32 %v499_v8, %v203_v48  ;;  %v288_v51 = vmax.f32 %v502_v9, %v201_v49 }
  0x94   : > { %322 = vst.msk [vmem:[%s623_s16 + $0x48] sm:$0xff] %vm312_vm0, %v289_v50  ;;  %321 = vst.msk [vmem:[%s623_s16 + $0x40] sm:$0xff] %vm312_vm0, %v288_v51 }
  0x95   : > { %v207_v52 = vpop.permute.xlu1 %206  ;;  %v205_v53 = vpop.permute.xlu0 %204 }
  0x96   : > { %v291_v54 = vmax.f32 %v509_v10, %v207_v52  ;;  %v290_v55 = vmax.f32 %v512_v11, %v205_v53 }
  0x98   : > { %324 = vst.msk [vmem:[%s623_s16 + $0x58] sm:$0xff] %vm312_vm0, %v291_v54  ;;  %323 = vst.msk [vmem:[%s623_s16 + $0x50] sm:$0xff] %vm312_vm0, %v290_v55 }
  0x99   : > { %v211_v56 = vpop.permute.xlu1 %210  ;;  %v209_v57 = vpop.permute.xlu0 %208 }
  0x9a   : > { %v293_v58 = vmax.f32 %v519_v12, %v211_v56  ;;  %v292_v59 = vmax.f32 %v522_v13, %v209_v57 }
  0x9c   : > { %326 = vst.msk [vmem:[%s623_s16 + $0x68] sm:$0xff] %vm312_vm0, %v293_v58  ;;  %325 = vst.msk [vmem:[%s623_s16 + $0x60] sm:$0xff] %vm312_vm0, %v292_v59 }
  0x9d   : > { %v215_v60 = vpop.permute.xlu1 %214  ;;  %v213_v61 = vpop.permute.xlu0 %212 }
  0x9e   : > { %v295_v62 = vmax.f32 %v529_v14, %v215_v60  ;;  %v294_v63 = vmax.f32 %v532_v15, %v213_v61 }
  0xa0   : > { %328 = vst.msk [vmem:[%s623_s16 + $0x78] sm:$0xff] %vm312_vm0, %v295_v62  ;;  %327 = vst.msk [vmem:[%s623_s16 + $0x70] sm:$0xff] %vm312_vm0, %v294_v63 }
  0xa1   : > { %v219_v0 = vpop.permute.xlu1 %218  ;;  %v217_v1 = vpop.permute.xlu0 %216 }
  0xa2   : > { %v297_v2 = vmax.f32 %v539_v16, %v219_v0  ;;  %v296_v3 = vmax.f32 %v542_v17, %v217_v1 }
  0xa4   : > { %330 = vst.msk [vmem:[%s623_s16 + $0x88] sm:$0xff] %vm312_vm0, %v297_v2  ;;  %329 = vst.msk [vmem:[%s623_s16 + $0x80] sm:$0xff] %vm312_vm0, %v296_v3 }
  0xa5   : > { %v223_v4 = vpop.permute.xlu1 %222  ;;  %v221_v5 = vpop.permute.xlu0 %220 }
  0xa6   : > { %v299_v6 = vmax.f32 %v549_v18, %v223_v4  ;;  %v298_v7 = vmax.f32 %v552_v19, %v221_v5 }
  0xa8   : > { %332 = vst.msk [vmem:[%s623_s16 + $0x98] sm:$0xff] %vm312_vm0, %v299_v6  ;;  %331 = vst.msk [vmem:[%s623_s16 + $0x90] sm:$0xff] %vm312_vm0, %v298_v7 }
  0xa9   : > { %v227_v8 = vpop.permute.xlu1 %226  ;;  %v225_v9 = vpop.permute.xlu0 %224 }
  0xaa   : > { %v301_v10 = vmax.f32 %v559_v20, %v227_v8  ;;  %v300_v11 = vmax.f32 %v562_v21, %v225_v9 }
  0xac   : > { %334 = vst.msk [vmem:[%s623_s16 + $0xa8] sm:$0xff] %vm312_vm0, %v301_v10  ;;  %333 = vst.msk [vmem:[%s623_s16 + $0xa0] sm:$0xff] %vm312_vm0, %v300_v11 }
  0xad   : > { %v231_v12 = vpop.permute.xlu1 %230  ;;  %v229_v13 = vpop.permute.xlu0 %228 }
  0xae   : > { %v303_v14 = vmax.f32 %v569_v22, %v231_v12  ;;  %v302_v15 = vmax.f32 %v572_v23, %v229_v13 }
  0xb0   : > { %336 = vst.msk [vmem:[%s623_s16 + $0xb8] sm:$0xff] %vm312_vm0, %v303_v14  ;;  %335 = vst.msk [vmem:[%s623_s16 + $0xb0] sm:$0xff] %vm312_vm0, %v302_v15 }
  0xb1   : > { %v235_v16 = vpop.permute.xlu1 %234  ;;  %v233_v17 = vpop.permute.xlu0 %232 }
  0xb2   : > { %v305_v18 = vmax.f32 %v579_v24, %v235_v16  ;;  %v304_v19 = vmax.f32 %v582_v25, %v233_v17 }
  0xb4   : > { %338 = vst.msk [vmem:[%s623_s16 + $0xc8] sm:$0xff] %vm312_vm0, %v305_v18  ;;  %337 = vst.msk [vmem:[%s623_s16 + $0xc0] sm:$0xff] %vm312_vm0, %v304_v19 }
  0xb5   : > { %v239_v20 = vpop.permute.xlu1 %238  ;;  %v237_v21 = vpop.permute.xlu0 %236 }
  0xb6   : > { %v307_v22 = vmax.f32 %v589_v26, %v239_v20  ;;  %v306_v23 = vmax.f32 %v592_v27, %v237_v21 }
  0xb8   : > { %340 = vst.msk [vmem:[%s623_s16 + $0xd8] sm:$0xff] %vm312_vm0, %v307_v22  ;;  %339 = vst.msk [vmem:[%s623_s16 + $0xd0] sm:$0xff] %vm312_vm0, %v306_v23 }
  0xb9   : > { %v243_v32 = vpop.permute.xlu1 %242  ;;  %v241_v24 = vpop.permute.xlu0 %240 }
  0xba   : > { %v309_v25 = vmax.f32 %v599_v28, %v243_v32  ;;  %v308_v33 = vmax.f32 %v602_v29, %v241_v24 }
  0xbc   : > { %342 = vst.msk [vmem:[%s623_s16 + $0xe8] sm:$0xff] %vm312_vm0, %v309_v25  ;;  %341 = vst.msk [vmem:[%s623_s16 + $0xe0] sm:$0xff] %vm312_vm0, %v308_v33 }
  0xbd   : > { %v247_v34 = vpop.permute.xlu1 %246  ;;  %v245_v35 = vpop.permute.xlu0 %244 }
  0xbe   : > { %v311_v26 = vmax.f32 %v609_v30, %v247_v34  ;;  %v310_v27 = vmax.f32 %v612_v31, %v245_v35 }
  0xc0   : > { %344 = vst.msk [vmem:[%s623_s16 + $0xf8] sm:$0xff] %vm312_vm0, %v311_v26  ;;  %343 = vst.msk [vmem:[%s623_s16 + $0xf0] sm:$0xff] %vm312_vm0, %v310_v27 }
  0xc1 PF: > { %s11_s6 = sadd.s32 1, %s427_s6  }
  0xc2   : > { %p8_p4 = scmp.ge.s32.totalorder %s11_s6, 4  }
  0xc4   :  { %10 = sbr.rel (!%p8_p4) target bundleno = 1 (0x1), region = 54 }

// kernel: contraction_block_forward.9
= control target key start
LH: loop header
LB: loop body
LE: loop exit
PB: predicated region body
PF: predicated region fallthrough
CT: control target
= control target key end

     0   :  { %s1495_s6 = smov 0   ;;  %s2547_s0 = inlined_call_operand.vmem [shape: f32[4096,2], index: 0, kind: input, shape index: {}]   ;;  %s2548_s1 = inlined_call_operand.vmem [shape: f32[4096,1], index: 1, kind: output, shape index: {}]  }
   0x1 LB: > { %s1458_s7 = sadd.s32 4294967295, %s1483_s6   ;;  %p1462_p0 = scmp.ge.s32.totalorder %s1483_s6, 1  ;;  %s1483_s6 = sphi %s1495_s6, %s11_s6  }
   0x2   : > { %p88_p1 = scmp.lt.s32.totalorder %s1483_s6, 3 }
   0x4   : > { %p89_p2 = pnand %p1462_p0, %p88_p1 }
   0x5   : > { %s1463_s8 = sshll.u32 (!%p89_p2), %s1458_s7, 8 }
   0x6   : > { %92 = sbr.rel (%p89_p2) target bundleno = 663 (0x297), region = 24  ;;  %p109_p3 = scmp.lt.s32.totalorder (!%p89_p2), %s1463_s8, 511 }
   0xb   : > { %s2550_s8 = smov (!%p109_p3, %s1463_s8), 511  ;;  %vm376_vm0 = vcmask 15360   ;;  %vm1145_vm1 = vcmask 7168  }
   0xc   : > { %s1464_s9 = sshll.u32 %s2550_s8, 3 }
   0xd   : > { %s1511_s12 = scalar_lea.vmem %s2547_s0, %s1464_s9  ;;  %s1660_s15 = scalar_lea.vmem %s2548_s1, %s1464_s9 }
   0xe   : > { %v122_v0 = vld [vmem:[%s1511_s12 + $0x10] sm:$0xff]  ;;  %v120_v1 = vld [vmem:[%s1511_s12] sm:$0xff]  ;;  %v123_v2 = vld [vmem:[%s1511_s12 + $0x18] sm:$0xff] }
   0xf   : > { %v383_v3 = vsel %vm376_vm0, %v122_v0, -inf  ;;  %v377_v4 = vsel %vm376_vm0, %v120_v1, -inf  ;;  %v121_v5 = vld [vmem:[%s1511_s12 + $0x8] sm:$0xff]  ;;  %v386_v6 = vsel %vm376_vm0, %v123_v2, -inf  ;;  %v124_v9 = vld [vmem:[%s1511_s12 + $0x20] sm:$0xff]  ;;  %v127_v12 = vld [vmem:[%s1511_s12 + $0x38] sm:$0xff] }
  0x10   : > { %384 = vmax.xlane.f32.xlu1 %v383_v3  ;;  %378 = vmax.xlane.f32.xlu0 %v377_v4  ;;  %v380_v7 = vsel %vm376_vm0, %v121_v5, -inf  ;;  %v125_v8 = vld [vmem:[%s1511_s12 + $0x28] sm:$0xff]  ;;  %v389_v11 = vsel %vm376_vm0, %v124_v9, -inf  ;;  %v126_v13 = vld [vmem:[%s1511_s12 + $0x30] sm:$0xff]  ;;  %v398_v14 = vsel %vm376_vm0, %v127_v12, -inf  ;;  %v128_v17 = vld [vmem:[%s1511_s12 + $0x40] sm:$0xff] }
  0x11   : > { %v392_v10 = vsel %vm376_vm0, %v125_v8, -inf  ;;  %v395_v15 = vsel %vm376_vm0, %v126_v13, -inf  ;;  %v129_v16 = vld [vmem:[%s1511_s12 + $0x48] sm:$0xff]  ;;  %v401_v19 = vsel %vm376_vm0, %v128_v17, -inf  ;;  %v131_v20 = vld [vmem:[%s1511_s12 + $0x58] sm:$0xff]  ;;  %v130_v21 = vld [vmem:[%s1511_s12 + $0x50] sm:$0xff] }
  0x12   : > { %v404_v18 = vsel %vm376_vm0, %v129_v16, -inf  ;;  %v410_v22 = vsel %vm376_vm0, %v131_v20, -inf  ;;  %v407_v23 = vsel %vm376_vm0, %v130_v21, -inf  ;;  %v133_v24 = vld [vmem:[%s1511_s12 + $0x68] sm:$0xff]  ;;  %v132_v25 = vld [vmem:[%s1511_s12 + $0x60] sm:$0xff]  ;;  %v135_v28 = vld [vmem:[%s1511_s12 + $0x78] sm:$0xff] }
  0x13   : > { %v416_v26 = vsel %vm376_vm0, %v133_v24, -inf  ;;  %v413_v27 = vsel %vm376_vm0, %v132_v25, -inf  ;;  %v134_v29 = vld [vmem:[%s1511_s12 + $0x70] sm:$0xff]  ;;  %v422_v30 = vsel %vm376_vm0, %v135_v28, -inf  ;;  %v137_v32 = vld [vmem:[%s1511_s12 + $0x88] sm:$0xff]  ;;  %v136_v33 = vld [vmem:[%s1511_s12 + $0x80] sm:$0xff] }
  0x14   : > { %387 = vmax.xlane.f32.xlu1 %v386_v6  ;;  %381 = vmax.xlane.f32.xlu0 %v380_v7  ;;  %v419_v31 = vsel %vm376_vm0, %v134_v29, -inf  ;;  %v428_v34 = vsel %vm376_vm0, %v137_v32, -inf  ;;  %v425_v35 = vsel %vm376_vm0, %v136_v33, -inf  ;;  %v139_v36 = vld [vmem:[%s1511_s12 + $0x98] sm:$0xff]  ;;  %v138_v37 = vld [vmem:[%s1511_s12 + $0x90] sm:$0xff]  ;;  %v141_v40 = vld [vmem:[%s1511_s12 + $0xa8] sm:$0xff] }
  0x15   : > { %v434_v38 = vsel %vm376_vm0, %v139_v36, -inf  ;;  %v431_v39 = vsel %vm376_vm0, %v138_v37, -inf  ;;  %v140_v41 = vld [vmem:[%s1511_s12 + $0xa0] sm:$0xff]  ;;  %v440_v42 = vsel %vm376_vm0, %v141_v40, -inf  ;;  %v143_v44 = vld [vmem:[%s1511_s12 + $0xb8] sm:$0xff]  ;;  %v142_v45 = vld [vmem:[%s1511_s12 + $0xb0] sm:$0xff] }
  0x16   : > { %v437_v43 = vsel %vm376_vm0, %v140_v41, -inf  ;;  %v446_v46 = vsel %vm376_vm0, %v143_v44, -inf  ;;  %v443_v47 = vsel %vm376_vm0, %v142_v45, -inf  ;;  %v145_v48 = vld [vmem:[%s1511_s12 + $0xc8] sm:$0xff]  ;;  %v144_v49 = vld [vmem:[%s1511_s12 + $0xc0] sm:$0xff]  ;;  %v147_v52 = vld [vmem:[%s1511_s12 + $0xd8] sm:$0xff] }
  0x17   : > { %v452_v50 = vsel %vm376_vm0, %v145_v48, -inf  ;;  %v449_v51 = vsel %vm376_vm0, %v144_v49, -inf  ;;  %v146_v53 = vld [vmem:[%s1511_s12 + $0xd0] sm:$0xff]  ;;  %v458_v54 = vsel %vm376_vm0, %v147_v52, -inf  ;;  %v149_v56 = vld [vmem:[%s1511_s12 + $0xe8] sm:$0xff]  ;;  %v148_v57 = vld [vmem:[%s1511_s12 + $0xe0] sm:$0xff] }
  0x18   : > { %393 = vmax.xlane.f32.xlu1 %v392_v10  ;;  %390 = vmax.xlane.f32.xlu0 %v389_v11  ;;  %v455_v55 = vsel %vm376_vm0, %v146_v53, -inf  ;;  %v464_v58 = vsel %vm376_vm0, %v149_v56, -inf  ;;  %v461_v59 = vsel %vm376_vm0, %v148_v57, -inf  ;;  %v151_v60 = vld [vmem:[%s1511_s12 + $0xf8] sm:$0xff]  ;;  %v150_v61 = vld [vmem:[%s1511_s12 + $0xf0] sm:$0xff]  ;;  %v153_v0 = vld [vmem:[%s1511_s12 + $0x108] sm:$0xff] }
  0x19   : > { %v470_v62 = vsel %vm376_vm0, %v151_v60, -inf  ;;  %v467_v63 = vsel %vm376_vm0, %v150_v61, -inf  ;;  %v152_v1 = vld [vmem:[%s1511_s12 + $0x100] sm:$0xff]  ;;  %v476_v2 = vsel %vm376_vm0, %v153_v0, -inf  ;;  %v155_v4 = vld [vmem:[%s1511_s12 + $0x118] sm:$0xff]  ;;  %v154_v5 = vld [vmem:[%s1511_s12 + $0x110] sm:$0xff] }
  0x1a   : > { %v473_v3 = vsel %vm376_vm0, %v152_v1, -inf  ;;  %v482_v6 = vsel %vm376_vm0, %v155_v4, -inf  ;;  %v479_v7 = vsel %vm376_vm0, %v154_v5, -inf  ;;  %v157_v8 = vld [vmem:[%s1511_s12 + $0x128] sm:$0xff]  ;;  %v156_v9 = vld [vmem:[%s1511_s12 + $0x120] sm:$0xff]  ;;  %v159_v12 = vld [vmem:[%s1511_s12 + $0x138] sm:$0xff] }
  0x1b   : > { %v488_v10 = vsel %vm376_vm0, %v157_v8, -inf  ;;  %v485_v11 = vsel %vm376_vm0, %v156_v9, -inf  ;;  %v158_v13 = vld [vmem:[%s1511_s12 + $0x130] sm:$0xff]  ;;  %v161_v16 = vld [vmem:[%s1511_s12 + $0x148] sm:$0xff]  ;;  %v160_v17 = vld [vmem:[%s1511_s12 + $0x140] sm:$0xff] }
  0x1c   : > { %399 = vmax.xlane.f32.xlu1 %v398_v14  ;;  %396 = vmax.xlane.f32.xlu0 %v395_v15  ;;  %v494_v14 = vsel %vm376_vm0, %v159_v12, -inf  ;;  %v491_v15 = vsel %vm376_vm0, %v158_v13, -inf  ;;  %v163_v20 = vld [vmem:[%s1511_s12 + $0x158] sm:$0xff]  ;;  %v162_v21 = vld [vmem:[%s1511_s12 + $0x150] sm:$0xff]  ;;  %v165_v24 = vld [vmem:[%s1511_s12 + $0x168] sm:$0xff] }
  0x1d   : > { %v164_v25 = vld [vmem:[%s1511_s12 + $0x160] sm:$0xff]  ;;  %v167_v28 = vld [vmem:[%s1511_s12 + $0x178] sm:$0xff]  ;;  %v166_v29 = vld [vmem:[%s1511_s12 + $0x170] sm:$0xff] }
  0x1e   : > { %v169_v32 = vld [vmem:[%s1511_s12 + $0x188] sm:$0xff]  ;;  %v168_v33 = vld [vmem:[%s1511_s12 + $0x180] sm:$0xff]  ;;  %v171_v36 = vld [vmem:[%s1511_s12 + $0x198] sm:$0xff] }
  0x1f   : > { %v170_v37 = vld [vmem:[%s1511_s12 + $0x190] sm:$0xff]  ;;  %v173_v40 = vld [vmem:[%s1511_s12 + $0x1a8] sm:$0xff]  ;;  %v172_v41 = vld [vmem:[%s1511_s12 + $0x1a0] sm:$0xff] }
  0x20   : > { %405 = vmax.xlane.f32.xlu1 %v404_v18  ;;  %402 = vmax.xlane.f32.xlu0 %v401_v19  ;;  %v500_v18 = vsel %vm376_vm0, %v161_v16, -inf  ;;  %v497_v19 = vsel %vm376_vm0, %v160_v17, -inf  ;;  %v175_v44 = vld [vmem:[%s1511_s12 + $0x1b8] sm:$0xff]  ;;  %v174_v45 = vld [vmem:[%s1511_s12 + $0x1b0] sm:$0xff]  ;;  %v177_v48 = vld [vmem:[%s1511_s12 + $0x1c8] sm:$0xff] }
  0x21   : > { %v176_v49 = vld [vmem:[%s1511_s12 + $0x1c0] sm:$0xff]  ;;  %v179_v52 = vld [vmem:[%s1511_s12 + $0x1d8] sm:$0xff]  ;;  %v178_v53 = vld [vmem:[%s1511_s12 + $0x1d0] sm:$0xff] }
  0x22   : > { %v181_v56 = vld [vmem:[%s1511_s12 + $0x1e8] sm:$0xff]  ;;  %v180_v57 = vld [vmem:[%s1511_s12 + $0x1e0] sm:$0xff]  ;;  %v183_v60 = vld [vmem:[%s1511_s12 + $0x1f8] sm:$0xff] }
  0x23   : > { %v182_v61 = vld [vmem:[%s1511_s12 + $0x1f0] sm:$0xff]  ;;  %v185_v0 = vld [vmem:[%s1511_s12 + $0x208] sm:$0xff]  ;;  %v184_v1 = vld [vmem:[%s1511_s12 + $0x200] sm:$0xff] }
  0x24   : > { %411 = vmax.xlane.f32.xlu1 %v410_v22  ;;  %408 = vmax.xlane.f32.xlu0 %v407_v23  ;;  %v506_v22 = vsel %vm376_vm0, %v163_v20, -inf  ;;  %v503_v23 = vsel %vm376_vm0, %v162_v21, -inf  ;;  %v187_v4 = vld [vmem:[%s1511_s12 + $0x218] sm:$0xff]  ;;  %v186_v5 = vld [vmem:[%s1511_s12 + $0x210] sm:$0xff]  ;;  %v189_v8 = vld [vmem:[%s1511_s12 + $0x228] sm:$0xff] }
  0x25   : > { %v188_v9 = vld [vmem:[%s1511_s12 + $0x220] sm:$0xff]  ;;  %v191_v12 = vld [vmem:[%s1511_s12 + $0x238] sm:$0xff]  ;;  %v190_v13 = vld [vmem:[%s1511_s12 + $0x230] sm:$0xff] }
  0x26   : > { %v590_v16 = vsel %vm376_vm0, %v191_v12, -inf  ;;  %v587_v17 = vsel %vm376_vm0, %v190_v13, -inf }
  0x28   : > { %417 = vmax.xlane.f32.xlu1 %v416_v26  ;;  %414 = vmax.xlane.f32.xlu0 %v413_v27  ;;  %v512_v26 = vsel %vm376_vm0, %v165_v24, -inf  ;;  %v509_v27 = vsel %vm376_vm0, %v164_v25, -inf  ;;  %v195_v24 = vld [vmem:[%s1511_s12 + $0x258] sm:$0xff]  ;;  %v194_v25 = vld [vmem:[%s1511_s12 + $0x250] sm:$0xff] }
  0x2c   : > { %423 = vmax.xlane.f32.xlu1 %v422_v30  ;;  %420 = vmax.xlane.f32.xlu0 %v419_v31  ;;  %v518_v30 = vsel %vm376_vm0, %v167_v28, -inf  ;;  %v515_v31 = vsel %vm376_vm0, %v166_v29, -inf  ;;  %v602_v28 = vsel %vm376_vm0, %v195_v24, -inf  ;;  %v599_v29 = vsel %vm376_vm0, %v194_v25, -inf }
  0x30   : > { %429 = vmax.xlane.f32.xlu1 %v428_v34  ;;  %426 = vmax.xlane.f32.xlu0 %v425_v35  ;;  %v524_v34 = vsel %vm376_vm0, %v169_v32, -inf  ;;  %v521_v35 = vsel %vm376_vm0, %v168_v33, -inf }
  0x34   : > { %435 = vmax.xlane.f32.xlu1 %v434_v38  ;;  %432 = vmax.xlane.f32.xlu0 %v431_v39  ;;  %v530_v38 = vsel %vm376_vm0, %v171_v36, -inf  ;;  %v527_v39 = vsel %vm376_vm0, %v170_v37, -inf  ;;  %v199_v36 = vld [vmem:[%s1511_s12 + $0x278] sm:$0xff]  ;;  %v198_v37 = vld [vmem:[%s1511_s12 + $0x270] sm:$0xff] }
  0x38   : > { %441 = vmax.xlane.f32.xlu1 %v440_v42  ;;  %438 = vmax.xlane.f32.xlu0 %v437_v43  ;;  %v536_v42 = vsel %vm376_vm0, %v173_v40, -inf  ;;  %v533_v43 = vsel %vm376_vm0, %v172_v41, -inf  ;;  %v614_v40 = vsel %vm376_vm0, %v199_v36, -inf  ;;  %v611_v41 = vsel %vm376_vm0, %v198_v37, -inf }
  0x3c   : > { %447 = vmax.xlane.f32.xlu1 %v446_v46  ;;  %444 = vmax.xlane.f32.xlu0 %v443_v47  ;;  %v542_v46 = vsel %vm376_vm0, %v175_v44, -inf  ;;  %v539_v47 = vsel %vm376_vm0, %v174_v45, -inf }
  0x40   : > { %453 = vmax.xlane.f32.xlu1 %v452_v50  ;;  %450 = vmax.xlane.f32.xlu0 %v449_v51  ;;  %v548_v50 = vsel %vm376_vm0, %v177_v48, -inf  ;;  %v545_v51 = vsel %vm376_vm0, %v176_v49, -inf  ;;  %v203_v48 = vld [vmem:[%s1511_s12 + $0x298] sm:$0xff]  ;;  %v202_v49 = vld [vmem:[%s1511_s12 + $0x290] sm:$0xff] }
  0x44   : > { %459 = vmax.xlane.f32.xlu1 %v458_v54  ;;  %456 = vmax.xlane.f32.xlu0 %v455_v55  ;;  %v554_v54 = vsel %vm376_vm0, %v179_v52, -inf  ;;  %v551_v55 = vsel %vm376_vm0, %v178_v53, -inf  ;;  %v626_v52 = vsel %vm376_vm0, %v203_v48, -inf  ;;  %v623_v53 = vsel %vm376_vm0, %v202_v49, -inf }
  0x48   : > { %465 = vmax.xlane.f32.xlu1 %v464_v58  ;;  %462 = vmax.xlane.f32.xlu0 %v461_v59  ;;  %v560_v58 = vsel %vm376_vm0, %v181_v56, -inf  ;;  %v557_v59 = vsel %vm376_vm0, %v180_v57, -inf }
  0x4c   : > { %471 = vmax.xlane.f32.xlu1 %v470_v62  ;;  %468 = vmax.xlane.f32.xlu0 %v467_v63  ;;  %v566_v62 = vsel %vm376_vm0, %v183_v60, -inf  ;;  %v563_v63 = vsel %vm376_vm0, %v182_v61, -inf  ;;  %v207_v60 = vld [vmem:[%s1511_s12 + $0x2b8] sm:$0xff]  ;;  %v206_v61 = vld [vmem:[%s1511_s12 + $0x2b0] sm:$0xff] }
  0x50   : > { %477 = vmax.xlane.f32.xlu1 %v476_v2  ;;  %474 = vmax.xlane.f32.xlu0 %v473_v3  ;;  %v572_v2 = vsel %vm376_vm0, %v185_v0, -inf  ;;  %v569_v3 = vsel %vm376_vm0, %v184_v1, -inf  ;;  %v638_v0 = vsel %vm376_vm0, %v207_v60, -inf  ;;  %v635_v1 = vsel %vm376_vm0, %v206_v61, -inf }
  0x54   : > { %483 = vmax.xlane.f32.xlu1 %v482_v6  ;;  %480 = vmax.xlane.f32.xlu0 %v479_v7  ;;  %v578_v6 = vsel %vm376_vm0, %v187_v4, -inf  ;;  %v575_v7 = vsel %vm376_vm0, %v186_v5, -inf }
  0x58   : > { %489 = vmax.xlane.f32.xlu1 %v488_v10  ;;  %486 = vmax.xlane.f32.xlu0 %v485_v11  ;;  %v584_v10 = vsel %vm376_vm0, %v189_v8, -inf  ;;  %v581_v11 = vsel %vm376_vm0, %v188_v9, -inf  ;;  %v211_v8 = vld [vmem:[%s1511_s12 + $0x2d8] sm:$0xff]  ;;  %v210_v9 = vld [vmem:[%s1511_s12 + $0x2d0] sm:$0xff] }
  0x59   : > { %v650_v12 = vsel %vm376_vm0, %v211_v8, -inf  ;;  %v647_v13 = vsel %vm376_vm0, %v210_v9, -inf }
  0x5c   : > { %495 = vmax.xlane.f32.xlu1 %v494_v14  ;;  %492 = vmax.xlane.f32.xlu0 %v491_v15 }
  0x60   : > { %501 = vmax.xlane.f32.xlu1 %v500_v18  ;;  %498 = vmax.xlane.f32.xlu0 %v497_v19  ;;  %v193_v18 = vld [vmem:[%s1511_s12 + $0x248] sm:$0xff]  ;;  %v192_v19 = vld [vmem:[%s1511_s12 + $0x240] sm:$0xff] }
  0x64   : > { %507 = vmax.xlane.f32.xlu1 %v506_v22  ;;  %504 = vmax.xlane.f32.xlu0 %v503_v23  ;;  %v596_v22 = vsel %vm376_vm0, %v193_v18, -inf  ;;  %v593_v23 = vsel %vm376_vm0, %v192_v19, -inf }
  0x68   : > { %513 = vmax.xlane.f32.xlu1 %v512_v26  ;;  %510 = vmax.xlane.f32.xlu0 %v509_v27 }
  0x6c   : > { %519 = vmax.xlane.f32.xlu1 %v518_v30  ;;  %516 = vmax.xlane.f32.xlu0 %v515_v31  ;;  %v197_v30 = vld [vmem:[%s1511_s12 + $0x268] sm:$0xff]  ;;  %v196_v31 = vld [vmem:[%s1511_s12 + $0x260] sm:$0xff] }
  0x70   : > { %525 = vmax.xlane.f32.xlu1 %v524_v34  ;;  %522 = vmax.xlane.f32.xlu0 %v521_v35  ;;  %v608_v34 = vsel %vm376_vm0, %v197_v30, -inf  ;;  %v605_v35 = vsel %vm376_vm0, %v196_v31, -inf }
  0x74   : > { %531 = vmax.xlane.f32.xlu1 %v530_v38  ;;  %528 = vmax.xlane.f32.xlu0 %v527_v39 }
  0x78   : > { %537 = vmax.xlane.f32.xlu1 %v536_v42  ;;  %534 = vmax.xlane.f32.xlu0 %v533_v43  ;;  %v201_v42 = vld [vmem:[%s1511_s12 + $0x288] sm:$0xff]  ;;  %v200_v43 = vld [vmem:[%s1511_s12 + $0x280] sm:$0xff] }
  0x7c   : > { %543 = vmax.xlane.f32.xlu1 %v542_v46  ;;  %540 = vmax.xlane.f32.xlu0 %v539_v47  ;;  %v620_v46 = vsel %vm376_vm0, %v201_v42, -inf  ;;  %v617_v47 = vsel %vm376_vm0, %v200_v43, -inf }
  0x80   : > { %549 = vmax.xlane.f32.xlu1 %v548_v50  ;;  %546 = vmax.xlane.f32.xlu0 %v545_v51 }
  0x84   : > { %555 = vmax.xlane.f32.xlu1 %v554_v54  ;;  %552 = vmax.xlane.f32.xlu0 %v551_v55  ;;  %v205_v54 = vld [vmem:[%s1511_s12 + $0x2a8] sm:$0xff]  ;;  %v204_v55 = vld [vmem:[%s1511_s12 + $0x2a0] sm:$0xff] }
  0x88   : > { %561 = vmax.xlane.f32.xlu1 %v560_v58  ;;  %558 = vmax.xlane.f32.xlu0 %v557_v59  ;;  %v632_v58 = vsel %vm376_vm0, %v205_v54, -inf  ;;  %v629_v59 = vsel %vm376_vm0, %v204_v55, -inf }
  0x8c   : > { %567 = vmax.xlane.f32.xlu1 %v566_v62  ;;  %564 = vmax.xlane.f32.xlu0 %v563_v63 }
  0x90   : > { %573 = vmax.xlane.f32.xlu1 %v572_v2  ;;  %570 = vmax.xlane.f32.xlu0 %v569_v3  ;;  %v209_v2 = vld [vmem:[%s1511_s12 + $0x2c8] sm:$0xff]  ;;  %v208_v3 = vld [vmem:[%s1511_s12 + $0x2c0] sm:$0xff] }
  0x94   : > { %579 = vmax.xlane.f32.xlu1 %v578_v6  ;;  %576 = vmax.xlane.f32.xlu0 %v575_v7  ;;  %v644_v6 = vsel %vm376_vm0, %v209_v2, -inf  ;;  %v641_v7 = vsel %vm376_vm0, %v208_v3, -inf }
  0x98   : > { %585 = vmax.xlane.f32.xlu1 %v584_v10  ;;  %582 = vmax.xlane.f32.xlu0 %v581_v11 }
  0x99   : > { %v385_v14 = vpop.xlane.xlu1 %384  ;;  %v379_v15 = vpop.xlane.xlu0 %378 }
  0x9a   : > { %1148 = vst.msk [vmem:[%s1660_s15 + $0x10] sm:$0xff] %vm1145_vm1, %v385_v14  ;;  %1146 = vst.msk [vmem:[%s1660_s15] sm:$0xff] %vm1145_vm1, %v379_v15  ;;  %v213_v14 = vld [vmem:[%s1511_s12 + $0x2e8] sm:$0xff]  ;;  %v212_v15 = vld [vmem:[%s1511_s12 + $0x2e0] sm:$0xff] }
  0x9b   : > { %v656_v18 = vsel %vm376_vm0, %v213_v14, -inf  ;;  %v653_v19 = vsel %vm376_vm0, %v212_v15, -inf }
  0x9c   : > { %591 = vmax.xlane.f32.xlu1 %v590_v16  ;;  %588 = vmax.xlane.f32.xlu0 %v587_v17 }
  0x9d   : > { %v388_v20 = vpop.xlane.xlu1 %387  ;;  %v382_v21 = vpop.xlane.xlu0 %381 }
  0x9e   : > { %1149 = vst.msk [vmem:[%s1660_s15 + $0x18] sm:$0xff] %vm1145_vm1, %v388_v20  ;;  %1147 = vst.msk [vmem:[%s1660_s15 + $0x8] sm:$0xff] %vm1145_vm1, %v382_v21  ;;  %v215_v20 = vld [vmem:[%s1511_s12 + $0x2f8] sm:$0xff]  ;;  %v214_v21 = vld [vmem:[%s1511_s12 + $0x2f0] sm:$0xff] }
  0x9f   : > { %v662_v24 = vsel %vm376_vm0, %v215_v20, -inf  ;;  %v659_v25 = vsel %vm376_vm0, %v214_v21, -inf }
  0xa0   : > { %597 = vmax.xlane.f32.xlu1 %v596_v22  ;;  %594 = vmax.xlane.f32.xlu0 %v593_v23 }
  0xa1   : > { %v394_v26 = vpop.xlane.xlu1 %393  ;;  %v391_v27 = vpop.xlane.xlu0 %390 }
  0xa2   : > { %1151 = vst.msk [vmem:[%s1660_s15 + $0x28] sm:$0xff] %vm1145_vm1, %v394_v26  ;;  %1150 = vst.msk [vmem:[%s1660_s15 + $0x20] sm:$0xff] %vm1145_vm1, %v391_v27  ;;  %v217_v26 = vld [vmem:[%s1511_s12 + $0x308] sm:$0xff]  ;;  %v216_v27 = vld [vmem:[%s1511_s12 + $0x300] sm:$0xff] }
  0xa3   : > { %v668_v30 = vsel %vm376_vm0, %v217_v26, -inf  ;;  %v665_v31 = vsel %vm376_vm0, %v216_v27, -inf }
  0xa4   : > { %603 = vmax.xlane.f32.xlu1 %v602_v28  ;;  %600 = vmax.xlane.f32.xlu0 %v599_v29 }
  0xa5   : > { %v400_v32 = vpop.xlane.xlu1 %399  ;;  %v397_v33 = vpop.xlane.xlu0 %396 }
  0xa6   : > { %1153 = vst.msk [vmem:[%s1660_s15 + $0x38] sm:$0xff] %vm1145_vm1, %v400_v32  ;;  %1152 = vst.msk [vmem:[%s1660_s15 + $0x30] sm:$0xff] %vm1145_vm1, %v397_v33  ;;  %v219_v32 = vld [vmem:[%s1511_s12 + $0x318] sm:$0xff]  ;;  %v218_v33 = vld [vmem:[%s1511_s12 + $0x310] sm:$0xff] }
  0xa7   : > { %v674_v36 = vsel %vm376_vm0, %v219_v32, -inf  ;;  %v671_v37 = vsel %vm376_vm0, %v218_v33, -inf }
  0xa8   : > { %609 = vmax.xlane.f32.xlu1 %v608_v34  ;;  %606 = vmax.xlane.f32.xlu0 %v605_v35 }
  0xa9   : > { %v406_v38 = vpop.xlane.xlu1 %405  ;;  %v403_v39 = vpop.xlane.xlu0 %402 }
  0xaa   : > { %1155 = vst.msk [vmem:[%s1660_s15 + $0x48] sm:$0xff] %vm1145_vm1, %v406_v38  ;;  %1154 = vst.msk [vmem:[%s1660_s15 + $0x40] sm:$0xff] %vm1145_vm1, %v403_v39  ;;  %v221_v38 = vld [vmem:[%s1511_s12 + $0x328] sm:$0xff]  ;;  %v220_v39 = vld [vmem:[%s1511_s12 + $0x320] sm:$0xff] }
  0xab   : > { %v680_v42 = vsel %vm376_vm0, %v221_v38, -inf  ;;  %v677_v43 = vsel %vm376_vm0, %v220_v39, -inf }
  0xac   : > { %615 = vmax.xlane.f32.xlu1 %v614_v40  ;;  %612 = vmax.xlane.f32.xlu0 %v611_v41 }
  0xad   : > { %v412_v44 = vpop.xlane.xlu1 %411  ;;  %v409_v45 = vpop.xlane.xlu0 %408 }
  0xae   : > { %1157 = vst.msk [vmem:[%s1660_s15 + $0x58] sm:$0xff] %vm1145_vm1, %v412_v44  ;;  %1156 = vst.msk [vmem:[%s1660_s15 + $0x50] sm:$0xff] %vm1145_vm1, %v409_v45  ;;  %v223_v44 = vld [vmem:[%s1511_s12 + $0x338] sm:$0xff]  ;;  %v222_v45 = vld [vmem:[%s1511_s12 + $0x330] sm:$0xff] }
  0xaf   : > { %v686_v48 = vsel %vm376_vm0, %v223_v44, -inf  ;;  %v683_v49 = vsel %vm376_vm0, %v222_v45, -inf }
  0xb0   : > { %621 = vmax.xlane.f32.xlu1 %v620_v46  ;;  %618 = vmax.xlane.f32.xlu0 %v617_v47 }
  0xb1   : > { %v418_v50 = vpop.xlane.xlu1 %417  ;;  %v415_v51 = vpop.xlane.xlu0 %414 }
  0xb2   : > { %1159 = vst.msk [vmem:[%s1660_s15 + $0x68] sm:$0xff] %vm1145_vm1, %v418_v50  ;;  %1158 = vst.msk [vmem:[%s1660_s15 + $0x60] sm:$0xff] %vm1145_vm1, %v415_v51  ;;  %v225_v50 = vld [vmem:[%s1511_s12 + $0x348] sm:$0xff]  ;;  %v224_v51 = vld [vmem:[%s1511_s12 + $0x340] sm:$0xff] }
  0xb3   : > { %v692_v54 = vsel %vm376_vm0, %v225_v50, -inf  ;;  %v689_v55 = vsel %vm376_vm0, %v224_v51, -inf }
  0xb4   : > { %627 = vmax.xlane.f32.xlu1 %v626_v52  ;;  %624 = vmax.xlane.f32.xlu0 %v623_v53 }
  0xb5   : > { %v424_v56 = vpop.xlane.xlu1 %423  ;;  %v421_v57 = vpop.xlane.xlu0 %420 }
  0xb6   : > { %1161 = vst.msk [vmem:[%s1660_s15 + $0x78] sm:$0xff] %vm1145_vm1, %v424_v56  ;;  %1160 = vst.msk [vmem:[%s1660_s15 + $0x70] sm:$0xff] %vm1145_vm1, %v421_v57  ;;  %v227_v56 = vld [vmem:[%s1511_s12 + $0x358] sm:$0xff]  ;;  %v226_v57 = vld [vmem:[%s1511_s12 + $0x350] sm:$0xff] }
  0xb7   : > { %v698_v60 = vsel %vm376_vm0, %v227_v56, -inf  ;;  %v695_v61 = vsel %vm376_vm0, %v226_v57, -inf }
  0xb8   : > { %633 = vmax.xlane.f32.xlu1 %v632_v58  ;;  %630 = vmax.xlane.f32.xlu0 %v629_v59 }
  0xb9   : > { %v430_v62 = vpop.xlane.xlu1 %429  ;;  %v427_v63 = vpop.xlane.xlu0 %426 }
  0xba   : > { %1163 = vst.msk [vmem:[%s1660_s15 + $0x88] sm:$0xff] %vm1145_vm1, %v430_v62  ;;  %1162 = vst.msk [vmem:[%s1660_s15 + $0x80] sm:$0xff] %vm1145_vm1, %v427_v63  ;;  %v229_v62 = vld [vmem:[%s1511_s12 + $0x368] sm:$0xff]  ;;  %v228_v63 = vld [vmem:[%s1511_s12 + $0x360] sm:$0xff] }
  0xbb   : > { %v704_v2 = vsel %vm376_vm0, %v229_v62, -inf  ;;  %v701_v3 = vsel %vm376_vm0, %v228_v63, -inf }
  0xbc   : > { %639 = vmax.xlane.f32.xlu1 %v638_v0  ;;  %636 = vmax.xlane.f32.xlu0 %v635_v1 }
  0xbd   : > { %v436_v4 = vpop.xlane.xlu1 %435  ;;  %v433_v5 = vpop.xlane.xlu0 %432 }
  0xbe   : > { %1165 = vst.msk [vmem:[%s1660_s15 + $0x98] sm:$0xff] %vm1145_vm1, %v436_v4  ;;  %1164 = vst.msk [vmem:[%s1660_s15 + $0x90] sm:$0xff] %vm1145_vm1, %v433_v5  ;;  %v231_v4 = vld [vmem:[%s1511_s12 + $0x378] sm:$0xff]  ;;  %v230_v5 = vld [vmem:[%s1511_s12 + $0x370] sm:$0xff] }
  0xbf   : > { %v710_v8 = vsel %vm376_vm0, %v231_v4, -inf  ;;  %v707_v9 = vsel %vm376_vm0, %v230_v5, -inf }
  0xc0   : > { %645 = vmax.xlane.f32.xlu1 %v644_v6  ;;  %642 = vmax.xlane.f32.xlu0 %v641_v7 }
  0xc1   : > { %v442_v10 = vpop.xlane.xlu1 %441  ;;  %v439_v11 = vpop.xlane.xlu0 %438 }
  0xc2   : > { %1167 = vst.msk [vmem:[%s1660_s15 + $0xa8] sm:$0xff] %vm1145_vm1, %v442_v10  ;;  %1166 = vst.msk [vmem:[%s1660_s15 + $0xa0] sm:$0xff] %vm1145_vm1, %v439_v11  ;;  %v233_v10 = vld [vmem:[%s1511_s12 + $0x388] sm:$0xff]  ;;  %v232_v11 = vld [vmem:[%s1511_s12 + $0x380] sm:$0xff] }
  0xc3   : > { %v716_v14 = vsel %vm376_vm0, %v233_v10, -inf  ;;  %v713_v15 = vsel %vm376_vm0, %v232_v11, -inf }
  0xc4   : > { %651 = vmax.xlane.f32.xlu1 %v650_v12  ;;  %648 = vmax.xlane.f32.xlu0 %v647_v13 }
  0xc5   : > { %v448_v16 = vpop.xlane.xlu1 %447  ;;  %v445_v17 = vpop.xlane.xlu0 %444 }
  0xc6   : > { %1169 = vst.msk [vmem:[%s1660_s15 + $0xb8] sm:$0xff] %vm1145_vm1, %v448_v16  ;;  %1168 = vst.msk [vmem:[%s1660_s15 + $0xb0] sm:$0xff] %vm1145_vm1, %v445_v17  ;;  %v235_v16 = vld [vmem:[%s1511_s12 + $0x398] sm:$0xff]  ;;  %v234_v17 = vld [vmem:[%s1511_s12 + $0x390] sm:$0xff] }
  0xc7   : > { %v722_v20 = vsel %vm376_vm0, %v235_v16, -inf  ;;  %v719_v21 = vsel %vm376_vm0, %v234_v17, -inf }
  0xc8   : > { %657 = vmax.xlane.f32.xlu1 %v656_v18  ;;  %654 = vmax.xlane.f32.xlu0 %v653_v19 }
  0xc9   : > { %v454_v22 = vpop.xlane.xlu1 %453  ;;  %v451_v23 = vpop.xlane.xlu0 %450 }
  0xca   : > { %1171 = vst.msk [vmem:[%s1660_s15 + $0xc8] sm:$0xff] %vm1145_vm1, %v454_v22  ;;  %1170 = vst.msk [vmem:[%s1660_s15 + $0xc0] sm:$0xff] %vm1145_vm1, %v451_v23  ;;  %v237_v22 = vld [vmem:[%s1511_s12 + $0x3a8] sm:$0xff]  ;;  %v236_v23 = vld [vmem:[%s1511_s12 + $0x3a0] sm:$0xff] }
  0xcb   : > { %v728_v26 = vsel %vm376_vm0, %v237_v22, -inf  ;;  %v725_v27 = vsel %vm376_vm0, %v236_v23, -inf }
  0xcc   : > { %663 = vmax.xlane.f32.xlu1 %v662_v24  ;;  %660 = vmax.xlane.f32.xlu0 %v659_v25 }
  0xcd   : > { %v460_v28 = vpop.xlane.xlu1 %459  ;;  %v457_v29 = vpop.xlane.xlu0 %456 }
  0xce   : > { %1173 = vst.msk [vmem:[%s1660_s15 + $0xd8] sm:$0xff] %vm1145_vm1, %v460_v28  ;;  %1172 = vst.msk [vmem:[%s1660_s15 + $0xd0] sm:$0xff] %vm1145_vm1, %v457_v29  ;;  %v239_v28 = vld [vmem:[%s1511_s12 + $0x3b8] sm:$0xff]  ;;  %v238_v29 = vld [vmem:[%s1511_s12 + $0x3b0] sm:$0xff] }
  0xcf   : > { %v734_v32 = vsel %vm376_vm0, %v239_v28, -inf  ;;  %v731_v33 = vsel %vm376_vm0, %v238_v29, -inf }
  0xd0   : > { %669 = vmax.xlane.f32.xlu1 %v668_v30  ;;  %666 = vmax.xlane.f32.xlu0 %v665_v31 }
  0xd1   : > { %v466_v34 = vpop.xlane.xlu1 %465  ;;  %v463_v35 = vpop.xlane.xlu0 %462 }
  0xd2   : > { %1175 = vst.msk [vmem:[%s1660_s15 + $0xe8] sm:$0xff] %vm1145_vm1, %v466_v34  ;;  %1174 = vst.msk [vmem:[%s1660_s15 + $0xe0] sm:$0xff] %vm1145_vm1, %v463_v35  ;;  %v241_v34 = vld [vmem:[%s1511_s12 + $0x3c8] sm:$0xff]  ;;  %v240_v35 = vld [vmem:[%s1511_s12 + $0x3c0] sm:$0xff] }
  0xd3   : > { %v740_v38 = vsel %vm376_vm0, %v241_v34, -inf  ;;  %v737_v39 = vsel %vm376_vm0, %v240_v35, -inf }
  0xd4   : > { %675 = vmax.xlane.f32.xlu1 %v674_v36  ;;  %672 = vmax.xlane.f32.xlu0 %v671_v37 }
  0xd5   : > { %v472_v40 = vpop.xlane.xlu1 %471  ;;  %v469_v41 = vpop.xlane.xlu0 %468 }
  0xd6   : > { %1177 = vst.msk [vmem:[%s1660_s15 + $0xf8] sm:$0xff] %vm1145_vm1, %v472_v40  ;;  %1176 = vst.msk [vmem:[%s1660_s15 + $0xf0] sm:$0xff] %vm1145_vm1, %v469_v41  ;;  %v243_v40 = vld [vmem:[%s1511_s12 + $0x3d8] sm:$0xff]  ;;  %v242_v41 = vld [vmem:[%s1511_s12 + $0x3d0] sm:$0xff] }
  0xd7   : > { %v746_v44 = vsel %vm376_vm0, %v243_v40, -inf  ;;  %v743_v45 = vsel %vm376_vm0, %v242_v41, -inf }
  0xd8   : > { %681 = vmax.xlane.f32.xlu1 %v680_v42  ;;  %678 = vmax.xlane.f32.xlu0 %v677_v43 }
  0xd9   : > { %v478_v46 = vpop.xlane.xlu1 %477  ;;  %v475_v47 = vpop.xlane.xlu0 %474 }
  0xda   : > { %1179 = vst.msk [vmem:[%s1660_s15 + $0x108] sm:$0xff] %vm1145_vm1, %v478_v46  ;;  %1178 = vst.msk [vmem:[%s1660_s15 + $0x100] sm:$0xff] %vm1145_vm1, %v475_v47  ;;  %v245_v46 = vld [vmem:[%s1511_s12 + $0x3e8] sm:$0xff]  ;;  %v244_v47 = vld [vmem:[%s1511_s12 + $0x3e0] sm:$0xff] }
  0xdb   : > { %v752_v50 = vsel %vm376_vm0, %v245_v46, -inf  ;;  %v749_v51 = vsel %vm376_vm0, %v244_v47, -inf }
  0xdc   : > { %687 = vmax.xlane.f32.xlu1 %v686_v48  ;;  %684 = vmax.xlane.f32.xlu0 %v683_v49 }
  0xdd   : > { %v484_v52 = vpop.xlane.xlu1 %483  ;;  %v481_v53 = vpop.xlane.xlu0 %480 }
  0xde   : > { %1181 = vst.msk [vmem:[%s1660_s15 + $0x118] sm:$0xff] %vm1145_vm1, %v484_v52  ;;  %1180 = vst.msk [vmem:[%s1660_s15 + $0x110] sm:$0xff] %vm1145_vm1, %v481_v53  ;;  %v247_v52 = vld [vmem:[%s1511_s12 + $0x3f8] sm:$0xff]  ;;  %v246_v53 = vld [vmem:[%s1511_s12 + $0x3f0] sm:$0xff] }
  0xdf   : > { %v758_v56 = vsel %vm376_vm0, %v247_v52, -inf  ;;  %v755_v57 = vsel %vm376_vm0, %v246_v53, -inf }
  0xe0   : > { %693 = vmax.xlane.f32.xlu1 %v692_v54  ;;  %690 = vmax.xlane.f32.xlu0 %v689_v55 }
  0xe1   : > { %v490_v58 = vpop.xlane.xlu1 %489  ;;  %v487_v59 = vpop.xlane.xlu0 %486 }
  0xe2   : > { %1183 = vst.msk [vmem:[%s1660_s15 + $0x128] sm:$0xff] %vm1145_vm1, %v490_v58  ;;  %1182 = vst.msk [vmem:[%s1660_s15 + $0x120] sm:$0xff] %vm1145_vm1, %v487_v59  ;;  %v249_v58 = vld [vmem:[%s1511_s12 + $0x408] sm:$0xff]  ;;  %v248_v59 = vld [vmem:[%s1511_s12 + $0x400] sm:$0xff] }
  0xe3   : > { %v764_v62 = vsel %vm376_vm0, %v249_v58, -inf  ;;  %v761_v63 = vsel %vm376_vm0, %v248_v59, -inf }
  0xe4   : > { %699 = vmax.xlane.f32.xlu1 %v698_v60  ;;  %696 = vmax.xlane.f32.xlu0 %v695_v61 }
  0xe5   : > { %v496_v0 = vpop.xlane.xlu1 %495  ;;  %v493_v1 = vpop.xlane.xlu0 %492 }
  0xe6   : > { %1185 = vst.msk [vmem:[%s1660_s15 + $0x138] sm:$0xff] %vm1145_vm1, %v496_v0  ;;  %1184 = vst.msk [vmem:[%s1660_s15 + $0x130] sm:$0xff] %vm1145_vm1, %v493_v1  ;;  %v251_v0 = vld [vmem:[%s1511_s12 + $0x418] sm:$0xff]  ;;  %v250_v1 = vld [vmem:[%s1511_s12 + $0x410] sm:$0xff] }
  0xe7   : > { %v770_v4 = vsel %vm376_vm0, %v251_v0, -inf  ;;  %v767_v5 = vsel %vm376_vm0, %v250_v1, -inf }
  0xe8   : > { %705 = vmax.xlane.f32.xlu1 %v704_v2  ;;  %702 = vmax.xlane.f32.xlu0 %v701_v3 }
  0xe9   : > { %v502_v6 = vpop.xlane.xlu1 %501  ;;  %v499_v7 = vpop.xlane.xlu0 %498 }
  0xea   : > { %1187 = vst.msk [vmem:[%s1660_s15 + $0x148] sm:$0xff] %vm1145_vm1, %v502_v6  ;;  %1186 = vst.msk [vmem:[%s1660_s15 + $0x140] sm:$0xff] %vm1145_vm1, %v499_v7  ;;  %v253_v6 = vld [vmem:[%s1511_s12 + $0x428] sm:$0xff]  ;;  %v252_v7 = vld [vmem:[%s1511_s12 + $0x420] sm:$0xff] }
  0xeb   : > { %v776_v10 = vsel %vm376_vm0, %v253_v6, -inf  ;;  %v773_v11 = vsel %vm376_vm0, %v252_v7, -inf }
  0xec   : > { %711 = vmax.xlane.f32.xlu1 %v710_v8  ;;  %708 = vmax.xlane.f32.xlu0 %v707_v9 }
  0xed   : > { %v508_v12 = vpop.xlane.xlu1 %507  ;;  %v505_v13 = vpop.xlane.xlu0 %504 }
  0xee   : > { %1189 = vst.msk [vmem:[%s1660_s15 + $0x158] sm:$0xff] %vm1145_vm1, %v508_v12  ;;  %1188 = vst.msk [vmem:[%s1660_s15 + $0x150] sm:$0xff] %vm1145_vm1, %v505_v13  ;;  %v255_v12 = vld [vmem:[%s1511_s12 + $0x438] sm:$0xff]  ;;  %v254_v13 = vld [vmem:[%s1511_s12 + $0x430] sm:$0xff] }
  0xef   : > { %v782_v16 = vsel %vm376_vm0, %v255_v12, -inf  ;;  %v779_v17 = vsel %vm376_vm0, %v254_v13, -inf }
  0xf0   : > { %717 = vmax.xlane.f32.xlu1 %v716_v14  ;;  %714 = vmax.xlane.f32.xlu0 %v713_v15 }
  0xf1   : > { %v514_v18 = vpop.xlane.xlu1 %513  ;;  %v511_v19 = vpop.xlane.xlu0 %510 }
  0xf2   : > { %1191 = vst.msk [vmem:[%s1660_s15 + $0x168] sm:$0xff] %vm1145_vm1, %v514_v18  ;;  %1190 = vst.msk [vmem:[%s1660_s15 + $0x160] sm:$0xff] %vm1145_vm1, %v511_v19  ;;  %v257_v18 = vld [vmem:[%s1511_s12 + $0x448] sm:$0xff]  ;;  %v256_v19 = vld [vmem:[%s1511_s12 + $0x440] sm:$0xff] }
  0xf3   : > { %v788_v22 = vsel %vm376_vm0, %v257_v18, -inf  ;;  %v785_v23 = vsel %vm376_vm0, %v256_v19, -inf }
  0xf4   : > { %723 = vmax.xlane.f32.xlu1 %v722_v20  ;;  %720 = vmax.xlane.f32.xlu0 %v719_v21 }
  0xf5   : > { %v520_v24 = vpop.xlane.xlu1 %519  ;;  %v517_v25 = vpop.xlane.xlu0 %516 }
  0xf6   : > { %1193 = vst.msk [vmem:[%s1660_s15 + $0x178] sm:$0xff] %vm1145_vm1, %v520_v24  ;;  %1192 = vst.msk [vmem:[%s1660_s15 + $0x170] sm:$0xff] %vm1145_vm1, %v517_v25  ;;  %v259_v24 = vld [vmem:[%s1511_s12 + $0x458] sm:$0xff]  ;;  %v258_v25 = vld [vmem:[%s1511_s12 + $0x450] sm:$0xff] }
  0xf7   : > { %v794_v28 = vsel %vm376_vm0, %v259_v24, -inf  ;;  %v791_v29 = vsel %vm376_vm0, %v258_v25, -inf }
  0xf8   : > { %729 = vmax.xlane.f32.xlu1 %v728_v26  ;;  %726 = vmax.xlane.f32.xlu0 %v725_v27 }
  0xf9   : > { %v526_v30 = vpop.xlane.xlu1 %525  ;;  %v523_v31 = vpop.xlane.xlu0 %522 }
  0xfa   : > { %1195 = vst.msk [vmem:[%s1660_s15 + $0x188] sm:$0xff] %vm1145_vm1, %v526_v30  ;;  %1194 = vst.msk [vmem:[%s1660_s15 + $0x180] sm:$0xff] %vm1145_vm1, %v523_v31  ;;  %v261_v30 = vld [vmem:[%s1511_s12 + $0x468] sm:$0xff]  ;;  %v260_v31 = vld [vmem:[%s1511_s12 + $0x460] sm:$0xff] }
  0xfb   : > { %v800_v34 = vsel %vm376_vm0, %v261_v30, -inf  ;;  %v797_v35 = vsel %vm376_vm0, %v260_v31, -inf }
  0xfc   : > { %735 = vmax.xlane.f32.xlu1 %v734_v32  ;;  %732 = vmax.xlane.f32.xlu0 %v731_v33 }
  0xfd   : > { %v532_v36 = vpop.xlane.xlu1 %531  ;;  %v529_v37 = vpop.xlane.xlu0 %528 }
  0xfe   : > { %1197 = vst.msk [vmem:[%s1660_s15 + $0x198] sm:$0xff] %vm1145_vm1, %v532_v36  ;;  %1196 = vst.msk [vmem:[%s1660_s15 + $0x190] sm:$0xff] %vm1145_vm1, %v529_v37  ;;  %v263_v36 = vld [vmem:[%s1511_s12 + $0x478] sm:$0xff]  ;;  %v262_v37 = vld [vmem:[%s1511_s12 + $0x470] sm:$0xff] }
  0xff   : > { %v806_v40 = vsel %vm376_vm0, %v263_v36, -inf  ;;  %v803_v41 = vsel %vm376_vm0, %v262_v37, -inf }
 0x100   : > { %741 = vmax.xlane.f32.xlu1 %v740_v38  ;;  %738 = vmax.xlane.f32.xlu0 %v737_v39 }
 0x101   : > { %v538_v42 = vpop.xlane.xlu1 %537  ;;  %v535_v43 = vpop.xlane.xlu0 %534 }
 0x102   : > { %1199 = vst.msk [vmem:[%s1660_s15 + $0x1a8] sm:$0xff] %vm1145_vm1, %v538_v42  ;;  %1198 = vst.msk [vmem:[%s1660_s15 + $0x1a0] sm:$0xff] %vm1145_vm1, %v535_v43  ;;  %v265_v42 = vld [vmem:[%s1511_s12 + $0x488] sm:$0xff]  ;;  %v264_v43 = vld [vmem:[%s1511_s12 + $0x480] sm:$0xff] }
 0x103   : > { %v812_v46 = vsel %vm376_vm0, %v265_v42, -inf  ;;  %v809_v47 = vsel %vm376_vm0, %v264_v43, -inf }
 0x104   : > { %747 = vmax.xlane.f32.xlu1 %v746_v44  ;;  %744 = vmax.xlane.f32.xlu0 %v743_v45 }
 0x105   : > { %v544_v48 = vpop.xlane.xlu1 %543  ;;  %v541_v49 = vpop.xlane.xlu0 %540 }
 0x106   : > { %1201 = vst.msk [vmem:[%s1660_s15 + $0x1b8] sm:$0xff] %vm1145_vm1, %v544_v48  ;;  %1200 = vst.msk [vmem:[%s1660_s15 + $0x1b0] sm:$0xff] %vm1145_vm1, %v541_v49  ;;  %v267_v48 = vld [vmem:[%s1511_s12 + $0x498] sm:$0xff]  ;;  %v266_v49 = vld [vmem:[%s1511_s12 + $0x490] sm:$0xff] }
 0x107   : > { %v818_v52 = vsel %vm376_vm0, %v267_v48, -inf  ;;  %v815_v53 = vsel %vm376_vm0, %v266_v49, -inf }
 0x108   : > { %753 = vmax.xlane.f32.xlu1 %v752_v50  ;;  %750 = vmax.xlane.f32.xlu0 %v749_v51 }
 0x109   : > { %v550_v54 = vpop.xlane.xlu1 %549  ;;  %v547_v55 = vpop.xlane.xlu0 %546 }
 0x10a   : > { %1203 = vst.msk [vmem:[%s1660_s15 + $0x1c8] sm:$0xff] %vm1145_vm1, %v550_v54  ;;  %1202 = vst.msk [vmem:[%s1660_s15 + $0x1c0] sm:$0xff] %vm1145_vm1, %v547_v55  ;;  %v269_v54 = vld [vmem:[%s1511_s12 + $0x4a8] sm:$0xff]  ;;  %v268_v55 = vld [vmem:[%s1511_s12 + $0x4a0] sm:$0xff] }
 0x10b   : > { %v824_v58 = vsel %vm376_vm0, %v269_v54, -inf  ;;  %v821_v59 = vsel %vm376_vm0, %v268_v55, -inf }
 0x10c   : > { %759 = vmax.xlane.f32.xlu1 %v758_v56  ;;  %756 = vmax.xlane.f32.xlu0 %v755_v57 }
 0x10d   : > { %v556_v60 = vpop.xlane.xlu1 %555  ;;  %v553_v61 = vpop.xlane.xlu0 %552 }
 0x10e   : > { %1205 = vst.msk [vmem:[%s1660_s15 + $0x1d8] sm:$0xff] %vm1145_vm1, %v556_v60  ;;  %1204 = vst.msk [vmem:[%s1660_s15 + $0x1d0] sm:$0xff] %vm1145_vm1, %v553_v61  ;;  %v271_v60 = vld [vmem:[%s1511_s12 + $0x4b8] sm:$0xff]  ;;  %v270_v61 = vld [vmem:[%s1511_s12 + $0x4b0] sm:$0xff] }
 0x10f   : > { %v830_v0 = vsel %vm376_vm0, %v271_v60, -inf  ;;  %v827_v1 = vsel %vm376_vm0, %v270_v61, -inf }
 0x110   : > { %765 = vmax.xlane.f32.xlu1 %v764_v62  ;;  %762 = vmax.xlane.f32.xlu0 %v761_v63 }
 0x111   : > { %v562_v2 = vpop.xlane.xlu1 %561  ;;  %v559_v3 = vpop.xlane.xlu0 %558 }
 0x112   : > { %1207 = vst.msk [vmem:[%s1660_s15 + $0x1e8] sm:$0xff] %vm1145_vm1, %v562_v2  ;;  %1206 = vst.msk [vmem:[%s1660_s15 + $0x1e0] sm:$0xff] %vm1145_vm1, %v559_v3  ;;  %v273_v2 = vld [vmem:[%s1511_s12 + $0x4c8] sm:$0xff]  ;;  %v272_v3 = vld [vmem:[%s1511_s12 + $0x4c0] sm:$0xff] }
 0x113   : > { %v836_v6 = vsel %vm376_vm0, %v273_v2, -inf  ;;  %v833_v7 = vsel %vm376_vm0, %v272_v3, -inf }
 0x114   : > { %771 = vmax.xlane.f32.xlu1 %v770_v4  ;;  %768 = vmax.xlane.f32.xlu0 %v767_v5 }
 0x115   : > { %v568_v8 = vpop.xlane.xlu1 %567  ;;  %v565_v9 = vpop.xlane.xlu0 %564 }
 0x116   : > { %1209 = vst.msk [vmem:[%s1660_s15 + $0x1f8] sm:$0xff] %vm1145_vm1, %v568_v8  ;;  %1208 = vst.msk [vmem:[%s1660_s15 + $0x1f0] sm:$0xff] %vm1145_vm1, %v565_v9  ;;  %v275_v8 = vld [vmem:[%s1511_s12 + $0x4d8] sm:$0xff]  ;;  %v274_v9 = vld [vmem:[%s1511_s12 + $0x4d0] sm:$0xff] }
 0x117   : > { %v842_v12 = vsel %vm376_vm0, %v275_v8, -inf  ;;  %v839_v13 = vsel %vm376_vm0, %v274_v9, -inf }
 0x118   : > { %777 = vmax.xlane.f32.xlu1 %v776_v10  ;;  %774 = vmax.xlane.f32.xlu0 %v773_v11 }
 0x119   : > { %v574_v14 = vpop.xlane.xlu1 %573  ;;  %v571_v15 = vpop.xlane.xlu0 %570 }
 0x11a   : > { %1211 = vst.msk [vmem:[%s1660_s15 + $0x208] sm:$0xff] %vm1145_vm1, %v574_v14  ;;  %1210 = vst.msk [vmem:[%s1660_s15 + $0x200] sm:$0xff] %vm1145_vm1, %v571_v15  ;;  %v277_v14 = vld [vmem:[%s1511_s12 + $0x4e8] sm:$0xff]  ;;  %v276_v15 = vld [vmem:[%s1511_s12 + $0x4e0] sm:$0xff] }
 0x11b   : > { %v848_v18 = vsel %vm376_vm0, %v277_v14, -inf  ;;  %v845_v19 = vsel %vm376_vm0, %v276_v15, -inf }
 0x11c   : > { %783 = vmax.xlane.f32.xlu1 %v782_v16  ;;  %780 = vmax.xlane.f32.xlu0 %v779_v17 }
 0x11d   : > { %v580_v20 = vpop.xlane.xlu1 %579  ;;  %v577_v21 = vpop.xlane.xlu0 %576 }
 0x11e   : > { %1213 = vst.msk [vmem:[%s1660_s15 + $0x218] sm:$0xff] %vm1145_vm1, %v580_v20  ;;  %1212 = vst.msk [vmem:[%s1660_s15 + $0x210] sm:$0xff] %vm1145_vm1, %v577_v21  ;;  %v279_v20 = vld [vmem:[%s1511_s12 + $0x4f8] sm:$0xff]  ;;  %v278_v21 = vld [vmem:[%s1511_s12 + $0x4f0] sm:$0xff] }
 0x11f   : > { %v854_v24 = vsel %vm376_vm0, %v279_v20, -inf  ;;  %v851_v25 = vsel %vm376_vm0, %v278_v21, -inf }
 0x120   : > { %789 = vmax.xlane.f32.xlu1 %v788_v22  ;;  %786 = vmax.xlane.f32.xlu0 %v785_v23 }
 0x121   : > { %v586_v26 = vpop.xlane.xlu1 %585  ;;  %v583_v27 = vpop.xlane.xlu0 %582 }
 0x122   : > { %1215 = vst.msk [vmem:[%s1660_s15 + $0x228] sm:$0xff] %vm1145_vm1, %v586_v26  ;;  %1214 = vst.msk [vmem:[%s1660_s15 + $0x220] sm:$0xff] %vm1145_vm1, %v583_v27  ;;  %v281_v26 = vld [vmem:[%s1511_s12 + $0x508] sm:$0xff]  ;;  %v280_v27 = vld [vmem:[%s1511_s12 + $0x500] sm:$0xff] }
 0x123   : > { %v860_v30 = vsel %vm376_vm0, %v281_v26, -inf  ;;  %v857_v31 = vsel %vm376_vm0, %v280_v27, -inf }
 0x124   : > { %795 = vmax.xlane.f32.xlu1 %v794_v28  ;;  %792 = vmax.xlane.f32.xlu0 %v791_v29 }
 0x125   : > { %v592_v32 = vpop.xlane.xlu1 %591  ;;  %v589_v33 = vpop.xlane.xlu0 %588 }
 0x126   : > { %1217 = vst.msk [vmem:[%s1660_s15 + $0x238] sm:$0xff] %vm1145_vm1, %v592_v32  ;;  %1216 = vst.msk [vmem:[%s1660_s15 + $0x230] sm:$0xff] %vm1145_vm1, %v589_v33  ;;  %v283_v32 = vld [vmem:[%s1511_s12 + $0x518] sm:$0xff]  ;;  %v282_v33 = vld [vmem:[%s1511_s12 + $0x510] sm:$0xff] }
 0x127   : > { %v866_v36 = vsel %vm376_vm0, %v283_v32, -inf  ;;  %v863_v37 = vsel %vm376_vm0, %v282_v33, -inf }
 0x128   : > { %801 = vmax.xlane.f32.xlu1 %v800_v34  ;;  %798 = vmax.xlane.f32.xlu0 %v797_v35 }
 0x129   : > { %v598_v38 = vpop.xlane.xlu1 %597  ;;  %v595_v39 = vpop.xlane.xlu0 %594 }
 0x12a   : > { %1219 = vst.msk [vmem:[%s1660_s15 + $0x248] sm:$0xff] %vm1145_vm1, %v598_v38  ;;  %1218 = vst.msk [vmem:[%s1660_s15 + $0x240] sm:$0xff] %vm1145_vm1, %v595_v39  ;;  %v285_v38 = vld [vmem:[%s1511_s12 + $0x528] sm:$0xff]  ;;  %v284_v39 = vld [vmem:[%s1511_s12 + $0x520] sm:$0xff] }
 0x12b   : > { %v872_v42 = vsel %vm376_vm0, %v285_v38, -inf  ;;  %v869_v43 = vsel %vm376_vm0, %v284_v39, -inf }
 0x12c   : > { %807 = vmax.xlane.f32.xlu1 %v806_v40  ;;  %804 = vmax.xlane.f32.xlu0 %v803_v41 }
 0x12d   : > { %v604_v44 = vpop.xlane.xlu1 %603  ;;  %v601_v45 = vpop.xlane.xlu0 %600 }
 0x12e   : > { %1221 = vst.msk [vmem:[%s1660_s15 + $0x258] sm:$0xff] %vm1145_vm1, %v604_v44  ;;  %1220 = vst.msk [vmem:[%s1660_s15 + $0x250] sm:$0xff] %vm1145_vm1, %v601_v45  ;;  %v287_v44 = vld [vmem:[%s1511_s12 + $0x538] sm:$0xff]  ;;  %v286_v45 = vld [vmem:[%s1511_s12 + $0x530] sm:$0xff] }
 0x12f   : > { %v878_v48 = vsel %vm376_vm0, %v287_v44, -inf  ;;  %v875_v49 = vsel %vm376_vm0, %v286_v45, -inf }
 0x130   : > { %813 = vmax.xlane.f32.xlu1 %v812_v46  ;;  %810 = vmax.xlane.f32.xlu0 %v809_v47 }
 0x131   : > { %v610_v50 = vpop.xlane.xlu1 %609  ;;  %v607_v51 = vpop.xlane.xlu0 %606 }
 0x132   : > { %1223 = vst.msk [vmem:[%s1660_s15 + $0x268] sm:$0xff] %vm1145_vm1, %v610_v50  ;;  %1222 = vst.msk [vmem:[%s1660_s15 + $0x260] sm:$0xff] %vm1145_vm1, %v607_v51  ;;  %v289_v50 = vld [vmem:[%s1511_s12 + $0x548] sm:$0xff]  ;;  %v288_v51 = vld [vmem:[%s1511_s12 + $0x540] sm:$0xff] }
 0x133   : > { %v884_v54 = vsel %vm376_vm0, %v289_v50, -inf  ;;  %v881_v55 = vsel %vm376_vm0, %v288_v51, -inf }
 0x134   : > { %819 = vmax.xlane.f32.xlu1 %v818_v52  ;;  %816 = vmax.xlane.f32.xlu0 %v815_v53 }
 0x135   : > { %v616_v56 = vpop.xlane.xlu1 %615  ;;  %v613_v57 = vpop.xlane.xlu0 %612 }
 0x136   : > { %1225 = vst.msk [vmem:[%s1660_s15 + $0x278] sm:$0xff] %vm1145_vm1, %v616_v56  ;;  %1224 = vst.msk [vmem:[%s1660_s15 + $0x270] sm:$0xff] %vm1145_vm1, %v613_v57  ;;  %v291_v56 = vld [vmem:[%s1511_s12 + $0x558] sm:$0xff]  ;;  %v290_v57 = vld [vmem:[%s1511_s12 + $0x550] sm:$0xff] }
 0x137   : > { %v890_v60 = vsel %vm376_vm0, %v291_v56, -inf  ;;  %v887_v61 = vsel %vm376_vm0, %v290_v57, -inf }
 0x138   : > { %825 = vmax.xlane.f32.xlu1 %v824_v58  ;;  %822 = vmax.xlane.f32.xlu0 %v821_v59 }
 0x139   : > { %v622_v62 = vpop.xlane.xlu1 %621  ;;  %v619_v63 = vpop.xlane.xlu0 %618 }
 0x13a   : > { %1227 = vst.msk [vmem:[%s1660_s15 + $0x288] sm:$0xff] %vm1145_vm1, %v622_v62  ;;  %1226 = vst.msk [vmem:[%s1660_s15 + $0x280] sm:$0xff] %vm1145_vm1, %v619_v63  ;;  %v293_v62 = vld [vmem:[%s1511_s12 + $0x568] sm:$0xff]  ;;  %v292_v63 = vld [vmem:[%s1511_s12 + $0x560] sm:$0xff] }
 0x13b   : > { %v896_v2 = vsel %vm376_vm0, %v293_v62, -inf  ;;  %v893_v3 = vsel %vm376_vm0, %v292_v63, -inf }
 0x13c   : > { %831 = vmax.xlane.f32.xlu1 %v830_v0  ;;  %828 = vmax.xlane.f32.xlu0 %v827_v1 }
 0x13d   : > { %v628_v4 = vpop.xlane.xlu1 %627  ;;  %v625_v5 = vpop.xlane.xlu0 %624 }
 0x13e   : > { %1229 = vst.msk [vmem:[%s1660_s15 + $0x298] sm:$0xff] %vm1145_vm1, %v628_v4  ;;  %1228 = vst.msk [vmem:[%s1660_s15 + $0x290] sm:$0xff] %vm1145_vm1, %v625_v5  ;;  %v295_v4 = vld [vmem:[%s1511_s12 + $0x578] sm:$0xff]  ;;  %v294_v5 = vld [vmem:[%s1511_s12 + $0x570] sm:$0xff] }
 0x13f   : > { %v902_v8 = vsel %vm376_vm0, %v295_v4, -inf  ;;  %v899_v9 = vsel %vm376_vm0, %v294_v5, -inf }
 0x140   : > { %837 = vmax.xlane.f32.xlu1 %v836_v6  ;;  %834 = vmax.xlane.f32.xlu0 %v833_v7 }
 0x141   : > { %v634_v10 = vpop.xlane.xlu1 %633  ;;  %v631_v11 = vpop.xlane.xlu0 %630 }
 0x142   : > { %1231 = vst.msk [vmem:[%s1660_s15 + $0x2a8] sm:$0xff] %vm1145_vm1, %v634_v10  ;;  %1230 = vst.msk [vmem:[%s1660_s15 + $0x2a0] sm:$0xff] %vm1145_vm1, %v631_v11  ;;  %v297_v10 = vld [vmem:[%s1511_s12 + $0x588] sm:$0xff]  ;;  %v296_v11 = vld [vmem:[%s1511_s12 + $0x580] sm:$0xff] }
 0x143   : > { %v908_v14 = vsel %vm376_vm0, %v297_v10, -inf  ;;  %v905_v15 = vsel %vm376_vm0, %v296_v11, -inf }
 0x144   : > { %843 = vmax.xlane.f32.xlu1 %v842_v12  ;;  %840 = vmax.xlane.f32.xlu0 %v839_v13 }
 0x145   : > { %v640_v16 = vpop.xlane.xlu1 %639  ;;  %v637_v17 = vpop.xlane.xlu0 %636 }
 0x146   : > { %1233 = vst.msk [vmem:[%s1660_s15 + $0x2b8] sm:$0xff] %vm1145_vm1, %v640_v16  ;;  %1232 = vst.msk [vmem:[%s1660_s15 + $0x2b0] sm:$0xff] %vm1145_vm1, %v637_v17  ;;  %v299_v16 = vld [vmem:[%s1511_s12 + $0x598] sm:$0xff]  ;;  %v298_v17 = vld [vmem:[%s1511_s12 + $0x590] sm:$0xff] }
 0x147   : > { %v914_v20 = vsel %vm376_vm0, %v299_v16, -inf  ;;  %v911_v21 = vsel %vm376_vm0, %v298_v17, -inf }
 0x148   : > { %849 = vmax.xlane.f32.xlu1 %v848_v18  ;;  %846 = vmax.xlane.f32.xlu0 %v845_v19 }
 0x149   : > { %v646_v22 = vpop.xlane.xlu1 %645  ;;  %v643_v23 = vpop.xlane.xlu0 %642 }
 0x14a   : > { %1235 = vst.msk [vmem:[%s1660_s15 + $0x2c8] sm:$0xff] %vm1145_vm1, %v646_v22  ;;  %1234 = vst.msk [vmem:[%s1660_s15 + $0x2c0] sm:$0xff] %vm1145_vm1, %v643_v23  ;;  %v301_v22 = vld [vmem:[%s1511_s12 + $0x5a8] sm:$0xff]  ;;  %v300_v23 = vld [vmem:[%s1511_s12 + $0x5a0] sm:$0xff] }
 0x14b   : > { %v920_v26 = vsel %vm376_vm0, %v301_v22, -inf  ;;  %v917_v27 = vsel %vm376_vm0, %v300_v23, -inf }
 0x14c   : > { %855 = vmax.xlane.f32.xlu1 %v854_v24  ;;  %852 = vmax.xlane.f32.xlu0 %v851_v25 }
 0x14d   : > { %v652_v28 = vpop.xlane.xlu1 %651  ;;  %v649_v29 = vpop.xlane.xlu0 %648 }
 0x14e   : > { %1237 = vst.msk [vmem:[%s1660_s15 + $0x2d8] sm:$0xff] %vm1145_vm1, %v652_v28  ;;  %1236 = vst.msk [vmem:[%s1660_s15 + $0x2d0] sm:$0xff] %vm1145_vm1, %v649_v29  ;;  %v303_v28 = vld [vmem:[%s1511_s12 + $0x5b8] sm:$0xff]  ;;  %v302_v29 = vld [vmem:[%s1511_s12 + $0x5b0] sm:$0xff] }
 0x14f   : > { %v926_v32 = vsel %vm376_vm0, %v303_v28, -inf  ;;  %v923_v33 = vsel %vm376_vm0, %v302_v29, -inf }
 0x150   : > { %861 = vmax.xlane.f32.xlu1 %v860_v30  ;;  %858 = vmax.xlane.f32.xlu0 %v857_v31 }
 0x151   : > { %v658_v34 = vpop.xlane.xlu1 %657  ;;  %v655_v35 = vpop.xlane.xlu0 %654 }
 0x152   : > { %1239 = vst.msk [vmem:[%s1660_s15 + $0x2e8] sm:$0xff] %vm1145_vm1, %v658_v34  ;;  %1238 = vst.msk [vmem:[%s1660_s15 + $0x2e0] sm:$0xff] %vm1145_vm1, %v655_v35  ;;  %v305_v34 = vld [vmem:[%s1511_s12 + $0x5c8] sm:$0xff]  ;;  %v304_v35 = vld [vmem:[%s1511_s12 + $0x5c0] sm:$0xff] }
 0x153   : > { %v932_v38 = vsel %vm376_vm0, %v305_v34, -inf  ;;  %v929_v39 = vsel %vm376_vm0, %v304_v35, -inf }
 0x154   : > { %867 = vmax.xlane.f32.xlu1 %v866_v36  ;;  %864 = vmax.xlane.f32.xlu0 %v863_v37 }
 0x155   : > { %v664_v40 = vpop.xlane.xlu1 %663  ;;  %v661_v41 = vpop.xlane.xlu0 %660 }
 0x156   : > { %1241 = vst.msk [vmem:[%s1660_s15 + $0x2f8] sm:$0xff] %vm1145_vm1, %v664_v40  ;;  %1240 = vst.msk [vmem:[%s1660_s15 + $0x2f0] sm:$0xff] %vm1145_vm1, %v661_v41  ;;  %v307_v40 = vld [vmem:[%s1511_s12 + $0x5d8] sm:$0xff]  ;;  %v306_v41 = vld [vmem:[%s1511_s12 + $0x5d0] sm:$0xff] }
 0x157   : > { %v938_v44 = vsel %vm376_vm0, %v307_v40, -inf  ;;  %v935_v45 = vsel %vm376_vm0, %v306_v41, -inf }
 0x158   : > { %873 = vmax.xlane.f32.xlu1 %v872_v42  ;;  %870 = vmax.xlane.f32.xlu0 %v869_v43 }
 0x159   : > { %v670_v46 = vpop.xlane.xlu1 %669  ;;  %v667_v47 = vpop.xlane.xlu0 %666 }
 0x15a   : > { %1243 = vst.msk [vmem:[%s1660_s15 + $0x308] sm:$0xff] %vm1145_vm1, %v670_v46  ;;  %1242 = vst.msk [vmem:[%s1660_s15 + $0x300] sm:$0xff] %vm1145_vm1, %v667_v47  ;;  %v309_v46 = vld [vmem:[%s1511_s12 + $0x5e8] sm:$0xff]  ;;  %v308_v47 = vld [vmem:[%s1511_s12 + $0x5e0] sm:$0xff] }
 0x15b   : > { %v944_v50 = vsel %vm376_vm0, %v309_v46, -inf  ;;  %v941_v51 = vsel %vm376_vm0, %v308_v47, -inf }
 0x15c   : > { %879 = vmax.xlane.f32.xlu1 %v878_v48  ;;  %876 = vmax.xlane.f32.xlu0 %v875_v49 }
 0x15d   : > { %v676_v52 = vpop.xlane.xlu1 %675  ;;  %v673_v53 = vpop.xlane.xlu0 %672 }
 0x15e   : > { %1245 = vst.msk [vmem:[%s1660_s15 + $0x318] sm:$0xff] %vm1145_vm1, %v676_v52  ;;  %1244 = vst.msk [vmem:[%s1660_s15 + $0x310] sm:$0xff] %vm1145_vm1, %v673_v53  ;;  %v311_v52 = vld [vmem:[%s1511_s12 + $0x5f8] sm:$0xff]  ;;  %v310_v53 = vld [vmem:[%s1511_s12 + $0x5f0] sm:$0xff] }
 0x15f   : > { %v950_v56 = vsel %vm376_vm0, %v311_v52, -inf  ;;  %v947_v57 = vsel %vm376_vm0, %v310_v53, -inf }
 0x160   : > { %885 = vmax.xlane.f32.xlu1 %v884_v54  ;;  %882 = vmax.xlane.f32.xlu0 %v881_v55 }
 0x161   : > { %v682_v58 = vpop.xlane.xlu1 %681  ;;  %v679_v59 = vpop.xlane.xlu0 %678 }
 0x162   : > { %1247 = vst.msk [vmem:[%s1660_s15 + $0x328] sm:$0xff] %vm1145_vm1, %v682_v58  ;;  %1246 = vst.msk [vmem:[%s1660_s15 + $0x320] sm:$0xff] %vm1145_vm1, %v679_v59  ;;  %v313_v58 = vld [vmem:[%s1511_s12 + $0x608] sm:$0xff]  ;;  %v312_v59 = vld [vmem:[%s1511_s12 + $0x600] sm:$0xff] }
 0x163   : > { %v956_v62 = vsel %vm376_vm0, %v313_v58, -inf  ;;  %v953_v63 = vsel %vm376_vm0, %v312_v59, -inf }
 0x164   : > { %891 = vmax.xlane.f32.xlu1 %v890_v60  ;;  %888 = vmax.xlane.f32.xlu0 %v887_v61 }
 0x165   : > { %v688_v0 = vpop.xlane.xlu1 %687  ;;  %v685_v1 = vpop.xlane.xlu0 %684 }
 0x166   : > { %1249 = vst.msk [vmem:[%s1660_s15 + $0x338] sm:$0xff] %vm1145_vm1, %v688_v0  ;;  %1248 = vst.msk [vmem:[%s1660_s15 + $0x330] sm:$0xff] %vm1145_vm1, %v685_v1  ;;  %v315_v0 = vld [vmem:[%s1511_s12 + $0x618] sm:$0xff]  ;;  %v314_v1 = vld [vmem:[%s1511_s12 + $0x610] sm:$0xff] }
 0x167   : > { %v962_v4 = vsel %vm376_vm0, %v315_v0, -inf  ;;  %v959_v5 = vsel %vm376_vm0, %v314_v1, -inf }
 0x168   : > { %897 = vmax.xlane.f32.xlu1 %v896_v2  ;;  %894 = vmax.xlane.f32.xlu0 %v893_v3 }
 0x169   : > { %v694_v6 = vpop.xlane.xlu1 %693  ;;  %v691_v7 = vpop.xlane.xlu0 %690 }
 0x16a   : > { %1251 = vst.msk [vmem:[%s1660_s15 + $0x348] sm:$0xff] %vm1145_vm1, %v694_v6  ;;  %1250 = vst.msk [vmem:[%s1660_s15 + $0x340] sm:$0xff] %vm1145_vm1, %v691_v7  ;;  %v317_v6 = vld [vmem:[%s1511_s12 + $0x628] sm:$0xff]  ;;  %v316_v7 = vld [vmem:[%s1511_s12 + $0x620] sm:$0xff] }
 0x16b   : > { %v968_v10 = vsel %vm376_vm0, %v317_v6, -inf  ;;  %v965_v11 = vsel %vm376_vm0, %v316_v7, -inf }
 0x16c   : > { %903 = vmax.xlane.f32.xlu1 %v902_v8  ;;  %900 = vmax.xlane.f32.xlu0 %v899_v9 }
 0x16d   : > { %v700_v12 = vpop.xlane.xlu1 %699  ;;  %v697_v13 = vpop.xlane.xlu0 %696 }
 0x16e   : > { %1253 = vst.msk [vmem:[%s1660_s15 + $0x358] sm:$0xff] %vm1145_vm1, %v700_v12  ;;  %1252 = vst.msk [vmem:[%s1660_s15 + $0x350] sm:$0xff] %vm1145_vm1, %v697_v13  ;;  %v319_v12 = vld [vmem:[%s1511_s12 + $0x638] sm:$0xff]  ;;  %v318_v13 = vld [vmem:[%s1511_s12 + $0x630] sm:$0xff] }
 0x16f   : > { %v974_v16 = vsel %vm376_vm0, %v319_v12, -inf  ;;  %v971_v17 = vsel %vm376_vm0, %v318_v13, -inf }
 0x170   : > { %909 = vmax.xlane.f32.xlu1 %v908_v14  ;;  %906 = vmax.xlane.f32.xlu0 %v905_v15 }
 0x171   : > { %v706_v18 = vpop.xlane.xlu1 %705  ;;  %v703_v19 = vpop.xlane.xlu0 %702 }
 0x172   : > { %1255 = vst.msk [vmem:[%s1660_s15 + $0x368] sm:$0xff] %vm1145_vm1, %v706_v18  ;;  %1254 = vst.msk [vmem:[%s1660_s15 + $0x360] sm:$0xff] %vm1145_vm1, %v703_v19  ;;  %v321_v18 = vld [vmem:[%s1511_s12 + $0x648] sm:$0xff]  ;;  %v320_v19 = vld [vmem:[%s1511_s12 + $0x640] sm:$0xff] }
 0x173   : > { %v980_v22 = vsel %vm376_vm0, %v321_v18, -inf  ;;  %v977_v23 = vsel %vm376_vm0, %v320_v19, -inf }
 0x174   : > { %915 = vmax.xlane.f32.xlu1 %v914_v20  ;;  %912 = vmax.xlane.f32.xlu0 %v911_v21 }
 0x175   : > { %v712_v24 = vpop.xlane.xlu1 %711  ;;  %v709_v25 = vpop.xlane.xlu0 %708 }
 0x176   : > { %1257 = vst.msk [vmem:[%s1660_s15 + $0x378] sm:$0xff] %vm1145_vm1, %v712_v24  ;;  %1256 = vst.msk [vmem:[%s1660_s15 + $0x370] sm:$0xff] %vm1145_vm1, %v709_v25  ;;  %v323_v24 = vld [vmem:[%s1511_s12 + $0x658] sm:$0xff]  ;;  %v322_v25 = vld [vmem:[%s1511_s12 + $0x650] sm:$0xff] }
 0x177   : > { %v986_v28 = vsel %vm376_vm0, %v323_v24, -inf  ;;  %v983_v29 = vsel %vm376_vm0, %v322_v25, -inf }
 0x178   : > { %921 = vmax.xlane.f32.xlu1 %v920_v26  ;;  %918 = vmax.xlane.f32.xlu0 %v917_v27 }
 0x179   : > { %v718_v30 = vpop.xlane.xlu1 %717  ;;  %v715_v31 = vpop.xlane.xlu0 %714 }
 0x17a   : > { %1259 = vst.msk [vmem:[%s1660_s15 + $0x388] sm:$0xff] %vm1145_vm1, %v718_v30  ;;  %1258 = vst.msk [vmem:[%s1660_s15 + $0x380] sm:$0xff] %vm1145_vm1, %v715_v31  ;;  %v325_v30 = vld [vmem:[%s1511_s12 + $0x668] sm:$0xff]  ;;  %v324_v31 = vld [vmem:[%s1511_s12 + $0x660] sm:$0xff] }
 0x17b   : > { %v992_v34 = vsel %vm376_vm0, %v325_v30, -inf  ;;  %v989_v35 = vsel %vm376_vm0, %v324_v31, -inf }
 0x17c   : > { %927 = vmax.xlane.f32.xlu1 %v926_v32  ;;  %924 = vmax.xlane.f32.xlu0 %v923_v33 }
 0x17d   : > { %v724_v36 = vpop.xlane.xlu1 %723  ;;  %v721_v37 = vpop.xlane.xlu0 %720 }
 0x17e   : > { %1261 = vst.msk [vmem:[%s1660_s15 + $0x398] sm:$0xff] %vm1145_vm1, %v724_v36  ;;  %1260 = vst.msk [vmem:[%s1660_s15 + $0x390] sm:$0xff] %vm1145_vm1, %v721_v37  ;;  %v327_v36 = vld [vmem:[%s1511_s12 + $0x678] sm:$0xff]  ;;  %v326_v37 = vld [vmem:[%s1511_s12 + $0x670] sm:$0xff] }
 0x17f   : > { %v998_v40 = vsel %vm376_vm0, %v327_v36, -inf  ;;  %v995_v41 = vsel %vm376_vm0, %v326_v37, -inf }
 0x180   : > { %933 = vmax.xlane.f32.xlu1 %v932_v38  ;;  %930 = vmax.xlane.f32.xlu0 %v929_v39 }
 0x181   : > { %v730_v42 = vpop.xlane.xlu1 %729  ;;  %v727_v43 = vpop.xlane.xlu0 %726 }
 0x182   : > { %1263 = vst.msk [vmem:[%s1660_s15 + $0x3a8] sm:$0xff] %vm1145_vm1, %v730_v42  ;;  %1262 = vst.msk [vmem:[%s1660_s15 + $0x3a0] sm:$0xff] %vm1145_vm1, %v727_v43  ;;  %v329_v42 = vld [vmem:[%s1511_s12 + $0x688] sm:$0xff]  ;;  %v328_v43 = vld [vmem:[%s1511_s12 + $0x680] sm:$0xff] }
 0x183   : > { %v1004_v46 = vsel %vm376_vm0, %v329_v42, -inf  ;;  %v1001_v47 = vsel %vm376_vm0, %v328_v43, -inf }
 0x184   : > { %939 = vmax.xlane.f32.xlu1 %v938_v44  ;;  %936 = vmax.xlane.f32.xlu0 %v935_v45 }
 0x185   : > { %v736_v48 = vpop.xlane.xlu1 %735  ;;  %v733_v49 = vpop.xlane.xlu0 %732 }
 0x186   : > { %1265 = vst.msk [vmem:[%s1660_s15 + $0x3b8] sm:$0xff] %vm1145_vm1, %v736_v48  ;;  %1264 = vst.msk [vmem:[%s1660_s15 + $0x3b0] sm:$0xff] %vm1145_vm1, %v733_v49  ;;  %v331_v48 = vld [vmem:[%s1511_s12 + $0x698] sm:$0xff]  ;;  %v330_v49 = vld [vmem:[%s1511_s12 + $0x690] sm:$0xff] }
 0x187   : > { %v1010_v52 = vsel %vm376_vm0, %v331_v48, -inf  ;;  %v1007_v53 = vsel %vm376_vm0, %v330_v49, -inf }
 0x188   : > { %945 = vmax.xlane.f32.xlu1 %v944_v50  ;;  %942 = vmax.xlane.f32.xlu0 %v941_v51 }
 0x189   : > { %v742_v54 = vpop.xlane.xlu1 %741  ;;  %v739_v55 = vpop.xlane.xlu0 %738 }
 0x18a   : > { %1267 = vst.msk [vmem:[%s1660_s15 + $0x3c8] sm:$0xff] %vm1145_vm1, %v742_v54  ;;  %1266 = vst.msk [vmem:[%s1660_s15 + $0x3c0] sm:$0xff] %vm1145_vm1, %v739_v55  ;;  %v333_v54 = vld [vmem:[%s1511_s12 + $0x6a8] sm:$0xff]  ;;  %v332_v55 = vld [vmem:[%s1511_s12 + $0x6a0] sm:$0xff] }
 0x18b   : > { %v1016_v58 = vsel %vm376_vm0, %v333_v54, -inf  ;;  %v1013_v59 = vsel %vm376_vm0, %v332_v55, -inf }
 0x18c   : > { %951 = vmax.xlane.f32.xlu1 %v950_v56  ;;  %948 = vmax.xlane.f32.xlu0 %v947_v57 }
 0x18d   : > { %v748_v60 = vpop.xlane.xlu1 %747  ;;  %v745_v61 = vpop.xlane.xlu0 %744 }
 0x18e   : > { %1269 = vst.msk [vmem:[%s1660_s15 + $0x3d8] sm:$0xff] %vm1145_vm1, %v748_v60  ;;  %1268 = vst.msk [vmem:[%s1660_s15 + $0x3d0] sm:$0xff] %vm1145_vm1, %v745_v61  ;;  %v335_v60 = vld [vmem:[%s1511_s12 + $0x6b8] sm:$0xff]  ;;  %v334_v61 = vld [vmem:[%s1511_s12 + $0x6b0] sm:$0xff] }
 0x18f   : > { %v1022_v0 = vsel %vm376_vm0, %v335_v60, -inf  ;;  %v1019_v1 = vsel %vm376_vm0, %v334_v61, -inf }
 0x190   : > { %957 = vmax.xlane.f32.xlu1 %v956_v62  ;;  %954 = vmax.xlane.f32.xlu0 %v953_v63 }
 0x191   : > { %v754_v2 = vpop.xlane.xlu1 %753  ;;  %v751_v3 = vpop.xlane.xlu0 %750 }
 0x192   : > { %1271 = vst.msk [vmem:[%s1660_s15 + $0x3e8] sm:$0xff] %vm1145_vm1, %v754_v2  ;;  %1270 = vst.msk [vmem:[%s1660_s15 + $0x3e0] sm:$0xff] %vm1145_vm1, %v751_v3  ;;  %v337_v2 = vld [vmem:[%s1511_s12 + $0x6c8] sm:$0xff]  ;;  %v336_v3 = vld [vmem:[%s1511_s12 + $0x6c0] sm:$0xff] }
 0x193   : > { %v1028_v6 = vsel %vm376_vm0, %v337_v2, -inf  ;;  %v1025_v7 = vsel %vm376_vm0, %v336_v3, -inf }
 0x194   : > { %963 = vmax.xlane.f32.xlu1 %v962_v4  ;;  %960 = vmax.xlane.f32.xlu0 %v959_v5 }
 0x195   : > { %v760_v8 = vpop.xlane.xlu1 %759  ;;  %v757_v9 = vpop.xlane.xlu0 %756 }
 0x196   : > { %1273 = vst.msk [vmem:[%s1660_s15 + $0x3f8] sm:$0xff] %vm1145_vm1, %v760_v8  ;;  %1272 = vst.msk [vmem:[%s1660_s15 + $0x3f0] sm:$0xff] %vm1145_vm1, %v757_v9  ;;  %v339_v8 = vld [vmem:[%s1511_s12 + $0x6d8] sm:$0xff]  ;;  %v338_v9 = vld [vmem:[%s1511_s12 + $0x6d0] sm:$0xff] }
 0x197   : > { %v1034_v12 = vsel %vm376_vm0, %v339_v8, -inf  ;;  %v1031_v13 = vsel %vm376_vm0, %v338_v9, -inf }
 0x198   : > { %969 = vmax.xlane.f32.xlu1 %v968_v10  ;;  %966 = vmax.xlane.f32.xlu0 %v965_v11 }
 0x199   : > { %v766_v14 = vpop.xlane.xlu1 %765  ;;  %v763_v15 = vpop.xlane.xlu0 %762 }
 0x19a   : > { %1275 = vst.msk [vmem:[%s1660_s15 + $0x408] sm:$0xff] %vm1145_vm1, %v766_v14  ;;  %1274 = vst.msk [vmem:[%s1660_s15 + $0x400] sm:$0xff] %vm1145_vm1, %v763_v15  ;;  %v341_v14 = vld [vmem:[%s1511_s12 + $0x6e8] sm:$0xff]  ;;  %v340_v15 = vld [vmem:[%s1511_s12 + $0x6e0] sm:$0xff] }
 0x19b   : > { %v1040_v18 = vsel %vm376_vm0, %v341_v14, -inf  ;;  %v1037_v19 = vsel %vm376_vm0, %v340_v15, -inf }
 0x19c   : > { %975 = vmax.xlane.f32.xlu1 %v974_v16  ;;  %972 = vmax.xlane.f32.xlu0 %v971_v17 }
 0x19d   : > { %v772_v20 = vpop.xlane.xlu1 %771  ;;  %v769_v21 = vpop.xlane.xlu0 %768 }
 0x19e   : > { %1277 = vst.msk [vmem:[%s1660_s15 + $0x418] sm:$0xff] %vm1145_vm1, %v772_v20  ;;  %1276 = vst.msk [vmem:[%s1660_s15 + $0x410] sm:$0xff] %vm1145_vm1, %v769_v21  ;;  %v343_v20 = vld [vmem:[%s1511_s12 + $0x6f8] sm:$0xff]  ;;  %v342_v21 = vld [vmem:[%s1511_s12 + $0x6f0] sm:$0xff] }
 0x19f   : > { %v1046_v24 = vsel %vm376_vm0, %v343_v20, -inf  ;;  %v1043_v25 = vsel %vm376_vm0, %v342_v21, -inf }
 0x1a0   : > { %981 = vmax.xlane.f32.xlu1 %v980_v22  ;;  %978 = vmax.xlane.f32.xlu0 %v977_v23 }
 0x1a1   : > { %v778_v26 = vpop.xlane.xlu1 %777  ;;  %v775_v27 = vpop.xlane.xlu0 %774 }
 0x1a2   : > { %1279 = vst.msk [vmem:[%s1660_s15 + $0x428] sm:$0xff] %vm1145_vm1, %v778_v26  ;;  %1278 = vst.msk [vmem:[%s1660_s15 + $0x420] sm:$0xff] %vm1145_vm1, %v775_v27  ;;  %v345_v26 = vld [vmem:[%s1511_s12 + $0x708] sm:$0xff]  ;;  %v344_v27 = vld [vmem:[%s1511_s12 + $0x700] sm:$0xff] }
 0x1a3   : > { %v1052_v30 = vsel %vm376_vm0, %v345_v26, -inf  ;;  %v1049_v31 = vsel %vm376_vm0, %v344_v27, -inf }
 0x1a4   : > { %987 = vmax.xlane.f32.xlu1 %v986_v28  ;;  %984 = vmax.xlane.f32.xlu0 %v983_v29 }
 0x1a5   : > { %v784_v32 = vpop.xlane.xlu1 %783  ;;  %v781_v33 = vpop.xlane.xlu0 %780 }
 0x1a6   : > { %1281 = vst.msk [vmem:[%s1660_s15 + $0x438] sm:$0xff] %vm1145_vm1, %v784_v32  ;;  %1280 = vst.msk [vmem:[%s1660_s15 + $0x430] sm:$0xff] %vm1145_vm1, %v781_v33  ;;  %v347_v32 = vld [vmem:[%s1511_s12 + $0x718] sm:$0xff]  ;;  %v346_v33 = vld [vmem:[%s1511_s12 + $0x710] sm:$0xff] }
 0x1a7   : > { %v1058_v36 = vsel %vm376_vm0, %v347_v32, -inf  ;;  %v1055_v37 = vsel %vm376_vm0, %v346_v33, -inf }
 0x1a8   : > { %993 = vmax.xlane.f32.xlu1 %v992_v34  ;;  %990 = vmax.xlane.f32.xlu0 %v989_v35 }
 0x1a9   : > { %v790_v38 = vpop.xlane.xlu1 %789  ;;  %v787_v39 = vpop.xlane.xlu0 %786 }
 0x1aa   : > { %1283 = vst.msk [vmem:[%s1660_s15 + $0x448] sm:$0xff] %vm1145_vm1, %v790_v38  ;;  %1282 = vst.msk [vmem:[%s1660_s15 + $0x440] sm:$0xff] %vm1145_vm1, %v787_v39  ;;  %v349_v38 = vld [vmem:[%s1511_s12 + $0x728] sm:$0xff]  ;;  %v348_v39 = vld [vmem:[%s1511_s12 + $0x720] sm:$0xff] }
 0x1ab   : > { %v1064_v42 = vsel %vm376_vm0, %v349_v38, -inf  ;;  %v1061_v43 = vsel %vm376_vm0, %v348_v39, -inf }
 0x1ac   : > { %999 = vmax.xlane.f32.xlu1 %v998_v40  ;;  %996 = vmax.xlane.f32.xlu0 %v995_v41 }
 0x1ad   : > { %v796_v44 = vpop.xlane.xlu1 %795  ;;  %v793_v45 = vpop.xlane.xlu0 %792 }
 0x1ae   : > { %1285 = vst.msk [vmem:[%s1660_s15 + $0x458] sm:$0xff] %vm1145_vm1, %v796_v44  ;;  %1284 = vst.msk [vmem:[%s1660_s15 + $0x450] sm:$0xff] %vm1145_vm1, %v793_v45  ;;  %v351_v44 = vld [vmem:[%s1511_s12 + $0x738] sm:$0xff]  ;;  %v350_v45 = vld [vmem:[%s1511_s12 + $0x730] sm:$0xff] }
 0x1af   : > { %v1070_v48 = vsel %vm376_vm0, %v351_v44, -inf  ;;  %v1067_v49 = vsel %vm376_vm0, %v350_v45, -inf }
 0x1b0   : > { %1005 = vmax.xlane.f32.xlu1 %v1004_v46  ;;  %1002 = vmax.xlane.f32.xlu0 %v1001_v47 }
 0x1b1   : > { %v802_v50 = vpop.xlane.xlu1 %801  ;;  %v799_v51 = vpop.xlane.xlu0 %798 }
 0x1b2   : > { %1287 = vst.msk [vmem:[%s1660_s15 + $0x468] sm:$0xff] %vm1145_vm1, %v802_v50  ;;  %1286 = vst.msk [vmem:[%s1660_s15 + $0x460] sm:$0xff] %vm1145_vm1, %v799_v51  ;;  %v353_v50 = vld [vmem:[%s1511_s12 + $0x748] sm:$0xff]  ;;  %v352_v51 = vld [vmem:[%s1511_s12 + $0x740] sm:$0xff] }
 0x1b3   : > { %v1076_v54 = vsel %vm376_vm0, %v353_v50, -inf  ;;  %v1073_v55 = vsel %vm376_vm0, %v352_v51, -inf }
 0x1b4   : > { %1011 = vmax.xlane.f32.xlu1 %v1010_v52  ;;  %1008 = vmax.xlane.f32.xlu0 %v1007_v53 }
 0x1b5   : > { %v808_v56 = vpop.xlane.xlu1 %807  ;;  %v805_v57 = vpop.xlane.xlu0 %804 }
 0x1b6   : > { %1289 = vst.msk [vmem:[%s1660_s15 + $0x478] sm:$0xff] %vm1145_vm1, %v808_v56  ;;  %1288 = vst.msk [vmem:[%s1660_s15 + $0x470] sm:$0xff] %vm1145_vm1, %v805_v57  ;;  %v355_v56 = vld [vmem:[%s1511_s12 + $0x758] sm:$0xff]  ;;  %v354_v57 = vld [vmem:[%s1511_s12 + $0x750] sm:$0xff] }
 0x1b7   : > { %v1082_v60 = vsel %vm376_vm0, %v355_v56, -inf  ;;  %v1079_v61 = vsel %vm376_vm0, %v354_v57, -inf }
 0x1b8   : > { %1017 = vmax.xlane.f32.xlu1 %v1016_v58  ;;  %1014 = vmax.xlane.f32.xlu0 %v1013_v59 }
 0x1b9   : > { %v814_v62 = vpop.xlane.xlu1 %813  ;;  %v811_v63 = vpop.xlane.xlu0 %810 }
 0x1ba   : > { %1291 = vst.msk [vmem:[%s1660_s15 + $0x488] sm:$0xff] %vm1145_vm1, %v814_v62  ;;  %1290 = vst.msk [vmem:[%s1660_s15 + $0x480] sm:$0xff] %vm1145_vm1, %v811_v63  ;;  %v357_v62 = vld [vmem:[%s1511_s12 + $0x768] sm:$0xff]  ;;  %v356_v63 = vld [vmem:[%s1511_s12 + $0x760] sm:$0xff] }
 0x1bb   : > { %v1088_v2 = vsel %vm376_vm0, %v357_v62, -inf  ;;  %v1085_v3 = vsel %vm376_vm0, %v356_v63, -inf }
 0x1bc   : > { %1023 = vmax.xlane.f32.xlu1 %v1022_v0  ;;  %1020 = vmax.xlane.f32.xlu0 %v1019_v1 }
 0x1bd   : > { %v820_v4 = vpop.xlane.xlu1 %819  ;;  %v817_v5 = vpop.xlane.xlu0 %816 }
 0x1be   : > { %1293 = vst.msk [vmem:[%s1660_s15 + $0x498] sm:$0xff] %vm1145_vm1, %v820_v4  ;;  %1292 = vst.msk [vmem:[%s1660_s15 + $0x490] sm:$0xff] %vm1145_vm1, %v817_v5  ;;  %v359_v4 = vld [vmem:[%s1511_s12 + $0x778] sm:$0xff]  ;;  %v358_v5 = vld [vmem:[%s1511_s12 + $0x770] sm:$0xff] }
 0x1bf   : > { %v1094_v8 = vsel %vm376_vm0, %v359_v4, -inf  ;;  %v1091_v9 = vsel %vm376_vm0, %v358_v5, -inf }
 0x1c0   : > { %1029 = vmax.xlane.f32.xlu1 %v1028_v6  ;;  %1026 = vmax.xlane.f32.xlu0 %v1025_v7 }
 0x1c1   : > { %v826_v10 = vpop.xlane.xlu1 %825  ;;  %v823_v11 = vpop.xlane.xlu0 %822 }
 0x1c2   : > { %1295 = vst.msk [vmem:[%s1660_s15 + $0x4a8] sm:$0xff] %vm1145_vm1, %v826_v10  ;;  %1294 = vst.msk [vmem:[%s1660_s15 + $0x4a0] sm:$0xff] %vm1145_vm1, %v823_v11  ;;  %v361_v10 = vld [vmem:[%s1511_s12 + $0x788] sm:$0xff]  ;;  %v360_v11 = vld [vmem:[%s1511_s12 + $0x780] sm:$0xff] }
 0x1c3   : > { %v1100_v14 = vsel %vm376_vm0, %v361_v10, -inf  ;;  %v1097_v15 = vsel %vm376_vm0, %v360_v11, -inf }
 0x1c4   : > { %1035 = vmax.xlane.f32.xlu1 %v1034_v12  ;;  %1032 = vmax.xlane.f32.xlu0 %v1031_v13 }
 0x1c5   : > { %v832_v16 = vpop.xlane.xlu1 %831  ;;  %v829_v17 = vpop.xlane.xlu0 %828 }
 0x1c6   : > { %1297 = vst.msk [vmem:[%s1660_s15 + $0x4b8] sm:$0xff] %vm1145_vm1, %v832_v16  ;;  %1296 = vst.msk [vmem:[%s1660_s15 + $0x4b0] sm:$0xff] %vm1145_vm1, %v829_v17  ;;  %v363_v16 = vld [vmem:[%s1511_s12 + $0x798] sm:$0xff]  ;;  %v362_v17 = vld [vmem:[%s1511_s12 + $0x790] sm:$0xff] }
 0x1c7   : > { %v1106_v20 = vsel %vm376_vm0, %v363_v16, -inf  ;;  %v1103_v21 = vsel %vm376_vm0, %v362_v17, -inf }
 0x1c8   : > { %1041 = vmax.xlane.f32.xlu1 %v1040_v18  ;;  %1038 = vmax.xlane.f32.xlu0 %v1037_v19 }
 0x1c9   : > { %v838_v22 = vpop.xlane.xlu1 %837  ;;  %v835_v23 = vpop.xlane.xlu0 %834 }
 0x1ca   : > { %1299 = vst.msk [vmem:[%s1660_s15 + $0x4c8] sm:$0xff] %vm1145_vm1, %v838_v22  ;;  %1298 = vst.msk [vmem:[%s1660_s15 + $0x4c0] sm:$0xff] %vm1145_vm1, %v835_v23  ;;  %v365_v22 = vld [vmem:[%s1511_s12 + $0x7a8] sm:$0xff]  ;;  %v364_v23 = vld [vmem:[%s1511_s12 + $0x7a0] sm:$0xff] }
 0x1cb   : > { %v1112_v26 = vsel %vm376_vm0, %v365_v22, -inf  ;;  %v1109_v27 = vsel %vm376_vm0, %v364_v23, -inf }
 0x1cc   : > { %1047 = vmax.xlane.f32.xlu1 %v1046_v24  ;;  %1044 = vmax.xlane.f32.xlu0 %v1043_v25 }
 0x1cd   : > { %v844_v28 = vpop.xlane.xlu1 %843  ;;  %v841_v29 = vpop.xlane.xlu0 %840 }
 0x1ce   : > { %1301 = vst.msk [vmem:[%s1660_s15 + $0x4d8] sm:$0xff] %vm1145_vm1, %v844_v28  ;;  %1300 = vst.msk [vmem:[%s1660_s15 + $0x4d0] sm:$0xff] %vm1145_vm1, %v841_v29  ;;  %v367_v28 = vld [vmem:[%s1511_s12 + $0x7b8] sm:$0xff]  ;;  %v366_v29 = vld [vmem:[%s1511_s12 + $0x7b0] sm:$0xff] }
 0x1cf   : > { %v1118_v32 = vsel %vm376_vm0, %v367_v28, -inf  ;;  %v1115_v33 = vsel %vm376_vm0, %v366_v29, -inf }
 0x1d0   : > { %1053 = vmax.xlane.f32.xlu1 %v1052_v30  ;;  %1050 = vmax.xlane.f32.xlu0 %v1049_v31 }
 0x1d1   : > { %v850_v34 = vpop.xlane.xlu1 %849  ;;  %v847_v35 = vpop.xlane.xlu0 %846 }
 0x1d2   : > { %1303 = vst.msk [vmem:[%s1660_s15 + $0x4e8] sm:$0xff] %vm1145_vm1, %v850_v34  ;;  %1302 = vst.msk [vmem:[%s1660_s15 + $0x4e0] sm:$0xff] %vm1145_vm1, %v847_v35  ;;  %v369_v34 = vld [vmem:[%s1511_s12 + $0x7c8] sm:$0xff]  ;;  %v368_v35 = vld [vmem:[%s1511_s12 + $0x7c0] sm:$0xff] }
 0x1d3   : > { %v1124_v38 = vsel %vm376_vm0, %v369_v34, -inf  ;;  %v1121_v39 = vsel %vm376_vm0, %v368_v35, -inf }
 0x1d4   : > { %1059 = vmax.xlane.f32.xlu1 %v1058_v36  ;;  %1056 = vmax.xlane.f32.xlu0 %v1055_v37 }
 0x1d5   : > { %v856_v40 = vpop.xlane.xlu1 %855  ;;  %v853_v41 = vpop.xlane.xlu0 %852 }
 0x1d6   : > { %1305 = vst.msk [vmem:[%s1660_s15 + $0x4f8] sm:$0xff] %vm1145_vm1, %v856_v40  ;;  %1304 = vst.msk [vmem:[%s1660_s15 + $0x4f0] sm:$0xff] %vm1145_vm1, %v853_v41  ;;  %v371_v40 = vld [vmem:[%s1511_s12 + $0x7d8] sm:$0xff]  ;;  %v370_v41 = vld [vmem:[%s1511_s12 + $0x7d0] sm:$0xff] }
 0x1d7   : > { %v1130_v44 = vsel %vm376_vm0, %v371_v40, -inf  ;;  %v1127_v45 = vsel %vm376_vm0, %v370_v41, -inf }
 0x1d8   : > { %1065 = vmax.xlane.f32.xlu1 %v1064_v42  ;;  %1062 = vmax.xlane.f32.xlu0 %v1061_v43 }
 0x1d9   : > { %v862_v46 = vpop.xlane.xlu1 %861  ;;  %v859_v47 = vpop.xlane.xlu0 %858 }
 0x1da   : > { %1307 = vst.msk [vmem:[%s1660_s15 + $0x508] sm:$0xff] %vm1145_vm1, %v862_v46  ;;  %1306 = vst.msk [vmem:[%s1660_s15 + $0x500] sm:$0xff] %vm1145_vm1, %v859_v47  ;;  %v373_v46 = vld [vmem:[%s1511_s12 + $0x7e8] sm:$0xff]  ;;  %v372_v47 = vld [vmem:[%s1511_s12 + $0x7e0] sm:$0xff] }
 0x1db   : > { %v1136_v50 = vsel %vm376_vm0, %v373_v46, -inf  ;;  %v1133_v51 = vsel %vm376_vm0, %v372_v47, -inf }
 0x1dc   : > { %1071 = vmax.xlane.f32.xlu1 %v1070_v48  ;;  %1068 = vmax.xlane.f32.xlu0 %v1067_v49 }
 0x1dd   : > { %v868_v52 = vpop.xlane.xlu1 %867  ;;  %v865_v53 = vpop.xlane.xlu0 %864 }
 0x1de   : > { %1309 = vst.msk [vmem:[%s1660_s15 + $0x518] sm:$0xff] %vm1145_vm1, %v868_v52  ;;  %1308 = vst.msk [vmem:[%s1660_s15 + $0x510] sm:$0xff] %vm1145_vm1, %v865_v53  ;;  %v375_v52 = vld [vmem:[%s1511_s12 + $0x7f8] sm:$0xff]  ;;  %v374_v53 = vld [vmem:[%s1511_s12 + $0x7f0] sm:$0xff] }
 0x1df   : > { %v1142_v56 = vsel %vm376_vm0, %v375_v52, -inf  ;;  %v1139_v57 = vsel %vm376_vm0, %v374_v53, -inf }
 0x1e0   : > { %1077 = vmax.xlane.f32.xlu1 %v1076_v54  ;;  %1074 = vmax.xlane.f32.xlu0 %v1073_v55 }
 0x1e1   : > { %v874_v58 = vpop.xlane.xlu1 %873  ;;  %v871_v59 = vpop.xlane.xlu0 %870 }
 0x1e2   : > { %1311 = vst.msk [vmem:[%s1660_s15 + $0x528] sm:$0xff] %vm1145_vm1, %v874_v58  ;;  %1310 = vst.msk [vmem:[%s1660_s15 + $0x520] sm:$0xff] %vm1145_vm1, %v871_v59 }
 0x1e4   : > { %1083 = vmax.xlane.f32.xlu1 %v1082_v60  ;;  %1080 = vmax.xlane.f32.xlu0 %v1079_v61 }
 0x1e5   : > { %v880_v0 = vpop.xlane.xlu1 %879  ;;  %v877_v1 = vpop.xlane.xlu0 %876 }
 0x1e6   : > { %1313 = vst.msk [vmem:[%s1660_s15 + $0x538] sm:$0xff] %vm1145_vm1, %v880_v0  ;;  %1312 = vst.msk [vmem:[%s1660_s15 + $0x530] sm:$0xff] %vm1145_vm1, %v877_v1 }
 0x1e8   : > { %1089 = vmax.xlane.f32.xlu1 %v1088_v2  ;;  %1086 = vmax.xlane.f32.xlu0 %v1085_v3 }
 0x1e9   : > { %v886_v6 = vpop.xlane.xlu1 %885  ;;  %v883_v7 = vpop.xlane.xlu0 %882 }
 0x1ea   : > { %1315 = vst.msk [vmem:[%s1660_s15 + $0x548] sm:$0xff] %vm1145_vm1, %v886_v6  ;;  %1314 = vst.msk [vmem:[%s1660_s15 + $0x540] sm:$0xff] %vm1145_vm1, %v883_v7 }
 0x1ec   : > { %1095 = vmax.xlane.f32.xlu1 %v1094_v8  ;;  %1092 = vmax.xlane.f32.xlu0 %v1091_v9 }
 0x1ed   : > { %v892_v12 = vpop.xlane.xlu1 %891  ;;  %v889_v13 = vpop.xlane.xlu0 %888 }
 0x1ee   : > { %1317 = vst.msk [vmem:[%s1660_s15 + $0x558] sm:$0xff] %vm1145_vm1, %v892_v12  ;;  %1316 = vst.msk [vmem:[%s1660_s15 + $0x550] sm:$0xff] %vm1145_vm1, %v889_v13 }
 0x1f0   : > { %1101 = vmax.xlane.f32.xlu1 %v1100_v14  ;;  %1098 = vmax.xlane.f32.xlu0 %v1097_v15 }
 0x1f1   : > { %v898_v18 = vpop.xlane.xlu1 %897  ;;  %v895_v19 = vpop.xlane.xlu0 %894 }
 0x1f2   : > { %1319 = vst.msk [vmem:[%s1660_s15 + $0x568] sm:$0xff] %vm1145_vm1, %v898_v18  ;;  %1318 = vst.msk [vmem:[%s1660_s15 + $0x560] sm:$0xff] %vm1145_vm1, %v895_v19 }
 0x1f4   : > { %1107 = vmax.xlane.f32.xlu1 %v1106_v20  ;;  %1104 = vmax.xlane.f32.xlu0 %v1103_v21 }
 0x1f5   : > { %v904_v24 = vpop.xlane.xlu1 %903  ;;  %v901_v25 = vpop.xlane.xlu0 %900 }
 0x1f6   : > { %1321 = vst.msk [vmem:[%s1660_s15 + $0x578] sm:$0xff] %vm1145_vm1, %v904_v24  ;;  %1320 = vst.msk [vmem:[%s1660_s15 + $0x570] sm:$0xff] %vm1145_vm1, %v901_v25 }
 0x1f8   : > { %1113 = vmax.xlane.f32.xlu1 %v1112_v26  ;;  %1110 = vmax.xlane.f32.xlu0 %v1109_v27 }
 0x1f9   : > { %v910_v30 = vpop.xlane.xlu1 %909  ;;  %v907_v31 = vpop.xlane.xlu0 %906 }
 0x1fa   : > { %1323 = vst.msk [vmem:[%s1660_s15 + $0x588] sm:$0xff] %vm1145_vm1, %v910_v30  ;;  %1322 = vst.msk [vmem:[%s1660_s15 + $0x580] sm:$0xff] %vm1145_vm1, %v907_v31 }
 0x1fc   : > { %1119 = vmax.xlane.f32.xlu1 %v1118_v32  ;;  %1116 = vmax.xlane.f32.xlu0 %v1115_v33 }
 0x1fd   : > { %v916_v36 = vpop.xlane.xlu1 %915  ;;  %v913_v37 = vpop.xlane.xlu0 %912 }
 0x1fe   : > { %1325 = vst.msk [vmem:[%s1660_s15 + $0x598] sm:$0xff] %vm1145_vm1, %v916_v36  ;;  %1324 = vst.msk [vmem:[%s1660_s15 + $0x590] sm:$0xff] %vm1145_vm1, %v913_v37 }
 0x200   : > { %1125 = vmax.xlane.f32.xlu1 %v1124_v38  ;;  %1122 = vmax.xlane.f32.xlu0 %v1121_v39 }
 0x201   : > { %v922_v42 = vpop.xlane.xlu1 %921  ;;  %v919_v43 = vpop.xlane.xlu0 %918 }
 0x202   : > { %1327 = vst.msk [vmem:[%s1660_s15 + $0x5a8] sm:$0xff] %vm1145_vm1, %v922_v42  ;;  %1326 = vst.msk [vmem:[%s1660_s15 + $0x5a0] sm:$0xff] %vm1145_vm1, %v919_v43 }
 0x204   : > { %1131 = vmax.xlane.f32.xlu1 %v1130_v44  ;;  %1128 = vmax.xlane.f32.xlu0 %v1127_v45 }
 0x205   : > { %v928_v48 = vpop.xlane.xlu1 %927  ;;  %v925_v49 = vpop.xlane.xlu0 %924 }
 0x206   : > { %1329 = vst.msk [vmem:[%s1660_s15 + $0x5b8] sm:$0xff] %vm1145_vm1, %v928_v48  ;;  %1328 = vst.msk [vmem:[%s1660_s15 + $0x5b0] sm:$0xff] %vm1145_vm1, %v925_v49 }
 0x208   : > { %1137 = vmax.xlane.f32.xlu1 %v1136_v50  ;;  %1134 = vmax.xlane.f32.xlu0 %v1133_v51 }
 0x209   : > { %v934_v54 = vpop.xlane.xlu1 %933  ;;  %v931_v55 = vpop.xlane.xlu0 %930 }
 0x20a   : > { %1331 = vst.msk [vmem:[%s1660_s15 + $0x5c8] sm:$0xff] %vm1145_vm1, %v934_v54  ;;  %1330 = vst.msk [vmem:[%s1660_s15 + $0x5c0] sm:$0xff] %vm1145_vm1, %v931_v55 }
 0x20c   : > { %1143 = vmax.xlane.f32.xlu1 %v1142_v56  ;;  %1140 = vmax.xlane.f32.xlu0 %v1139_v57 }
 0x20d   : > { %v940_v58 = vpop.xlane.xlu1 %939  ;;  %v937_v59 = vpop.xlane.xlu0 %936 }
 0x20e   : > { %1333 = vst.msk [vmem:[%s1660_s15 + $0x5d8] sm:$0xff] %vm1145_vm1, %v940_v58  ;;  %1332 = vst.msk [vmem:[%s1660_s15 + $0x5d0] sm:$0xff] %vm1145_vm1, %v937_v59 }
 0x211   : > { %v946_v60 = vpop.xlane.xlu1 %945  ;;  %v943_v61 = vpop.xlane.xlu0 %942 }
 0x212   : > { %1335 = vst.msk [vmem:[%s1660_s15 + $0x5e8] sm:$0xff] %vm1145_vm1, %v946_v60  ;;  %1334 = vst.msk [vmem:[%s1660_s15 + $0x5e0] sm:$0xff] %vm1145_vm1, %v943_v61 }
 0x215   : > { %v952_v62 = vpop.xlane.xlu1 %951  ;;  %v949_v63 = vpop.xlane.xlu0 %948 }
 0x216   : > { %1337 = vst.msk [vmem:[%s1660_s15 + $0x5f8] sm:$0xff] %vm1145_vm1, %v952_v62  ;;  %1336 = vst.msk [vmem:[%s1660_s15 + $0x5f0] sm:$0xff] %vm1145_vm1, %v949_v63 }
 0x219   : > { %v958_v0 = vpop.xlane.xlu1 %957  ;;  %v955_v1 = vpop.xlane.xlu0 %954 }
 0x21a   : > { %1339 = vst.msk [vmem:[%s1660_s15 + $0x608] sm:$0xff] %vm1145_vm1, %v958_v0  ;;  %1338 = vst.msk [vmem:[%s1660_s15 + $0x600] sm:$0xff] %vm1145_vm1, %v955_v1 }
 0x21d   : > { %v964_v2 = vpop.xlane.xlu1 %963  ;;  %v961_v3 = vpop.xlane.xlu0 %960 }
 0x21e   : > { %1341 = vst.msk [vmem:[%s1660_s15 + $0x618] sm:$0xff] %vm1145_vm1, %v964_v2  ;;  %1340 = vst.msk [vmem:[%s1660_s15 + $0x610] sm:$0xff] %vm1145_vm1, %v961_v3 }
 0x221   : > { %v970_v4 = vpop.xlane.xlu1 %969  ;;  %v967_v5 = vpop.xlane.xlu0 %966 }
 0x222   : > { %1343 = vst.msk [vmem:[%s1660_s15 + $0x628] sm:$0xff] %vm1145_vm1, %v970_v4  ;;  %1342 = vst.msk [vmem:[%s1660_s15 + $0x620] sm:$0xff] %vm1145_vm1, %v967_v5 }
 0x225   : > { %v976_v6 = vpop.xlane.xlu1 %975  ;;  %v973_v7 = vpop.xlane.xlu0 %972 }
 0x226   : > { %1345 = vst.msk [vmem:[%s1660_s15 + $0x638] sm:$0xff] %vm1145_vm1, %v976_v6  ;;  %1344 = vst.msk [vmem:[%s1660_s15 + $0x630] sm:$0xff] %vm1145_vm1, %v973_v7 }
 0x229   : > { %v982_v8 = vpop.xlane.xlu1 %981  ;;  %v979_v9 = vpop.xlane.xlu0 %978 }
 0x22a   : > { %1347 = vst.msk [vmem:[%s1660_s15 + $0x648] sm:$0xff] %vm1145_vm1, %v982_v8  ;;  %1346 = vst.msk [vmem:[%s1660_s15 + $0x640] sm:$0xff] %vm1145_vm1, %v979_v9 }
 0x22d   : > { %v988_v10 = vpop.xlane.xlu1 %987  ;;  %v985_v11 = vpop.xlane.xlu0 %984 }
 0x22e   : > { %1349 = vst.msk [vmem:[%s1660_s15 + $0x658] sm:$0xff] %vm1145_vm1, %v988_v10  ;;  %1348 = vst.msk [vmem:[%s1660_s15 + $0x650] sm:$0xff] %vm1145_vm1, %v985_v11 }
 0x231   : > { %v994_v12 = vpop.xlane.xlu1 %993  ;;  %v991_v13 = vpop.xlane.xlu0 %990 }
 0x232   : > { %1351 = vst.msk [vmem:[%s1660_s15 + $0x668] sm:$0xff] %vm1145_vm1, %v994_v12  ;;  %1350 = vst.msk [vmem:[%s1660_s15 + $0x660] sm:$0xff] %vm1145_vm1, %v991_v13 }
 0x235   : > { %v1000_v14 = vpop.xlane.xlu1 %999  ;;  %v997_v15 = vpop.xlane.xlu0 %996 }
 0x236   : > { %1353 = vst.msk [vmem:[%s1660_s15 + $0x678] sm:$0xff] %vm1145_vm1, %v1000_v14  ;;  %1352 = vst.msk [vmem:[%s1660_s15 + $0x670] sm:$0xff] %vm1145_vm1, %v997_v15 }
 0x239   : > { %v1006_v16 = vpop.xlane.xlu1 %1005  ;;  %v1003_v17 = vpop.xlane.xlu0 %1002 }
 0x23a   : > { %1355 = vst.msk [vmem:[%s1660_s15 + $0x688] sm:$0xff] %vm1145_vm1, %v1006_v16  ;;  %1354 = vst.msk [vmem:[%s1660_s15 + $0x680] sm:$0xff] %vm1145_vm1, %v1003_v17 }
 0x23d   : > { %v1012_v18 = vpop.xlane.xlu1 %1011  ;;  %v1009_v19 = vpop.xlane.xlu0 %1008 }
 0x23e   : > { %1357 = vst.msk [vmem:[%s1660_s15 + $0x698] sm:$0xff] %vm1145_vm1, %v1012_v18  ;;  %1356 = vst.msk [vmem:[%s1660_s15 + $0x690] sm:$0xff] %vm1145_vm1, %v1009_v19 }
 0x241   : > { %v1018_v20 = vpop.xlane.xlu1 %1017  ;;  %v1015_v21 = vpop.xlane.xlu0 %1014 }
 0x242   : > { %1359 = vst.msk [vmem:[%s1660_s15 + $0x6a8] sm:$0xff] %vm1145_vm1, %v1018_v20  ;;  %1358 = vst.msk [vmem:[%s1660_s15 + $0x6a0] sm:$0xff] %vm1145_vm1, %v1015_v21 }
 0x245   : > { %v1024_v22 = vpop.xlane.xlu1 %1023  ;;  %v1021_v23 = vpop.xlane.xlu0 %1020 }
 0x246   : > { %1361 = vst.msk [vmem:[%s1660_s15 + $0x6b8] sm:$0xff] %vm1145_vm1, %v1024_v22  ;;  %1360 = vst.msk [vmem:[%s1660_s15 + $0x6b0] sm:$0xff] %vm1145_vm1, %v1021_v23 }
 0x249   : > { %v1030_v24 = vpop.xlane.xlu1 %1029  ;;  %v1027_v25 = vpop.xlane.xlu0 %1026 }
 0x24a   : > { %1363 = vst.msk [vmem:[%s1660_s15 + $0x6c8] sm:$0xff] %vm1145_vm1, %v1030_v24  ;;  %1362 = vst.msk [vmem:[%s1660_s15 + $0x6c0] sm:$0xff] %vm1145_vm1, %v1027_v25 }
 0x24d   : > { %v1036_v26 = vpop.xlane.xlu1 %1035  ;;  %v1033_v27 = vpop.xlane.xlu0 %1032 }
 0x24e   : > { %1365 = vst.msk [vmem:[%s1660_s15 + $0x6d8] sm:$0xff] %vm1145_vm1, %v1036_v26  ;;  %1364 = vst.msk [vmem:[%s1660_s15 + $0x6d0] sm:$0xff] %vm1145_vm1, %v1033_v27 }
 0x251   : > { %v1042_v28 = vpop.xlane.xlu1 %1041  ;;  %v1039_v29 = vpop.xlane.xlu0 %1038 }
 0x252   : > { %1367 = vst.msk [vmem:[%s1660_s15 + $0x6e8] sm:$0xff] %vm1145_vm1, %v1042_v28  ;;  %1366 = vst.msk [vmem:[%s1660_s15 + $0x6e0] sm:$0xff] %vm1145_vm1, %v1039_v29 }
 0x255   : > { %v1048_v30 = vpop.xlane.xlu1 %1047  ;;  %v1045_v31 = vpop.xlane.xlu0 %1044 }
 0x256   : > { %1369 = vst.msk [vmem:[%s1660_s15 + $0x6f8] sm:$0xff] %vm1145_vm1, %v1048_v30  ;;  %1368 = vst.msk [vmem:[%s1660_s15 + $0x6f0] sm:$0xff] %vm1145_vm1, %v1045_v31 }
 0x259   : > { %v1054_v32 = vpop.xlane.xlu1 %1053  ;;  %v1051_v33 = vpop.xlane.xlu0 %1050 }
 0x25a   : > { %1371 = vst.msk [vmem:[%s1660_s15 + $0x708] sm:$0xff] %vm1145_vm1, %v1054_v32  ;;  %1370 = vst.msk [vmem:[%s1660_s15 + $0x700] sm:$0xff] %vm1145_vm1, %v1051_v33 }
 0x25d   : > { %v1060_v34 = vpop.xlane.xlu1 %1059  ;;  %v1057_v35 = vpop.xlane.xlu0 %1056 }
 0x25e   : > { %1373 = vst.msk [vmem:[%s1660_s15 + $0x718] sm:$0xff] %vm1145_vm1, %v1060_v34  ;;  %1372 = vst.msk [vmem:[%s1660_s15 + $0x710] sm:$0xff] %vm1145_vm1, %v1057_v35 }
 0x261   : > { %v1066_v36 = vpop.xlane.xlu1 %1065  ;;  %v1063_v37 = vpop.xlane.xlu0 %1062 }
 0x262   : > { %1375 = vst.msk [vmem:[%s1660_s15 + $0x728] sm:$0xff] %vm1145_vm1, %v1066_v36  ;;  %1374 = vst.msk [vmem:[%s1660_s15 + $0x720] sm:$0xff] %vm1145_vm1, %v1063_v37 }
 0x265   : > { %v1072_v38 = vpop.xlane.xlu1 %1071  ;;  %v1069_v39 = vpop.xlane.xlu0 %1068 }
 0x266   : > { %1377 = vst.msk [vmem:[%s1660_s15 + $0x738] sm:$0xff] %vm1145_vm1, %v1072_v38  ;;  %1376 = vst.msk [vmem:[%s1660_s15 + $0x730] sm:$0xff] %vm1145_vm1, %v1069_v39 }
 0x269   : > { %v1078_v40 = vpop.xlane.xlu1 %1077  ;;  %v1075_v41 = vpop.xlane.xlu0 %1074 }
 0x26a   : > { %1379 = vst.msk [vmem:[%s1660_s15 + $0x748] sm:$0xff] %vm1145_vm1, %v1078_v40  ;;  %1378 = vst.msk [vmem:[%s1660_s15 + $0x740] sm:$0xff] %vm1145_vm1, %v1075_v41 }
 0x26d   : > { %v1084_v42 = vpop.xlane.xlu1 %1083  ;;  %v1081_v43 = vpop.xlane.xlu0 %1080 }
 0x26e   : > { %1381 = vst.msk [vmem:[%s1660_s15 + $0x758] sm:$0xff] %vm1145_vm1, %v1084_v42  ;;  %1380 = vst.msk [vmem:[%s1660_s15 + $0x750] sm:$0xff] %vm1145_vm1, %v1081_v43 }
 0x271   : > { %v1090_v44 = vpop.xlane.xlu1 %1089  ;;  %v1087_v45 = vpop.xlane.xlu0 %1086 }
 0x272   : > { %1383 = vst.msk [vmem:[%s1660_s15 + $0x768] sm:$0xff] %vm1145_vm1, %v1090_v44  ;;  %1382 = vst.msk [vmem:[%s1660_s15 + $0x760] sm:$0xff] %vm1145_vm1, %v1087_v45 }
 0x275   : > { %v1096_v46 = vpop.xlane.xlu1 %1095  ;;  %v1093_v47 = vpop.xlane.xlu0 %1092 }
 0x276   : > { %1385 = vst.msk [vmem:[%s1660_s15 + $0x778] sm:$0xff] %vm1145_vm1, %v1096_v46  ;;  %1384 = vst.msk [vmem:[%s1660_s15 + $0x770] sm:$0xff] %vm1145_vm1, %v1093_v47 }
 0x279   : > { %v1102_v48 = vpop.xlane.xlu1 %1101  ;;  %v1099_v49 = vpop.xlane.xlu0 %1098 }
 0x27a   : > { %1387 = vst.msk [vmem:[%s1660_s15 + $0x788] sm:$0xff] %vm1145_vm1, %v1102_v48  ;;  %1386 = vst.msk [vmem:[%s1660_s15 + $0x780] sm:$0xff] %vm1145_vm1, %v1099_v49 }
 0x27d   : > { %v1108_v50 = vpop.xlane.xlu1 %1107  ;;  %v1105_v51 = vpop.xlane.xlu0 %1104 }
 0x27e   : > { %1389 = vst.msk [vmem:[%s1660_s15 + $0x798] sm:$0xff] %vm1145_vm1, %v1108_v50  ;;  %1388 = vst.msk [vmem:[%s1660_s15 + $0x790] sm:$0xff] %vm1145_vm1, %v1105_v51 }
 0x281   : > { %v1114_v52 = vpop.xlane.xlu1 %1113  ;;  %v1111_v53 = vpop.xlane.xlu0 %1110 }
 0x282   : > { %1391 = vst.msk [vmem:[%s1660_s15 + $0x7a8] sm:$0xff] %vm1145_vm1, %v1114_v52  ;;  %1390 = vst.msk [vmem:[%s1660_s15 + $0x7a0] sm:$0xff] %vm1145_vm1, %v1111_v53 }
 0x285   : > { %v1120_v54 = vpop.xlane.xlu1 %1119  ;;  %v1117_v55 = vpop.xlane.xlu0 %1116 }
 0x286   : > { %1393 = vst.msk [vmem:[%s1660_s15 + $0x7b8] sm:$0xff] %vm1145_vm1, %v1120_v54  ;;  %1392 = vst.msk [vmem:[%s1660_s15 + $0x7b0] sm:$0xff] %vm1145_vm1, %v1117_v55 }
 0x289   : > { %v1126_v56 = vpop.xlane.xlu1 %1125  ;;  %v1123_v57 = vpop.xlane.xlu0 %1122 }
 0x28a   : > { %1395 = vst.msk [vmem:[%s1660_s15 + $0x7c8] sm:$0xff] %vm1145_vm1, %v1126_v56  ;;  %1394 = vst.msk [vmem:[%s1660_s15 + $0x7c0] sm:$0xff] %vm1145_vm1, %v1123_v57 }
 0x28d   : > { %v1132_v58 = vpop.xlane.xlu1 %1131  ;;  %v1129_v59 = vpop.xlane.xlu0 %1128 }
 0x28e   : > { %1397 = vst.msk [vmem:[%s1660_s15 + $0x7d8] sm:$0xff] %vm1145_vm1, %v1132_v58  ;;  %1396 = vst.msk [vmem:[%s1660_s15 + $0x7d0] sm:$0xff] %vm1145_vm1, %v1129_v59 }
 0x291   : > { %v1138_v60 = vpop.xlane.xlu1 %1137  ;;  %v1135_v61 = vpop.xlane.xlu0 %1134 }
 0x292   : > { %1399 = vst.msk [vmem:[%s1660_s15 + $0x7e8] sm:$0xff] %vm1145_vm1, %v1138_v60  ;;  %1398 = vst.msk [vmem:[%s1660_s15 + $0x7e0] sm:$0xff] %vm1145_vm1, %v1135_v61 }
 0x295   : > { %v1144_v62 = vpop.xlane.xlu1 %1143  ;;  %v1141_v63 = vpop.xlane.xlu0 %1140 }
 0x296   : > { %1401 = vst.msk [vmem:[%s1660_s15 + $0x7f8] sm:$0xff] %vm1145_vm1, %v1144_v62  ;;  %1400 = vst.msk [vmem:[%s1660_s15 + $0x7f0] sm:$0xff] %vm1145_vm1, %v1141_v63 }
 0x297 PF: > { %s11_s6 = sadd.s32 1, %s1483_s6  }
 0x298   : > { %p8_p4 = scmp.ge.s32.totalorder %s11_s6, 4  }
 0x29a   :  { %10 = sbr.rel (!%p8_p4) target bundleno = 1 (0x1), region = 54 }

// kernel: contraction_block_forward.11
= control target key start
LH: loop header
LB: loop body
LE: loop exit
PB: predicated region body
PF: predicated region fallthrough
CT: control target
= control target key end

     0   :  { %s330_s12 = smov 0   ;;  %s353_s0 = inlined_call_operand.vmem [shape: f32[8,1024], index: 0, kind: input, shape index: {}]   ;;  %s354_s1 = inlined_call_operand.vmem [shape: f32[8,1], index: 1, kind: input, shape index: {}]   ;;  %s355_s2 = inlined_call_operand.vmem [shape: f32[8,1], index: 2, kind: input, shape index: {}]   ;;  %s356_s3 = inlined_call_operand.vmem [shape: bf16[8,1024], index: 3, kind: output, shape index: {}]  }
   0x1 LB: > { %s276_s13 = sadd.s32 4294967295, %s307_s12   ;;  %p280_p0 = scmp.ge.s32.totalorder %s307_s12, 1  ;;  %s307_s12 = sphi %s330_s12, %s13_s12  }
   0x2   : > { %p138_p1 = scmp.lt.s32.totalorder %s307_s12, 3 }
   0x4   : > { %p139_p2 = pnand %p280_p0, %p138_p1 }
   0x5   : > { %s281_s18 = sshll.u32 (!%p139_p2), %s276_s13, 2 }
   0x6   : > { %142 = sbr.rel (%p139_p2) target bundleno = 148 (0x94), region = 32  ;;  %p163_p3 = scmp.lt.s32.totalorder (!%p139_p2), %s281_s18, 7 }
   0xb   : > { %v178_v0 = vld [vmem:[%s354_s1] sm:$0xff]  ;;  %v309_v1 = vmov 0   ;;  %s358_s18 = smov (!%p163_p3, %s281_s18), 7 }
   0xc   : > { %300 = vset.pattern.permute.xlu0 %v309_v1  ;;  %v188_v2 = vld [vmem:[%s355_s2] sm:$0xff]  ;;  %s282_s19 = sshll.u32 %s358_s18, 3  ;;  %s284_s23 = sshll.u32 %s358_s18, 2 }
   0xd   : > { %181 = vperm.xlu0 %300, %v178_v0   ;;  %s166_s22 = scalar_lea.vmem %s353_s0, %s282_s19  ;;  %s172_s26 = scalar_lea.vmem %s356_s3, %s284_s23 }
   0xe   : > { %v174_v3 = vld [vmem:[%s166_s22] sm:$0xff]  ;;  %v175_v5 = vld [vmem:[%s166_s22 + $0x8] sm:$0xff]  ;;  %v176_v6 = vld [vmem:[%s166_s22 + $0x10] sm:$0xff] }
   0xf   : > { %v177_v7 = vld [vmem:[%s166_s22 + $0x18] sm:$0xff] }
  0x11   : > { %191 = vperm.xlu0 %300, %v188_v2  }
  0x88   : > { %v182_v4 = vpop.permute.xlu0 %181 }
  0x89   : > { %v184_v8 = vmul.f32 %v182_v4, %v174_v3  ;;  %v185_v9 = vmul.f32 %v182_v4, %v175_v5  ;;  %v186_v10 = vmul.f32 %v182_v4, %v176_v6  ;;  %v187_v11 = vmul.f32 %v182_v4, %v177_v7 }
  0x8c   : > { %v192_v12 = vpop.permute.xlu0 %191 }
  0x8d   : > { %v194_v13 = vadd.f32 %v192_v12, %v184_v8  ;;  %v195_v14 = vadd.f32 %v192_v12, %v185_v9  ;;  %v196_v15 = vadd.f32 %v192_v12, %v186_v10  ;;  %v197_v16 = vadd.f32 %v192_v12, %v187_v11 }
  0x8f   : > { %v198_v17 = vmax.f32 %v194_v13, 0.0  ;;  %v199_v18 = vmax.f32 %v195_v14, 0.0  ;;  %v200_v19 = vmax.f32 %v196_v15, 0.0  ;;  %v201_v20 = vmax.f32 %v197_v16, 0.0 }
  0x91   : > { %v289_v21 = vpack.c.bf16 %v199_v18, %v198_v17  ;;  %v290_v22 = vpack.c.bf16 %v201_v20, %v200_v19 }
  0x93   : > { %218 = vst [vmem:[%s172_s26] sm:$0xff] %v289_v21  ;;  %219 = vst [vmem:[%s172_s26 + $0x8] sm:$0xff] %v290_v22 }
  0x94 PF: > { %s13_s12 = sadd.s32 1, %s307_s12  }
  0x95   : > { %p10_p4 = scmp.ge.s32.totalorder %s13_s12, 4  }
  0x97   :  { %12 = sbr.rel (!%p10_p4) target bundleno = 1 (0x1), region = 62 }

// kernel: contraction_block_forward.10
= control target key start
LH: loop header
LB: loop body
LE: loop exit
PB: predicated region body
PF: predicated region fallthrough
CT: control target
= control target key end

     0   :  { %s869_s15 = smov 0   ;;  %s871_s16 = smov 0   ;;  %s1023_s0 = inlined_call_operand.vmem [shape: bf16[108,1024], index: 0, kind: input, shape index: {}]   ;;  %s1024_s1 = inlined_call_operand.vmem [shape: bf16[8,108], index: 1, kind: input, shape index: {}]   ;;  %s1025_s2 = inlined_call_operand.vmem [shape: f32[8,1024], index: 2, kind: output, shape index: {0}]   ;;  %s1026_s3 = inlined_call_operand.vmem [shape: f32[2,8,128], index: 3, kind: output, shape index: {1}]   ;;  %s1027_s4 = inlined_call_operand.vmem [shape: f32[2,8,128], index: 4, kind: output, shape index: {2}]  }
   0x1   :  { %s873_s17 = smov 0  }
   0x2 LB: > { %s885_s18 = sadd.s32 4294967295, %s841_s17   ;;  %s888_s19 = sadd.s32 1, %s841_s17   ;;  %s841_s17 = sphi %s873_s17, %s1030_s17   ;;  %s837_s16 = sphi %s871_s16, %s1029_s16   ;;  %s833_s15 = sphi %s869_s15, %s1028_s15  }
   0x3   : > { %s19_s20 = ssub.s32 %s841_s17, %s888_s19  ;;  %s22_s21 = sadd.s32 1, %s837_s16 }
   0x4   : > { %p20_p0 = scmp.eq.s32.totalorder %s19_s20, 0  ;;  %p29_p1 = scmp.ne.s32.totalorder %s837_s16, %s833_s15 }
   0x5   : > { %p30_p2 = scmp.eq.s32.totalorder %s841_s17, 0  ;;  %p707_p4 = scmp.ge.s32.totalorder %s841_s17, 2 }
   0x6   : > { %s897_s22 = scalar_select %p20_p0, %s837_s16, %s22_s21  }
   0x7   : > { %p31_p3 = por %p30_p2, %p29_p1  ;;  %157 = sbr.rel (%p707_p4) target bundleno = 30 (0x1e), region = 20 }
   0xc   : > { %160 = sbr.rel (!%p31_p3) target bundleno = 30 (0x1e), region = 24  ;;  %s162_s23 = sand.u32 (%p31_p3), 1, %s837_s16  }
   0xd   : > { %s749_s24 = sshll.u32 (%p31_p3), %s841_s17, 4  ;;  %s750_s25 = smul.u32 (%p31_p3), 224, %s162_s23 }
   0xe   : > { %s905_s28 = scalar_lea.vmem (%p31_p3), %s1023_s0, %s749_s24 }
   0xf   : > { %v180_v0 = vld [vmem:[%s905_s28] sm:$0xff] (%p31_p3)  ;;  %v182_v1 = vld [vmem:[%s905_s28 + $0x8] sm:$0xff] (%p31_p3)  ;;  %s913_s29 = scalar_lea.vmem (%p31_p3), [#allocation2], %s750_s25 }
  0x10   : > { %v184_v2 = vld [vmem:[%s905_s28 + $0x20] sm:$0xff] (%p31_p3)  ;;  %v186_v3 = vld [vmem:[%s905_s28 + $0x28] sm:$0xff] (%p31_p3)  ;;  %181 = vst [vmem:[%s913_s29] sm:$0xff] (%p31_p3), %v180_v0  ;;  %183 = vst [vmem:[%s913_s29 + $0x8] sm:$0xff] (%p31_p3), %v182_v1 }
  0x11   : > { %v188_v4 = vld [vmem:[%s905_s28 + $0x40] sm:$0xff]  ;;  %v190_v5 = vld [vmem:[%s905_s28 + $0x48] sm:$0xff]  ;;  %185 = vst [vmem:[%s913_s29 + $0x10] sm:$0xff] %v184_v2  ;;  %187 = vst [vmem:[%s913_s29 + $0x18] sm:$0xff] %v186_v3 }
  0x12   : > { %189 = vst [vmem:[%s913_s29 + $0x20] sm:$0xff] %v188_v4  ;;  %191 = vst [vmem:[%s913_s29 + $0x28] sm:$0xff] %v190_v5  ;;  %v192_v6 = vld [vmem:[%s905_s28 + $0x60] sm:$0xff]  ;;  %v194_v7 = vld [vmem:[%s905_s28 + $0x68] sm:$0xff] }
  0x13   : > { %v196_v8 = vld [vmem:[%s905_s28 + $0x80] sm:$0xff]  ;;  %193 = vst [vmem:[%s913_s29 + $0x30] sm:$0xff] %v192_v6  ;;  %195 = vst [vmem:[%s913_s29 + $0x38] sm:$0xff] %v194_v7  ;;  %v198_v9 = vld [vmem:[%s905_s28 + $0x88] sm:$0xff] }
  0x14   : > { %197 = vst [vmem:[%s913_s29 + $0x40] sm:$0xff] %v196_v8  ;;  %v200_v10 = vld [vmem:[%s905_s28 + $0xa0] sm:$0xff]  ;;  %v202_v11 = vld [vmem:[%s905_s28 + $0xa8] sm:$0xff]  ;;  %199 = vst [vmem:[%s913_s29 + $0x48] sm:$0xff] %v198_v9 }
  0x15   : > { %201 = vst [vmem:[%s913_s29 + $0x50] sm:$0xff] %v200_v10  ;;  %203 = vst [vmem:[%s913_s29 + $0x58] sm:$0xff] %v202_v11  ;;  %v204_v12 = vld [vmem:[%s905_s28 + $0xc0] sm:$0xff]  ;;  %v206_v13 = vld [vmem:[%s905_s28 + $0xc8] sm:$0xff] }
  0x16   : > { %v208_v14 = vld [vmem:[%s905_s28 + $0xe0] sm:$0xff]  ;;  %205 = vst [vmem:[%s913_s29 + $0x60] sm:$0xff] %v204_v12  ;;  %207 = vst [vmem:[%s913_s29 + $0x68] sm:$0xff] %v206_v13  ;;  %v210_v15 = vld [vmem:[%s905_s28 + $0xe8] sm:$0xff] }
  0x17   : > { %209 = vst [vmem:[%s913_s29 + $0x70] sm:$0xff] %v208_v14  ;;  %v212_v16 = vld [vmem:[%s905_s28 + $0x100] sm:$0xff]  ;;  %v214_v17 = vld [vmem:[%s905_s28 + $0x108] sm:$0xff]  ;;  %211 = vst [vmem:[%s913_s29 + $0x78] sm:$0xff] %v210_v15 }
  0x18   : > { %213 = vst [vmem:[%s913_s29 + $0x80] sm:$0xff] %v212_v16  ;;  %215 = vst [vmem:[%s913_s29 + $0x88] sm:$0xff] %v214_v17  ;;  %v216_v18 = vld [vmem:[%s905_s28 + $0x120] sm:$0xff]  ;;  %v218_v19 = vld [vmem:[%s905_s28 + $0x128] sm:$0xff] }
  0x19   : > { %v220_v20 = vld [vmem:[%s905_s28 + $0x140] sm:$0xff]  ;;  %217 = vst [vmem:[%s913_s29 + $0x90] sm:$0xff] %v216_v18  ;;  %219 = vst [vmem:[%s913_s29 + $0x98] sm:$0xff] %v218_v19  ;;  %v222_v21 = vld [vmem:[%s905_s28 + $0x148] sm:$0xff] }
  0x1a   : > { %221 = vst [vmem:[%s913_s29 + $0xa0] sm:$0xff] %v220_v20  ;;  %v224_v22 = vld [vmem:[%s905_s28 + $0x160] sm:$0xff]  ;;  %v226_v23 = vld [vmem:[%s905_s28 + $0x168] sm:$0xff]  ;;  %223 = vst [vmem:[%s913_s29 + $0xa8] sm:$0xff] %v222_v21 }
  0x1b   : > { %225 = vst [vmem:[%s913_s29 + $0xb0] sm:$0xff] %v224_v22  ;;  %227 = vst [vmem:[%s913_s29 + $0xb8] sm:$0xff] %v226_v23  ;;  %v228_v24 = vld [vmem:[%s905_s28 + $0x180] sm:$0xff]  ;;  %v230_v25 = vld [vmem:[%s905_s28 + $0x188] sm:$0xff] }
  0x1c   : > { %v232_v26 = vld [vmem:[%s905_s28 + $0x1a0] sm:$0xff]  ;;  %229 = vst [vmem:[%s913_s29 + $0xc0] sm:$0xff] %v228_v24  ;;  %231 = vst [vmem:[%s913_s29 + $0xc8] sm:$0xff] %v230_v25  ;;  %v234_v27 = vld [vmem:[%s905_s28 + $0x1a8] sm:$0xff] }
  0x1d   : > { %233 = vst [vmem:[%s913_s29 + $0xd0] sm:$0xff] %v232_v26  ;;  %235 = vst [vmem:[%s913_s29 + $0xd8] sm:$0xff] %v234_v27 }
  0x1e PF: > { %p710_p5 = scmp.ge.s32.totalorder %s841_s17, 1  ;;  %p240_p6 = scmp.lt.s32.totalorder %s841_s17, 3 }
  0x20   : > { %p241_p7 = pnand %p710_p5, %p240_p6 }
  0x21   : > { %s247_s30 = sand.u32 (!%p241_p7), 1, %s833_s15   ;;  %s711_s9 = sshll.u32 (!%p241_p7), %s885_s18, 2 }
  0x22   : > { %244 = sbr.rel (%p241_p7) target bundleno = 413 (0x19d), region = 47  ;;  %p282_p8 = scmp.lt.s32.totalorder (!%p241_p7), %s711_s9, 7 }
  0x23   : > { %s751_s5 = smul.u32 (!%p241_p7), 224, %s247_s30  ;;  %p287_p9 = scmp.lt.s32.totalorder (!%p241_p7), %s885_s18, 1 }
  0x25   : > { %s968_s6 = scalar_lea.vmem (!%p241_p7), [#allocation2], %s751_s5 }
  0x27   : > { %v843_v28 = vmov 0   ;;  %vm465_vm0 = vcmask 1045504   ;;  %v777_v29 = vld [vmem:[%s968_s6 + $0xc4] ss:$16 sps:$4 sm:$0x3f]   ;;  %vm461_vm1 = vcmask 883712  }
  0x28   : > { %510 = vmatprep.mubr.bf16.mxu0 %v843_v28  ;;  %551 = vmatprep.mubr.bf16.mxu1 %v843_v28  ;;  %v779_v30 = vld [vmem:[%s968_s6 + $0xcc] ss:$16 sps:$4 sm:$0x3f]   ;;  %v781_v31 = vld [vmem:[%s968_s6 + $0xc0] ss:$16 sps:$4 sm:$0x3f]  }
  0x29   : > { %743 = vmatprep.subr.msk.bf16.mxu0 %vm465_vm0, %v777_v29  ;;  %v782_v32 = vld [vmem:[%s968_s6 + $0xc8] ss:$16 sps:$4 sm:$0x3f]   ;;  %745 = vmatprep.subr.msk.bf16.mxu1 %vm465_vm0, %v779_v30  ;;  %v783_v33 = vld [vmem:[%s968_s6 + $0xa4] ss:$16 sps:$4 sm:$0xff]   ;;  %v467_v34 = vsel %vm465_vm0, %v781_v31, 0 }
  0x2a   : > { %v473_v35 = vsel %vm465_vm0, %v782_v32, 0  ;;  %v785_v36 = vld [vmem:[%s968_s6 + $0xac] ss:$16 sps:$4 sm:$0xff]   ;;  %481 = vmatpush1.bf16.msra.mxu0 %v467_v34  ;;  %v787_v37 = vld [vmem:[%s968_s6 + $0xa0] ss:$16 sps:$4 sm:$0xff]   ;;  %s1032_s9 = smov (!%p282_p8, %s711_s9), 7 }
  0x2b   : > { %522 = vmatpush1.bf16.msra.mxu1 %v473_v35  ;;  %v788_v38 = vld [vmem:[%s968_s6 + $0xa8] ss:$16 sps:$4 sm:$0xff]   ;;  %482 = vmatprep.subr.bf16.mxu0 %v783_v33  ;;  %v789_v39 = vld [vmem:[%s968_s6 + $0x84] ss:$16 sps:$4 sm:$0xff]   ;;  %v791_v40 = vld [vmem:[%s968_s6 + $0x8c] ss:$16 sps:$4 sm:$0xff]  }
  0x2c   : > { %523 = vmatprep.subr.bf16.mxu1 %v785_v36  ;;  %v793_v41 = vld [vmem:[%s968_s6 + $0x80] ss:$16 sps:$4 sm:$0xff]   ;;  %v794_v42 = vld [vmem:[%s968_s6 + $0x88] ss:$16 sps:$4 sm:$0xff]   ;;  %v795_v43 = vld [vmem:[%s968_s6 + $0x64] ss:$16 sps:$4 sm:$0xff]  }
  0x2d   : > { %v797_v44 = vld [vmem:[%s968_s6 + $0x6c] ss:$16 sps:$4 sm:$0xff]   ;;  %v799_v45 = vld [vmem:[%s968_s6 + $0x60] ss:$16 sps:$4 sm:$0xff]   ;;  %v800_v46 = vld [vmem:[%s968_s6 + $0x68] ss:$16 sps:$4 sm:$0xff]  }
  0x2e   : > { %483 = vmatpush1.bf16.msra.mxu0 %v787_v37  ;;  %v801_v47 = vld [vmem:[%s968_s6 + $0x44] ss:$16 sps:$4 sm:$0xff]   ;;  %v803_v48 = vld [vmem:[%s968_s6 + $0x4c] ss:$16 sps:$4 sm:$0xff]   ;;  %v805_v49 = vld [vmem:[%s968_s6 + $0x40] ss:$16 sps:$4 sm:$0xff]  }
  0x2f   : > { %524 = vmatpush1.bf16.msra.mxu1 %v788_v38  ;;  %484 = vmatprep.subr.bf16.mxu0 %v789_v39  ;;  %v806_v50 = vld [vmem:[%s968_s6 + $0x48] ss:$16 sps:$4 sm:$0xff]   ;;  %v807_v51 = vld [vmem:[%s968_s6 + $0x24] ss:$16 sps:$4 sm:$0xff]   ;;  %v809_v52 = vld [vmem:[%s968_s6 + $0x2c] ss:$16 sps:$4 sm:$0xff]  }
  0x30   : > { %525 = vmatprep.subr.bf16.mxu1 %v791_v40  ;;  %v811_v53 = vld [vmem:[%s968_s6 + $0x20] ss:$16 sps:$4 sm:$0xff]   ;;  %v812_v54 = vld [vmem:[%s968_s6 + $0x28] ss:$16 sps:$4 sm:$0xff]   ;;  %v813_v55 = vld [vmem:[%s968_s6 + $0x4] ss:$16 sps:$4 sm:$0xff]  }
  0x31   : > { %v815_v56 = vld [vmem:[%s968_s6 + $0xc] ss:$16 sps:$4 sm:$0xff]   ;;  %v817_v57 = vld [vmem:[%s968_s6] ss:$16 sps:$4 sm:$0xff]   ;;  %v818_v58 = vld [vmem:[%s968_s6 + $0x8] ss:$16 sps:$4 sm:$0xff]  }
  0x32   : > { %485 = vmatpush1.bf16.msra.mxu0 %v793_v41  ;;  %v296_v59 = vld [vmem:[%s1024_s1] sm:$0xf]  ;;  %s712_s10 = sshll.u32 %s1032_s9, 3  ;;  %s1034_s18 = smov (!%p287_p9, %s885_s18), 1 }
  0x33   : > { %526 = vmatpush1.bf16.msra.mxu1 %v794_v42  ;;  %486 = vmatprep.subr.bf16.mxu0 %v795_v43  ;;  %s285_s13 = scalar_lea.vmem %s1025_s2, %s712_s10  ;;  %s713_s14 = sshll.u32 %s1034_s18, 3 }
  0x34   : > { %527 = vmatprep.subr.bf16.mxu1 %v797_v44  ;;  %s290_s20 = scalar_lea.vmem %s1026_s3, %s713_s14  ;;  %s294_s24 = scalar_lea.vmem %s1027_s4, %s713_s14 }
  0x36   : > { %487 = vmatpush1.bf16.msra.mxu0 %v799_v45 }
  0x37   : > { %528 = vmatpush1.bf16.msra.mxu1 %v800_v46  ;;  %488 = vmatprep.subr.bf16.mxu0 %v801_v47 }
  0x38   : > { %529 = vmatprep.subr.bf16.mxu1 %v803_v48 }
  0x3a   : > { %489 = vmatpush1.bf16.msra.mxu0 %v805_v49 }
  0x3b   : > { %530 = vmatpush1.bf16.msra.mxu1 %v806_v50  ;;  %490 = vmatprep.subr.bf16.mxu0 %v807_v51 }
  0x3c   : > { %531 = vmatprep.subr.bf16.mxu1 %v809_v52 }
  0x3e   : > { %491 = vmatpush1.bf16.msra.mxu0 %v811_v53 }
  0x3f   : > { %532 = vmatpush1.bf16.msra.mxu1 %v812_v54  ;;  %492 = vmatprep.subr.bf16.mxu0 %v813_v55 }
  0x40   : > { %533 = vmatprep.subr.bf16.mxu1 %v815_v56 }
  0x42   : > { %493 = vmatpush1.bf16.msra.mxu0 %v817_v57 }
  0x43   : > { %534 = vmatpush1.bf16.msra.mxu1 %v818_v58 }
  0x45   : > { %744 = vmatmul.mubr.msk.bf16.vlgmr.msra.gmra.mxu0 %vm461_vm1, %v296_v59 }
  0x46   : > { %746 = vmatmul.mubr.msk.bf16.vlgmr.msra.gmra.mxu1 %vm461_vm1, %v296_v59 }
 0x105   : > { %v512_v60 = vpop.f32.mrf.mxu0 }
 0x106   : > { %v553_v61 = vpop.f32.mrf.mxu1  ;;  %560 = vst [vmem:[%s285_s13] sm:$0xff] %v512_v60  ;;  %v569_v0 = vmul.f32 %v512_v60, %v512_v60 }
 0x107   : > { %v514_v62 = vpop.f32.mrf.mxu0  ;;  %v571_v1 = vmul.f32 %v553_v61, %v553_v61  ;;  %562 = vst [vmem:[%s285_s13 + $0x10] sm:$0xff] %v553_v61 }
 0x108   : > { %v555_v63 = vpop.f32.mrf.mxu1  ;;  %561 = vst [vmem:[%s285_s13 + $0x8] sm:$0xff] %v514_v62  ;;  %v564_v2 = vadd.f32 %v514_v62, %v512_v60  ;;  %v570_v3 = vmul.f32 %v514_v62, %v514_v62 }
 0x109   : > { %v516_v4 = vpop.f32.mrf.mxu0  ;;  %563 = vst [vmem:[%s285_s13 + $0x18] sm:$0xff] %v555_v63  ;;  %v572_v12 = vmul.f32 %v555_v63, %v555_v63 }
 0x10a   : > { %v557_v5 = vpop.f32.mrf.mxu1  ;;  %v565_v6 = vadd.f32 %v564_v2, %v553_v61  ;;  %v573_v7 = vadd.f32 %v570_v3, %v569_v0 }
 0x10b   : > { %v517_v8 = vpop.f32.mrf.mxu0 }
 0x10c   : > { %v558_v9 = vpop.f32.mrf.mxu1  ;;  %v566_v10 = vadd.f32 %v565_v6, %v555_v63  ;;  %v574_v11 = vadd.f32 %v573_v7, %v571_v1 }
 0x10e   : > { %567 = vadd.xlane.f32.xlu0 %v566_v10  ;;  %v575_v13 = vadd.f32 %v574_v11, %v572_v12 }
 0x112   : > { %576 = vadd.xlane.f32.xlu0 %v575_v13 }
 0x197   : > { %v568_v14 = vpop.xlane.xlu0 %567 }
 0x198   : > { %578 = vst [vmem:[%s290_s20] sm:$0xff] %v568_v14 }
 0x19b   : > { %v577_v15 = vpop.xlane.xlu0 %576 }
 0x19c   : > { %579 = vst [vmem:[%s294_s24] sm:$0xff] %v577_v15 }
 0x19d PF: > { %p12_p10 = scmp.ge.s32.totalorder %s888_s19, 4   ;;  %s1028_s15 = smov %s837_s16 }
 0x19e   : > { %s1029_s16 = smov %s897_s22  ;;  %s1030_s17 = smov %s888_s19 }
 0x19f   :  { %14 = sbr.rel (!%p12_p10) target bundleno = 2 (0x2), region = 110 }

// kernel: contraction_block_forward.12
= control target key start
LH: loop header
LB: loop body
LE: loop exit
PB: predicated region body
PF: predicated region fallthrough
CT: control target
= control target key end

     0   :  { %s1157_s15 = smov 0   ;;  %s1159_s16 = smov 0   ;;  %s1395_s0 = inlined_call_operand.vmem [shape: bf16[216,1024], index: 0, kind: input, shape index: {}]   ;;  %s1396_s1 = inlined_call_operand.vmem [shape: bf16[8,216], index: 1, kind: input, shape index: {}]   ;;  %s1397_s2 = inlined_call_operand.vmem [shape: f32[8,1024], index: 2, kind: output, shape index: {0}]   ;;  %s1398_s3 = inlined_call_operand.vmem [shape: f32[2,8,128], index: 3, kind: output, shape index: {1}]   ;;  %s1399_s4 = inlined_call_operand.vmem [shape: f32[2,8,128], index: 4, kind: output, shape index: {2}]  }
   0x1   :  { %s1161_s17 = smov 0  }
   0x2 LB: > { %s1173_s18 = sadd.s32 4294967295, %s1130_s17   ;;  %s1176_s19 = sadd.s32 1, %s1130_s17   ;;  %s1130_s17 = sphi %s1161_s17, %s1402_s17   ;;  %s1126_s16 = sphi %s1159_s16, %s1401_s16   ;;  %s1122_s15 = sphi %s1157_s15, %s1400_s15  }
   0x3   : > { %s19_s20 = ssub.s32 %s1130_s17, %s1176_s19  ;;  %s22_s21 = sadd.s32 1, %s1126_s16 }
   0x4   : > { %p20_p0 = scmp.eq.s32.totalorder %s19_s20, 0  ;;  %p29_p1 = scmp.ne.s32.totalorder %s1126_s16, %s1122_s15 }
   0x5   : > { %p30_p2 = scmp.eq.s32.totalorder %s1130_s17, 0  ;;  %p925_p4 = scmp.ge.s32.totalorder %s1130_s17, 2 }
   0x6   : > { %s1185_s22 = scalar_select %p20_p0, %s1126_s16, %s22_s21  }
   0x7   : > { %p31_p3 = por %p30_p2, %p29_p1  ;;  %157 = sbr.rel (%p925_p4) target bundleno = 43 (0x2b), region = 20 }
   0xc   : > { %160 = sbr.rel (!%p31_p3) target bundleno = 43 (0x2b), region = 24  ;;  %s162_s23 = sand.u32 (%p31_p3), 1, %s1126_s16  }
   0xd   : > { %s997_s24 = sshll.u32 (%p31_p3), %s1130_s17, 4  ;;  %s998_s25 = smul.u32 (%p31_p3), 432, %s162_s23 }
   0xe   : > { %s1193_s28 = scalar_lea.vmem (%p31_p3), %s1395_s0, %s997_s24 }
   0xf   : > { %v180_v0 = vld [vmem:[%s1193_s28] sm:$0xff] (%p31_p3)  ;;  %v182_v1 = vld [vmem:[%s1193_s28 + $0x8] sm:$0xff] (%p31_p3)  ;;  %s1201_s29 = scalar_lea.vmem (%p31_p3), [#allocation2], %s998_s25 }
  0x10   : > { %v184_v2 = vld [vmem:[%s1193_s28 + $0x20] sm:$0xff] (%p31_p3)  ;;  %v186_v3 = vld [vmem:[%s1193_s28 + $0x28] sm:$0xff] (%p31_p3)  ;;  %181 = vst [vmem:[%s1201_s29] sm:$0xff] (%p31_p3), %v180_v0  ;;  %183 = vst [vmem:[%s1201_s29 + $0x8] sm:$0xff] (%p31_p3), %v182_v1 }
  0x11   : > { %v188_v4 = vld [vmem:[%s1193_s28 + $0x40] sm:$0xff]  ;;  %v190_v5 = vld [vmem:[%s1193_s28 + $0x48] sm:$0xff]  ;;  %185 = vst [vmem:[%s1201_s29 + $0x10] sm:$0xff] %v184_v2  ;;  %187 = vst [vmem:[%s1201_s29 + $0x18] sm:$0xff] %v186_v3 }
  0x12   : > { %189 = vst [vmem:[%s1201_s29 + $0x20] sm:$0xff] %v188_v4  ;;  %191 = vst [vmem:[%s1201_s29 + $0x28] sm:$0xff] %v190_v5  ;;  %v192_v6 = vld [vmem:[%s1193_s28 + $0x60] sm:$0xff]  ;;  %v194_v7 = vld [vmem:[%s1193_s28 + $0x68] sm:$0xff] }
  0x13   : > { %v196_v8 = vld [vmem:[%s1193_s28 + $0x80] sm:$0xff]  ;;  %193 = vst [vmem:[%s1201_s29 + $0x30] sm:$0xff] %v192_v6  ;;  %195 = vst [vmem:[%s1201_s29 + $0x38] sm:$0xff] %v194_v7  ;;  %v198_v9 = vld [vmem:[%s1193_s28 + $0x88] sm:$0xff] }
  0x14   : > { %197 = vst [vmem:[%s1201_s29 + $0x40] sm:$0xff] %v196_v8  ;;  %v200_v10 = vld [vmem:[%s1193_s28 + $0xa0] sm:$0xff]  ;;  %v202_v11 = vld [vmem:[%s1193_s28 + $0xa8] sm:$0xff]  ;;  %199 = vst [vmem:[%s1201_s29 + $0x48] sm:$0xff] %v198_v9 }
  0x15   : > { %201 = vst [vmem:[%s1201_s29 + $0x50] sm:$0xff] %v200_v10  ;;  %203 = vst [vmem:[%s1201_s29 + $0x58] sm:$0xff] %v202_v11  ;;  %v204_v12 = vld [vmem:[%s1193_s28 + $0xc0] sm:$0xff]  ;;  %v206_v13 = vld [vmem:[%s1193_s28 + $0xc8] sm:$0xff] }
  0x16   : > { %v208_v14 = vld [vmem:[%s1193_s28 + $0xe0] sm:$0xff]  ;;  %205 = vst [vmem:[%s1201_s29 + $0x60] sm:$0xff] %v204_v12  ;;  %207 = vst [vmem:[%s1201_s29 + $0x68] sm:$0xff] %v206_v13  ;;  %v210_v15 = vld [vmem:[%s1193_s28 + $0xe8] sm:$0xff] }
  0x17   : > { %209 = vst [vmem:[%s1201_s29 + $0x70] sm:$0xff] %v208_v14  ;;  %v212_v16 = vld [vmem:[%s1193_s28 + $0x100] sm:$0xff]  ;;  %v214_v17 = vld [vmem:[%s1193_s28 + $0x108] sm:$0xff]  ;;  %211 = vst [vmem:[%s1201_s29 + $0x78] sm:$0xff] %v210_v15 }
  0x18   : > { %213 = vst [vmem:[%s1201_s29 + $0x80] sm:$0xff] %v212_v16  ;;  %215 = vst [vmem:[%s1201_s29 + $0x88] sm:$0xff] %v214_v17  ;;  %v216_v18 = vld [vmem:[%s1193_s28 + $0x120] sm:$0xff]  ;;  %v218_v19 = vld [vmem:[%s1193_s28 + $0x128] sm:$0xff] }
  0x19   : > { %v220_v20 = vld [vmem:[%s1193_s28 + $0x140] sm:$0xff]  ;;  %217 = vst [vmem:[%s1201_s29 + $0x90] sm:$0xff] %v216_v18  ;;  %219 = vst [vmem:[%s1201_s29 + $0x98] sm:$0xff] %v218_v19  ;;  %v222_v21 = vld [vmem:[%s1193_s28 + $0x148] sm:$0xff] }
  0x1a   : > { %221 = vst [vmem:[%s1201_s29 + $0xa0] sm:$0xff] %v220_v20  ;;  %v224_v22 = vld [vmem:[%s1193_s28 + $0x160] sm:$0xff]  ;;  %v226_v23 = vld [vmem:[%s1193_s28 + $0x168] sm:$0xff]  ;;  %223 = vst [vmem:[%s1201_s29 + $0xa8] sm:$0xff] %v222_v21 }
  0x1b   : > { %225 = vst [vmem:[%s1201_s29 + $0xb0] sm:$0xff] %v224_v22  ;;  %227 = vst [vmem:[%s1201_s29 + $0xb8] sm:$0xff] %v226_v23  ;;  %v228_v24 = vld [vmem:[%s1193_s28 + $0x180] sm:$0xff]  ;;  %v230_v25 = vld [vmem:[%s1193_s28 + $0x188] sm:$0xff] }
  0x1c   : > { %v232_v26 = vld [vmem:[%s1193_s28 + $0x1a0] sm:$0xff]  ;;  %229 = vst [vmem:[%s1201_s29 + $0xc0] sm:$0xff] %v228_v24  ;;  %231 = vst [vmem:[%s1201_s29 + $0xc8] sm:$0xff] %v230_v25  ;;  %v234_v27 = vld [vmem:[%s1193_s28 + $0x1a8] sm:$0xff] }
  0x1d   : > { %233 = vst [vmem:[%s1201_s29 + $0xd0] sm:$0xff] %v232_v26  ;;  %v236_v28 = vld [vmem:[%s1193_s28 + $0x1c0] sm:$0xff]  ;;  %v238_v29 = vld [vmem:[%s1193_s28 + $0x1c8] sm:$0xff]  ;;  %235 = vst [vmem:[%s1201_s29 + $0xd8] sm:$0xff] %v234_v27 }
  0x1e   : > { %237 = vst [vmem:[%s1201_s29 + $0xe0] sm:$0xff] %v236_v28  ;;  %239 = vst [vmem:[%s1201_s29 + $0xe8] sm:$0xff] %v238_v29  ;;  %v240_v30 = vld [vmem:[%s1193_s28 + $0x1e0] sm:$0xff]  ;;  %v242_v31 = vld [vmem:[%s1193_s28 + $0x1e8] sm:$0xff] }
  0x1f   : > { %v244_v32 = vld [vmem:[%s1193_s28 + $0x200] sm:$0xff]  ;;  %241 = vst [vmem:[%s1201_s29 + $0xf0] sm:$0xff] %v240_v30  ;;  %243 = vst [vmem:[%s1201_s29 + $0xf8] sm:$0xff] %v242_v31  ;;  %v246_v33 = vld [vmem:[%s1193_s28 + $0x208] sm:$0xff] }
  0x20   : > { %245 = vst [vmem:[%s1201_s29 + $0x100] sm:$0xff] %v244_v32  ;;  %v248_v34 = vld [vmem:[%s1193_s28 + $0x220] sm:$0xff]  ;;  %v250_v35 = vld [vmem:[%s1193_s28 + $0x228] sm:$0xff]  ;;  %247 = vst [vmem:[%s1201_s29 + $0x108] sm:$0xff] %v246_v33 }
  0x21   : > { %249 = vst [vmem:[%s1201_s29 + $0x110] sm:$0xff] %v248_v34  ;;  %251 = vst [vmem:[%s1201_s29 + $0x118] sm:$0xff] %v250_v35  ;;  %v252_v36 = vld [vmem:[%s1193_s28 + $0x240] sm:$0xff]  ;;  %v254_v37 = vld [vmem:[%s1193_s28 + $0x248] sm:$0xff] }
  0x22   : > { %v256_v38 = vld [vmem:[%s1193_s28 + $0x260] sm:$0xff]  ;;  %253 = vst [vmem:[%s1201_s29 + $0x120] sm:$0xff] %v252_v36  ;;  %255 = vst [vmem:[%s1201_s29 + $0x128] sm:$0xff] %v254_v37  ;;  %v258_v39 = vld [vmem:[%s1193_s28 + $0x268] sm:$0xff] }
  0x23   : > { %257 = vst [vmem:[%s1201_s29 + $0x130] sm:$0xff] %v256_v38  ;;  %v260_v40 = vld [vmem:[%s1193_s28 + $0x280] sm:$0xff]  ;;  %v262_v41 = vld [vmem:[%s1193_s28 + $0x288] sm:$0xff]  ;;  %259 = vst [vmem:[%s1201_s29 + $0x138] sm:$0xff] %v258_v39 }
  0x24   : > { %261 = vst [vmem:[%s1201_s29 + $0x140] sm:$0xff] %v260_v40  ;;  %263 = vst [vmem:[%s1201_s29 + $0x148] sm:$0xff] %v262_v41  ;;  %v264_v42 = vld [vmem:[%s1193_s28 + $0x2a0] sm:$0xff]  ;;  %v266_v43 = vld [vmem:[%s1193_s28 + $0x2a8] sm:$0xff] }
  0x25   : > { %v268_v44 = vld [vmem:[%s1193_s28 + $0x2c0] sm:$0xff]  ;;  %265 = vst [vmem:[%s1201_s29 + $0x150] sm:$0xff] %v264_v42  ;;  %267 = vst [vmem:[%s1201_s29 + $0x158] sm:$0xff] %v266_v43  ;;  %v270_v45 = vld [vmem:[%s1193_s28 + $0x2c8] sm:$0xff] }
  0x26   : > { %269 = vst [vmem:[%s1201_s29 + $0x160] sm:$0xff] %v268_v44  ;;  %v272_v46 = vld [vmem:[%s1193_s28 + $0x2e0] sm:$0xff]  ;;  %v274_v47 = vld [vmem:[%s1193_s28 + $0x2e8] sm:$0xff]  ;;  %271 = vst [vmem:[%s1201_s29 + $0x168] sm:$0xff] %v270_v45 }
  0x27   : > { %273 = vst [vmem:[%s1201_s29 + $0x170] sm:$0xff] %v272_v46  ;;  %275 = vst [vmem:[%s1201_s29 + $0x178] sm:$0xff] %v274_v47  ;;  %v276_v48 = vld [vmem:[%s1193_s28 + $0x300] sm:$0xff]  ;;  %v278_v49 = vld [vmem:[%s1193_s28 + $0x308] sm:$0xff] }
  0x28   : > { %v280_v50 = vld [vmem:[%s1193_s28 + $0x320] sm:$0xff]  ;;  %277 = vst [vmem:[%s1201_s29 + $0x180] sm:$0xff] %v276_v48  ;;  %279 = vst [vmem:[%s1201_s29 + $0x188] sm:$0xff] %v278_v49  ;;  %v282_v51 = vld [vmem:[%s1193_s28 + $0x328] sm:$0xff] }
  0x29   : > { %281 = vst [vmem:[%s1201_s29 + $0x190] sm:$0xff] %v280_v50  ;;  %v284_v52 = vld [vmem:[%s1193_s28 + $0x340] sm:$0xff]  ;;  %v286_v53 = vld [vmem:[%s1193_s28 + $0x348] sm:$0xff]  ;;  %283 = vst [vmem:[%s1201_s29 + $0x198] sm:$0xff] %v282_v51 }
  0x2a   : > { %285 = vst [vmem:[%s1201_s29 + $0x1a0] sm:$0xff] %v284_v52  ;;  %287 = vst [vmem:[%s1201_s29 + $0x1a8] sm:$0xff] %v286_v53 }
  0x2b PF: > { %p928_p5 = scmp.ge.s32.totalorder %s1130_s17, 1  ;;  %p292_p6 = scmp.lt.s32.totalorder %s1130_s17, 3 }
  0x2d   : > { %p293_p7 = pnand %p928_p5, %p292_p6 }
  0x2e   : > { %s299_s30 = sand.u32 (!%p293_p7), 1, %s1122_s15   ;;  %s929_s9 = sshll.u32 (!%p293_p7), %s1173_s18, 2 }
  0x2f   : > { %296 = sbr.rel (%p293_p7) target bundleno = 455 (0x1c7), region = 47  ;;  %p334_p8 = scmp.lt.s32.totalorder (!%p293_p7), %s929_s9, 7 }
  0x30   : > { %s999_s7 = smul.u32 (!%p293_p7), 432, %s299_s30  ;;  %p339_p9 = scmp.lt.s32.totalorder (!%p293_p7), %s1173_s18, 1 }
  0x32   : > { %s1315_s8 = scalar_lea.vmem (!%p293_p7), [#allocation2], %s999_s7 }
  0x34   : > { %v1311_v54 = vld [vmem:[%s1396_s1] sm:$0xff]  ;;  %vm679_vm0 = vcmask 719872   ;;  %v1026_v57 = vld [vmem:[%s1315_s8 + $0xec] ss:$16 sps:$4 sm:$0xff]   ;;  %v1029_v59 = vld [vmem:[%s1315_s8 + $0xe8] ss:$16 sps:$4 sm:$0xff]  }
  0x35   : > { %v934_v55 = vcombine.high %v1311_v54, %v1311_v54  ;;  %v1024_v56 = vld [vmem:[%s1315_s8 + $0xe4] ss:$16 sps:$4 sm:$0xff]   ;;  %v1028_v58 = vld [vmem:[%s1315_s8 + $0xe0] ss:$16 sps:$4 sm:$0xff]   ;;  %737 = vmatprep.subr.bf16.mxu1 %v1026_v57  ;;  %v1032_v61 = vld [vmem:[%s1315_s8 + $0xcc] ss:$16 sps:$4 sm:$0xff]   ;;  %v933_v52 = vcombine.low %v1311_v54, %v1311_v54 }
  0x36   : > { %696 = vmatprep.subr.bf16.mxu0 %v1024_v56  ;;  %v1030_v60 = vld [vmem:[%s1315_s8 + $0xc4] ss:$16 sps:$4 sm:$0xff]   ;;  %738 = vmatpush1.bf16.msra.mxu1 %v1029_v59  ;;  %v1034_v62 = vld [vmem:[%s1315_s8 + $0xc0] ss:$16 sps:$4 sm:$0xff]   ;;  %v1035_v63 = vld [vmem:[%s1315_s8 + $0xc8] ss:$16 sps:$4 sm:$0xff]  }
  0x37   : > { %992 = vmatprep.mubr.msk.bf16.mxu0 %vm679_vm0, %v934_v55  ;;  %994 = vmatprep.mubr.msk.bf16.mxu1 %vm679_vm0, %v934_v55  ;;  %v1036_v0 = vld [vmem:[%s1315_s8 + $0xa4] ss:$16 sps:$4 sm:$0xff]   ;;  %v1038_v1 = vld [vmem:[%s1315_s8 + $0xac] ss:$16 sps:$4 sm:$0xff]   ;;  %v1040_v2 = vld [vmem:[%s1315_s8 + $0xa0] ss:$16 sps:$4 sm:$0xff]  }
  0x38   : > { %697 = vmatpush1.bf16.msra.mxu0 %v1028_v58  ;;  %739 = vmatprep.subr.bf16.mxu1 %v1032_v61  ;;  %v1041_v3 = vld [vmem:[%s1315_s8 + $0xa8] ss:$16 sps:$4 sm:$0xff]   ;;  %v1042_v4 = vld [vmem:[%s1315_s8 + $0x84] ss:$16 sps:$4 sm:$0xff]   ;;  %v1044_v5 = vld [vmem:[%s1315_s8 + $0x8c] ss:$16 sps:$4 sm:$0xff]  }
  0x39   : > { %698 = vmatprep.subr.bf16.mxu0 %v1030_v60  ;;  %v1046_v6 = vld [vmem:[%s1315_s8 + $0x80] ss:$16 sps:$4 sm:$0xff]   ;;  %v1047_v7 = vld [vmem:[%s1315_s8 + $0x88] ss:$16 sps:$4 sm:$0xff]   ;;  %v1048_v8 = vld [vmem:[%s1315_s8 + $0x64] ss:$16 sps:$4 sm:$0xff]  }
  0x3a   : > { %740 = vmatpush1.bf16.msra.mxu1 %v1035_v63  ;;  %v1050_v9 = vld [vmem:[%s1315_s8 + $0x6c] ss:$16 sps:$4 sm:$0xff]   ;;  %v1052_v10 = vld [vmem:[%s1315_s8 + $0x60] ss:$16 sps:$4 sm:$0xff]   ;;  %v1053_v11 = vld [vmem:[%s1315_s8 + $0x68] ss:$16 sps:$4 sm:$0xff]  }
  0x3b   : > { %741 = vmatprep.subr.bf16.mxu1 %v1038_v1  ;;  %v1054_v12 = vld [vmem:[%s1315_s8 + $0x44] ss:$16 sps:$4 sm:$0xff]   ;;  %v1056_v13 = vld [vmem:[%s1315_s8 + $0x4c] ss:$16 sps:$4 sm:$0xff]   ;;  %v1058_v14 = vld [vmem:[%s1315_s8 + $0x40] ss:$16 sps:$4 sm:$0xff]  }
  0x3c   : > { %699 = vmatpush1.bf16.msra.mxu0 %v1034_v62  ;;  %v1059_v15 = vld [vmem:[%s1315_s8 + $0x48] ss:$16 sps:$4 sm:$0xff]   ;;  %v1060_v16 = vld [vmem:[%s1315_s8 + $0x24] ss:$16 sps:$4 sm:$0xff]   ;;  %v1062_v17 = vld [vmem:[%s1315_s8 + $0x2c] ss:$16 sps:$4 sm:$0xff]  }
  0x3d   : > { %700 = vmatprep.subr.bf16.mxu0 %v1036_v0  ;;  %v1064_v18 = vld [vmem:[%s1315_s8 + $0x20] ss:$16 sps:$4 sm:$0xff]   ;;  %v1065_v19 = vld [vmem:[%s1315_s8 + $0x28] ss:$16 sps:$4 sm:$0xff]   ;;  %v1066_v20 = vld [vmem:[%s1315_s8 + $0x4] ss:$16 sps:$4 sm:$0xff]  }
  0x3e   : > { %742 = vmatpush1.bf16.msra.mxu1 %v1041_v3  ;;  %v1068_v21 = vld [vmem:[%s1315_s8 + $0xc] ss:$16 sps:$4 sm:$0xff]   ;;  %v401_v22 = vld [vmem:[%s1315_s8 + $0x1a0] sm:$0xff]  ;;  %v1071_v25 = vld [vmem:[%s1315_s8 + $0x8] ss:$16 sps:$4 sm:$0xff]   ;;  %vm683_vm1 = vcmask 1043456  }
  0x3f   : > { %743 = vmatprep.subr.bf16.mxu1 %v1044_v5  ;;  %v402_v23 = vld [vmem:[%s1315_s8 + $0x1a8] sm:$0xff]  ;;  %v1070_v24 = vld [vmem:[%s1315_s8] ss:$16 sps:$4 sm:$0xff]   ;;  %v988_v26 = vcombine.high %v401_v22, %v401_v22  ;;  %v987_v28 = vcombine.low %v401_v22, %v401_v22  ;;  %v1076_v30 = vld [vmem:[%s1315_s8 + $0x184] ss:$16 sps:$4 sm:$0xff]   ;;  %s1404_s9 = smov (!%p334_p8, %s929_s9), 7 }
  0x40   : > { %701 = vmatpush1.bf16.msra.mxu0 %v1040_v2  ;;  %v990_v27 = vcombine.high %v402_v23, %v402_v23  ;;  %v989_v29 = vcombine.low %v402_v23, %v402_v23  ;;  %v1078_v33 = vld [vmem:[%s1315_s8 + $0x18c] ss:$16 sps:$4 sm:$0xff]   ;;  %v1080_v34 = vld [vmem:[%s1315_s8 + $0x180] ss:$16 sps:$4 sm:$0xff]   ;;  %v1081_v35 = vld [vmem:[%s1315_s8 + $0x188] ss:$16 sps:$4 sm:$0xff]  }
  0x41   : > { %702 = vmatprep.subr.bf16.mxu0 %v1042_v4  ;;  %v685_v31 = vsel %vm683_vm1, %v987_v28, 0  ;;  %v1082_v36 = vld [vmem:[%s1315_s8 + $0x164] ss:$16 sps:$4 sm:$0xff]   ;;  %v1084_v37 = vld [vmem:[%s1315_s8 + $0x16c] ss:$16 sps:$4 sm:$0xff]   ;;  %s930_s10 = sshll.u32 %s1404_s9, 3 }
  0x42   : > { %744 = vmatpush1.bf16.msra.mxu1 %v1047_v7  ;;  %v691_v32 = vsel %vm683_vm1, %v989_v29, 0  ;;  %v1086_v38 = vld [vmem:[%s1315_s8 + $0x160] ss:$16 sps:$4 sm:$0xff]   ;;  %v1087_v39 = vld [vmem:[%s1315_s8 + $0x168] ss:$16 sps:$4 sm:$0xff]   ;;  %s337_s13 = scalar_lea.vmem %s1397_s2, %s930_s10  ;;  %s1406_s18 = smov (!%p339_p9, %s1173_s18), 1 }
  0x43   : > { %745 = vmatprep.subr.bf16.mxu1 %v1050_v9  ;;  %v1088_v40 = vld [vmem:[%s1315_s8 + $0x144] ss:$16 sps:$4 sm:$0xff]   ;;  %v1090_v41 = vld [vmem:[%s1315_s8 + $0x14c] ss:$16 sps:$4 sm:$0xff]   ;;  %v1092_v42 = vld [vmem:[%s1315_s8 + $0x140] ss:$16 sps:$4 sm:$0xff]  }
  0x44   : > { %703 = vmatpush1.bf16.msra.mxu0 %v1046_v6  ;;  %v1093_v43 = vld [vmem:[%s1315_s8 + $0x148] ss:$16 sps:$4 sm:$0xff]   ;;  %v1094_v44 = vld [vmem:[%s1315_s8 + $0x124] ss:$16 sps:$4 sm:$0xff]   ;;  %v1096_v45 = vld [vmem:[%s1315_s8 + $0x12c] ss:$16 sps:$4 sm:$0xff]  }
  0x45   : > { %704 = vmatprep.subr.bf16.mxu0 %v1048_v8  ;;  %v1098_v46 = vld [vmem:[%s1315_s8 + $0x120] ss:$16 sps:$4 sm:$0xff]   ;;  %v1099_v47 = vld [vmem:[%s1315_s8 + $0x128] ss:$16 sps:$4 sm:$0xff]   ;;  %v1100_v48 = vld [vmem:[%s1315_s8 + $0x104] ss:$16 sps:$4 sm:$0xff]  }
  0x46   : > { %746 = vmatpush1.bf16.msra.mxu1 %v1053_v11  ;;  %v1102_v49 = vld [vmem:[%s1315_s8 + $0x10c] ss:$16 sps:$4 sm:$0xff]   ;;  %v1104_v50 = vld [vmem:[%s1315_s8 + $0x100] ss:$16 sps:$4 sm:$0xff]   ;;  %v1105_v51 = vld [vmem:[%s1315_s8 + $0x108] ss:$16 sps:$4 sm:$0xff]  }
  0x47   : > { %747 = vmatprep.subr.bf16.mxu1 %v1056_v13  ;;  %s931_s14 = sshll.u32 %s1406_s18, 3 }
  0x48   : > { %705 = vmatpush1.bf16.msra.mxu0 %v1052_v10  ;;  %s342_s20 = scalar_lea.vmem %s1398_s3, %s931_s14  ;;  %s346_s24 = scalar_lea.vmem %s1399_s4, %s931_s14 }
  0x49   : > { %706 = vmatprep.subr.bf16.mxu0 %v1054_v12 }
  0x4a   : > { %748 = vmatpush1.bf16.msra.mxu1 %v1059_v15 }
  0x4b   : > { %749 = vmatprep.subr.bf16.mxu1 %v1062_v17 }
  0x4c   : > { %707 = vmatpush1.bf16.msra.mxu0 %v1058_v14 }
  0x4d   : > { %708 = vmatprep.subr.bf16.mxu0 %v1060_v16 }
  0x4e   : > { %750 = vmatpush1.bf16.msra.mxu1 %v1065_v19 }
  0x4f   : > { %751 = vmatprep.subr.bf16.mxu1 %v1068_v21 }
  0x50   : > { %709 = vmatpush1.bf16.msra.mxu0 %v1064_v18 }
  0x51   : > { %710 = vmatprep.subr.bf16.mxu0 %v1066_v20 }
  0x52   : > { %752 = vmatpush1.bf16.msra.mxu1 %v1071_v25 }
  0x53   : > { %993 = vmatprep.subr.msk.bf16.mxu1 %vm683_vm1, %v990_v27 }
  0x54   : > { %711 = vmatpush1.bf16.msra.mxu0 %v1070_v24 }
  0x55   : > { %991 = vmatprep.subr.msk.bf16.mxu0 %vm683_vm1, %v988_v26 }
  0x56   : > { %758 = vmatpush2.bf16.msra.mxu1 %v691_v32 }
  0x57   : > { %759 = vmatprep.subr.bf16.mxu1 %v1078_v33 }
  0x58   : > { %717 = vmatpush2.bf16.msra.mxu0 %v685_v31 }
  0x59   : > { %718 = vmatprep.subr.bf16.mxu0 %v1076_v30 }
  0x5a   : > { %760 = vmatpush2.bf16.msra.mxu1 %v1081_v35 }
  0x5b   : > { %761 = vmatprep.subr.bf16.mxu1 %v1084_v37 }
  0x5c   : > { %719 = vmatpush2.bf16.msra.mxu0 %v1080_v34 }
  0x5d   : > { %720 = vmatprep.subr.bf16.mxu0 %v1082_v36 }
  0x5e   : > { %762 = vmatpush2.bf16.msra.mxu1 %v1087_v39 }
  0x5f   : > { %763 = vmatprep.subr.bf16.mxu1 %v1090_v41 }
  0x60   : > { %721 = vmatpush2.bf16.msra.mxu0 %v1086_v38 }
  0x61   : > { %722 = vmatprep.subr.bf16.mxu0 %v1088_v40 }
  0x62   : > { %764 = vmatpush2.bf16.msra.mxu1 %v1093_v43 }
  0x63   : > { %765 = vmatprep.subr.bf16.mxu1 %v1096_v45 }
  0x64   : > { %723 = vmatpush2.bf16.msra.mxu0 %v1092_v42 }
  0x65   : > { %724 = vmatprep.subr.bf16.mxu0 %v1094_v44 }
  0x66   : > { %766 = vmatpush2.bf16.msra.mxu1 %v1099_v47 }
  0x67   : > { %767 = vmatprep.subr.bf16.mxu1 %v1102_v49 }
  0x68   : > { %725 = vmatpush2.bf16.msra.mxu0 %v1098_v46 }
  0x69   : > { %726 = vmatprep.subr.bf16.mxu0 %v1100_v48 }
  0x6a   : > { %768 = vmatpush2.bf16.msra.mxu1 %v1105_v51 }
  0x6c   : > { %727 = vmatpush2.bf16.msra.mxu0 %v1104_v50 }
  0x6d   : > { %770 = vmatmul.mubr.bf16.vlgmr.msra.gmra.mxu1 %v933_v52 }
  0x6f   : > { %729 = vmatmul.mubr.bf16.vlgmr.msra.gmra.mxu0 %v933_v52 }
 0x12d   : > { %v771_v55 = vpop.f32.mrf.mxu1 }
 0x12e   : > { %v789_v59 = vmul.f32 %v771_v55, %v771_v55  ;;  %780 = vst [vmem:[%s337_s13 + $0x10] sm:$0xff] %v771_v55 }
 0x12f   : > { %v730_v53 = vpop.f32.mrf.mxu0  ;;  %v773_v57 = vpop.f32.mrf.mxu1 }
 0x130   : > { %778 = vst [vmem:[%s337_s13] sm:$0xff] %v730_v53  ;;  %v787_v58 = vmul.f32 %v730_v53, %v730_v53  ;;  %781 = vst [vmem:[%s337_s13 + $0x18] sm:$0xff] %v773_v57  ;;  %v790_v5 = vmul.f32 %v773_v57, %v773_v57 }
 0x131   : > { %v732_v56 = vpop.f32.mrf.mxu0  ;;  %v775_v62 = vpop.f32.mrf.mxu1 }
 0x132   : > { %779 = vst [vmem:[%s337_s13 + $0x8] sm:$0xff] %v732_v56  ;;  %v782_v54 = vadd.f32 %v732_v56, %v730_v53  ;;  %v788_v60 = vmul.f32 %v732_v56, %v732_v56 }
 0x133   : > { %v734_v61 = vpop.f32.mrf.mxu0  ;;  %v776_v2 = vpop.f32.mrf.mxu1 }
 0x134   : > { %v783_v63 = vadd.f32 %v782_v54, %v771_v55  ;;  %v791_v0 = vadd.f32 %v788_v60, %v787_v58 }
 0x135   : > { %v735_v1 = vpop.f32.mrf.mxu0 }
 0x136   : > { %v784_v3 = vadd.f32 %v783_v63, %v773_v57  ;;  %v792_v4 = vadd.f32 %v791_v0, %v789_v59 }
 0x138   : > { %785 = vadd.xlane.f32.xlu0 %v784_v3  ;;  %v793_v6 = vadd.f32 %v792_v4, %v790_v5 }
 0x13c   : > { %794 = vadd.xlane.f32.xlu0 %v793_v6 }
 0x1c1   : > { %v786_v7 = vpop.xlane.xlu0 %785 }
 0x1c2   : > { %796 = vst [vmem:[%s342_s20] sm:$0xff] %v786_v7 }
 0x1c5   : > { %v795_v8 = vpop.xlane.xlu0 %794 }
 0x1c6   : > { %797 = vst [vmem:[%s346_s24] sm:$0xff] %v795_v8 }
 0x1c7 PF: > { %p12_p10 = scmp.ge.s32.totalorder %s1176_s19, 4   ;;  %s1400_s15 = smov %s1126_s16 }
 0x1c8   : > { %s1401_s16 = smov %s1185_s22  ;;  %s1402_s17 = smov %s1176_s19 }
 0x1c9   :  { %14 = sbr.rel (!%p12_p10) target bundleno = 2 (0x2), region = 110 }

// kernel: contraction_block_forward.13
= control target key start
LH: loop header
LB: loop body
LE: loop exit
PB: predicated region body
PF: predicated region fallthrough
CT: control target
= control target key end

     0   :  { %s312_s12 = smov 0   ;;  %s335_s0 = inlined_call_operand.vmem [shape: f32[8,1024], index: 0, kind: input, shape index: {}]   ;;  %s336_s1 = inlined_call_operand.vmem [shape: f32[8,1], index: 1, kind: input, shape index: {}]   ;;  %s337_s2 = inlined_call_operand.vmem [shape: f32[8,1], index: 2, kind: input, shape index: {}]   ;;  %s338_s3 = inlined_call_operand.vmem [shape: f32[8,1024], index: 3, kind: output, shape index: {}]  }
   0x1 LB: > { %s262_s13 = sadd.s32 4294967295, %s289_s12   ;;  %p266_p0 = scmp.ge.s32.totalorder %s289_s12, 1  ;;  %s289_s12 = sphi %s312_s12, %s13_s12  }
   0x2   : > { %p138_p1 = scmp.lt.s32.totalorder %s289_s12, 3 }
   0x4   : > { %p139_p2 = pnand %p266_p0, %p138_p1 }
   0x5   : > { %s267_s18 = sshll.u32 (!%p139_p2), %s262_s13, 2 }
   0x6   : > { %142 = sbr.rel (%p139_p2) target bundleno = 147 (0x93), region = 32  ;;  %p163_p3 = scmp.lt.s32.totalorder (!%p139_p2), %s267_s18, 7 }
   0xb   : > { %v178_v0 = vld [vmem:[%s336_s1] sm:$0xff]  ;;  %v291_v1 = vmov 0   ;;  %s340_s18 = smov (!%p163_p3, %s267_s18), 7 }
   0xc   : > { %282 = vset.pattern.permute.xlu0 %v291_v1  ;;  %v188_v2 = vld [vmem:[%s337_s2] sm:$0xff]  ;;  %s268_s19 = sshll.u32 %s340_s18, 3 }
   0xd   : > { %181 = vperm.xlu0 %282, %v178_v0   ;;  %s166_s22 = scalar_lea.vmem %s335_s0, %s268_s19  ;;  %s172_s25 = scalar_lea.vmem %s338_s3, %s268_s19 }
   0xe   : > { %v174_v4 = vld [vmem:[%s166_s22] sm:$0xff]  ;;  %v175_v5 = vld [vmem:[%s166_s22 + $0x8] sm:$0xff]  ;;  %v176_v6 = vld [vmem:[%s166_s22 + $0x10] sm:$0xff] }
   0xf   : > { %v177_v7 = vld [vmem:[%s166_s22 + $0x18] sm:$0xff] }
  0x11   : > { %191 = vperm.xlu0 %282, %v188_v2  }
  0x88   : > { %v182_v3 = vpop.permute.xlu0 %181 }
  0x89   : > { %v184_v8 = vmul.f32 %v182_v3, %v174_v4  ;;  %v185_v9 = vmul.f32 %v182_v3, %v175_v5  ;;  %v186_v10 = vmul.f32 %v182_v3, %v176_v6  ;;  %v187_v12 = vmul.f32 %v182_v3, %v177_v7 }
  0x8c   : > { %v192_v11 = vpop.permute.xlu0 %191 }
  0x8d   : > { %v194_v13 = vadd.f32 %v192_v11, %v184_v8  ;;  %v195_v14 = vadd.f32 %v192_v11, %v185_v9  ;;  %v196_v15 = vadd.f32 %v192_v11, %v186_v10  ;;  %v197_v16 = vadd.f32 %v192_v11, %v187_v12 }
  0x8f   : > { %v198_v17 = vmax.f32 %v194_v13, 0.0  ;;  %v199_v18 = vmax.f32 %v195_v14, 0.0  ;;  %v200_v19 = vmax.f32 %v196_v15, 0.0  ;;  %v201_v20 = vmax.f32 %v197_v16, 0.0 }
  0x91   : > { %202 = vst [vmem:[%s172_s25] sm:$0xff] %v198_v17  ;;  %203 = vst [vmem:[%s172_s25 + $0x8] sm:$0xff] %v199_v18 }
  0x92   : > { %204 = vst [vmem:[%s172_s25 + $0x10] sm:$0xff] %v200_v19  ;;  %205 = vst [vmem:[%s172_s25 + $0x18] sm:$0xff] %v201_v20 }
  0x93 PF: > { %s13_s12 = sadd.s32 1, %s289_s12  }
  0x94   : > { %p10_p4 = scmp.ge.s32.totalorder %s13_s12, 4  }
  0x96   :  { %12 = sbr.rel (!%p10_p4) target bundleno = 1 (0x1), region = 62 }

</bundles_post_ra>
